<compile_context>
chip_gen: v7x
topology: tpu7x:2x2x1
jax: 0.10.0
libtpu: 0.0.40
codegen_flags: <defaults>
</compile_context>

<pallas_src>
import jax
import jax.numpy as jnp
import numpy as np
from jax.experimental import pallas as pl
from jax.experimental.pallas import tpu as pltpu

# Keep wrapper-side matmuls (W @ E^T fold, reference) in true f32 so the
# Pallas kernel and the pure-JAX reference agree tightly.
jax.config.update("jax_default_matmul_precision", "highest")

# ---- small, module-consistent sizes -----------------------------------------
N_ENT = 128         # n_ent  (lane-dense scores / one-hot)
N_REL = 8           # n_rel
N_DIM = 32          # args.n_dim
K = 4               # args.num_blocks
B = 64              # facts per mini-batch (2B = 128 rows per grid step)
G = 4               # mini-batches (grid size) per pallas_call
L = N_DIM // K
KK = K * K
KKL = KK * L        # 128
N_ARITY = 3         # args.n_arity(=2) + 1
BN_EPS = 1e-5
OUT_SUB, OUT_LANES = 8, 128


# ---- compile-time constants (hoisted out of the kernel) ----------------------
def _expand_selectors():
    """0/1 matrices: (x @ g)[b, (c*K+a)*L + l] picks x[b, a*L+l] (g_r) or
    x[b, c*L+l] (g_e)."""
    d = np.arange(N_DIM).reshape(N_DIM, 1)
    p = np.arange(KKL).reshape(1, KKL)
    same_l = (d % L) == (p % L)
    g_r = (((d // L) == ((p // L) % K)) & same_l).astype(np.float32)
    g_e = (((d // L) == (p // (L * K))) & same_l).astype(np.float32)
    return g_r, g_e


_G_R_NP, _G_E_NP = _expand_selectors()


def _build_w(arch):
    """W_h, W_t = kron(A, I_L) with pair-column ordering m = c*K + a."""
    ops_row = jnp.array([0.0, 1.0, -1.0], dtype=jnp.float32)
    alpha3 = ops_row[jnp.argmax(arch, axis=1)].reshape(K, K, K)
    # A_h[c*K + a, i] = alpha[a, i, c]   (head branch, last_idx=1)
    # A_t[c*K + a, i] = alpha[a, c, i]   (tail branch, last_idx=2)
    a_h = jnp.transpose(alpha3, (2, 0, 1)).reshape(KK, K)
    a_t = jnp.transpose(alpha3, (1, 0, 2)).reshape(KK, K)
    eye_l = jnp.eye(L, dtype=jnp.float32)
    w_h = (a_h[:, None, :, None] * eye_l[None, :, None, :]).reshape(KKL, N_DIM)
    w_t = (a_t[:, None, :, None] * eye_l[None, :, None, :]).reshape(KKL, N_DIM)
    return w_h, w_t


# ---- Pallas kernel -----------------------------------------------------------
def kge_loss_kernel(lbl_ref, rid_ref, ent_ref, rel_ref, gr_ref, ge_ref,
                    sh_ref, st_ref, o_ref):
    """One fact mini-batch: gather + BN + pair products + scores + BCE."""
    f32 = jnp.float32

    # ---- one-hot labels (rows 0..B-1: head, B..2B-1: tail); data-dependent --
    ent_cols = jax.lax.broadcasted_iota(jnp.int32, (2 * B, N_ENT), 1)
    y = (lbl_ref[...] == ent_cols).astype(f32)                        # (2B, n_ent)

    # ---- embedding gathers as one-hot selection matmuls (MXU) ---------------
    ht = jnp.dot(y, ent_ref[...], preferred_element_type=f32)         # (2B, n_dim)
    rel_cols = jax.lax.broadcasted_iota(jnp.int32, (B, N_REL), 1)
    sel_r = (rid_ref[...] == rel_cols).astype(f32)                    # (B, n_rel)
    r_rows = jnp.dot(sel_r, rel_ref[...], preferred_element_type=f32)  # (B, n_dim)

    # ---- BatchNorm1d (training-mode batch stats, gamma=1, beta=0) -----------
    def bn(x):
        mu = jnp.mean(x, axis=0, keepdims=True)
        var = jnp.mean((x - mu) ** 2, axis=0, keepdims=True)
        return (x - mu) * jax.lax.rsqrt(var + BN_EPS)

    h_bn = bn(ht[:B])          # head embeddings (own batch stats)
    t_bn = bn(ht[B:])          # tail embeddings (own batch stats)
    r_bn = bn(r_rows)          # relation embeddings

    # ---- pair products P[b, (c*K+a)*L + l] = r[b,a,l] * e_other[b,c,l] ------
    # Expansion selectors are precomputed constants (VMEM inputs).
    r_exp = jnp.dot(r_bn, gr_ref[...], preferred_element_type=f32)    # (B, KKL)
    p_h = r_exp * jnp.dot(t_bn, ge_ref[...], preferred_element_type=f32)
    p_t = r_exp * jnp.dot(h_bn, ge_ref[...], preferred_element_type=f32)

    # ---- scores: alpha-core and entity scoring pre-folded (S = W @ E^T) -----
    scores_h = jnp.dot(p_h, sh_ref[...], preferred_element_type=f32)  # (B, n_ent)
    scores_t = jnp.dot(p_t, st_ref[...], preferred_element_type=f32)  # (B, n_ent)
    scores = jnp.concatenate([scores_h, scores_t], axis=0)            # (2B, n_ent)

    # ---- fused softmax + BCE via log-sum-exp (both branches at once) --------
    m = jnp.max(scores, axis=-1, keepdims=True)
    ex = jnp.exp(scores - m)
    sumex = jnp.sum(ex, axis=-1, keepdims=True)
    logsum = jnp.log(sumex)
    logp = jnp.maximum(scores - (m + logsum), -100.0)                 # log softmax
    log1mp = jnp.maximum(jnp.log(sumex - ex) - logsum, -100.0)        # log(1 - p)
    bce = -(log1mp + y * (logp - log1mp))                             # (2B, n_ent)

    total = jnp.sum(jnp.sum(bce, axis=1, keepdims=True), axis=0, keepdims=True)
    # mean(head branch) + mean(tail branch) == sum(all) / (B * n_ent)
    loss = total * (1.0 / float(B * N_ENT))                           # (1, 1)
    o_ref[...] = jnp.broadcast_to(loss, (1, OUT_SUB, OUT_LANES))      # lane-dense


# ---- wrapper -----------------------------------------------------------------
@jax.jit
def kge_forward(ent_w, rel_w, facts, arch):
    """facts: (G*B, 3) int32; returns per-mini-batch loss, shape (G,)."""
    facts_g = facts.reshape(G, B, 3)
    head, tail, rela = facts_g[..., 0], facts_g[..., 1], facts_g[..., 2]
    labels = jnp.concatenate([head, tail], axis=1).reshape(G * 2 * B, 1).astype(jnp.int32)
    relidx = rela.reshape(G * B, 1).astype(jnp.int32)

    # Fold alpha-core contraction with entity scoring: S = W @ E^T (f32 exact).
    w_h, w_t = _build_w(arch)
    s_h = jnp.dot(w_h, ent_w.T)                                       # (KKL, n_ent)
    s_t = jnp.dot(w_t, ent_w.T)
    g_r = jnp.asarray(_G_R_NP)
    g_e = jnp.asarray(_G_E_NP)

    out = pl.pallas_call(
        kge_loss_kernel,
        out_shape=jax.ShapeDtypeStruct((G, OUT_SUB, OUT_LANES), jnp.float32),
        grid=(G,),
        in_specs=[
            pl.BlockSpec((2 * B, 1), lambda g: (g, 0)),               # labels
            pl.BlockSpec((B, 1), lambda g: (g, 0)),                   # relation ids
            pl.BlockSpec((N_ENT, N_DIM), lambda g: (0, 0)),           # ent_embed (resident)
            pl.BlockSpec((N_REL, N_DIM), lambda g: (0, 0)),           # rel_embed (resident)
            pl.BlockSpec((N_DIM, KKL), lambda g: (0, 0)),             # g_r (resident)
            pl.BlockSpec((N_DIM, KKL), lambda g: (0, 0)),             # g_e (resident)
            pl.BlockSpec((KKL, N_ENT), lambda g: (0, 0)),             # S_h (resident)
            pl.BlockSpec((KKL, N_ENT), lambda g: (0, 0)),             # S_t (resident)
        ],
        out_specs=pl.BlockSpec((1, OUT_SUB, OUT_LANES), lambda g: (g, 0, 0)),
        compiler_params=pltpu.CompilerParams(
            dimension_semantics=("parallel",)),
    )(labels, relidx, ent_w, rel_w, g_r, g_e, s_h, s_t)
    return out[:, 0, 0]                                               # (G,)


# ---- pure-JAX reference (correctness sanity check, one mini-batch) -----------
def _batchnorm_train(x):
    mean = jnp.mean(x, axis=0, keepdims=True)
    var = jnp.mean((x - mean) ** 2, axis=0, keepdims=True)
    return (x - mean) / jnp.sqrt(var + BN_EPS)


def kge_forward_ref(ent_w, rel_w, facts_b, arch):
    head, tail, rela = facts_b[:, 0], facts_b[:, 1], facts_b[:, 2]
    h3 = _batchnorm_train(jnp.take(ent_w, head, axis=0)).reshape(B, K, L)
    t3 = _batchnorm_train(jnp.take(ent_w, tail, axis=0)).reshape(B, K, L)
    r3 = _batchnorm_train(jnp.take(rel_w, rela, axis=0)).reshape(B, K, L)
    ops_row = jnp.array([0.0, 1.0, -1.0], dtype=jnp.float32)
    alpha3 = ops_row[jnp.argmax(arch, axis=1)].reshape(K, K, K)

    def branch(e3, label_idx, last_idx):
        if last_idx == 1:
            vec = jnp.einsum("aic,bal,bcl->bil", alpha3, r3, e3)
        else:
            vec = jnp.einsum("aci,bal,bcl->bil", alpha3, r3, e3)
        scores = vec.reshape(B, N_DIM) @ ent_w.T
        probs = jax.nn.softmax(scores, axis=1)
        y = jax.nn.one_hot(label_idx, N_ENT, dtype=jnp.float32)
        logp = jnp.maximum(jnp.log(probs), -100.0)
        log1mp = jnp.maximum(jnp.log(1.0 - probs), -100.0)
        return jnp.mean(-(y * logp + (1.0 - y) * log1mp))

    return branch(t3, head, 1) + branch(h3, tail, 2)


# ---- main --------------------------------------------------------------------
if __name__ == "__main__":
    key = jax.random.PRNGKey(0)
    k_ent, k_rel, k_h, k_t, k_r, k_arch = jax.random.split(key, 6)

    # xavier_uniform-style embedding init (Embedding weight shape (num, dim))
    def xavier(k, shape):
        bound = (6.0 / (shape[0] + shape[1])) ** 0.5
        return jax.random.uniform(k, shape, jnp.float32, -bound, bound)

    ent_w = xavier(k_ent, (N_ENT, N_DIM))
    rel_w = xavier(k_rel, (N_REL, N_DIM))

    n_facts = G * B
    facts = jnp.stack(
        [
            jax.random.randint(k_h, (n_facts,), 0, N_ENT),   # head
            jax.random.randint(k_t, (n_facts,), 0, N_ENT),   # tail
            jax.random.randint(k_r, (n_facts,), 0, N_REL),   # rela
        ],
        axis=1,
    ).astype(jnp.int32)

    # arch: one-hot boolean (K**n_arity, 3) choosing op in {0, +1, -1} per cell
    arch_idx = jax.random.randint(k_arch, (K ** N_ARITY,), 0, 3)
    arch = (arch_idx[:, None] == jnp.arange(3)[None, :])

    losses = kge_forward(ent_w, rel_w, facts, arch)
    losses = jax.block_until_ready(losses)

    facts_g = facts.reshape(G, B, 3)
    refs = jnp.stack([kge_forward_ref(ent_w, rel_w, facts_g[g], arch)
                      for g in range(G)])

    if not bool(jnp.all(jnp.isfinite(losses))) or not bool(
        jnp.allclose(losses, refs, rtol=2e-3, atol=1e-3)
    ):
        raise SystemExit(f"mismatch: pallas={losses} ref={refs}")

    print("KERNEL_OK")
</pallas_src>

<mosaic_0001>
module attributes {stable_mosaic.version = 11 : i64} {
  func.func @kge_loss_kernel(%arg0: i32, %arg1: memref<128x1xi32, #tpu.memory_space<vmem>>, %arg2: memref<64x1xi32, #tpu.memory_space<vmem>>, %arg3: memref<128x32xf32, #tpu.memory_space<vmem>>, %arg4: memref<8x32xf32, #tpu.memory_space<vmem>>, %arg5: memref<32x128xf32, #tpu.memory_space<vmem>>, %arg6: memref<32x128xf32, #tpu.memory_space<vmem>>, %arg7: memref<128x128xf32, #tpu.memory_space<vmem>>, %arg8: memref<128x128xf32, #tpu.memory_space<vmem>>, %arg9: memref<1x8x128xf32, #tpu.memory_space<vmem>>) attributes {dimension_semantics = [#tpu.dimension_semantics<parallel>], iteration_bounds = array<i64: 4>, scalar_prefetch = 0 : i64, scratch_operands = 0 : i64, tpu.core_type = #tpu.core_type<tc>, window_params = [{transform_indices = @transform_0, window_bounds = array<i64: 128, 1>}, {transform_indices = @transform_1, window_bounds = array<i64: 64, 1>}, {pipeline_mode = #tpu.pipeline_mode<synchronous>, transform_indices = @transform_2, window_bounds = array<i64: 128, 32>}, {pipeline_mode = #tpu.pipeline_mode<synchronous>, transform_indices = @transform_3, window_bounds = array<i64: 8, 32>}, {pipeline_mode = #tpu.pipeline_mode<synchronous>, transform_indices = @transform_4, window_bounds = array<i64: 32, 128>}, {pipeline_mode = #tpu.pipeline_mode<synchronous>, transform_indices = @transform_5, window_bounds = array<i64: 32, 128>}, {pipeline_mode = #tpu.pipeline_mode<synchronous>, transform_indices = @transform_6, window_bounds = array<i64: 128, 128>}, {pipeline_mode = #tpu.pipeline_mode<synchronous>, transform_indices = @transform_7, window_bounds = array<i64: 128, 128>}, {transform_indices = @transform_8, window_bounds = array<i64: 1, 8, 128>}]} {
    %0 = tpu.iota {dimensions = array<i32: 1>} : vector<128x128xi32>
    %c0 = arith.constant 0 : index
    %c0_0 = arith.constant 0 : index
    %1 = vector.load %arg1[%c0, %c0_0] : memref<128x1xi32, #tpu.memory_space<vmem>>, vector<128x1xi32>
    %2 = vector.broadcast %1 : vector<128x1xi32> to vector<128x128xi32>
    %3 = arith.cmpi eq, %2, %0 : vector<128x128xi32>
    %4 = arith.extui %3 : vector<128x128xi1> to vector<128x128xi32>
    %5 = arith.sitofp %4 : vector<128x128xi32> to vector<128x128xf32>
    %c0_1 = arith.constant 0 : index
    %c0_2 = arith.constant 0 : index
    %6 = vector.load %arg3[%c0_1, %c0_2] : memref<128x32xf32, #tpu.memory_space<vmem>>, vector<128x32xf32>
    %cst = arith.constant dense<0.000000e+00> : vector<128x32xf32>
    %7 = tpu.matmul %5, %6, %cst {dimension_numbers = #tpu.dot_dimension_numbers<[1], [0], [0], [1], [0, 0, 1, 1], [], []>, precision = #tpu.contract_precision<fp32>} : vector<128x128xf32>, vector<128x32xf32>, vector<128x32xf32> -> vector<128x32xf32>
    %8 = tpu.iota {dimensions = array<i32: 1>} : vector<64x8xi32>
    %c0_3 = arith.constant 0 : index
    %c0_4 = arith.constant 0 : index
    %9 = vector.load %arg2[%c0_3, %c0_4] : memref<64x1xi32, #tpu.memory_space<vmem>>, vector<64x1xi32>
    %10 = vector.broadcast %9 : vector<64x1xi32> to vector<64x8xi32>
    %11 = arith.cmpi eq, %10, %8 : vector<64x8xi32>
    %12 = arith.extui %11 : vector<64x8xi1> to vector<64x8xi32>
    %13 = arith.sitofp %12 : vector<64x8xi32> to vector<64x8xf32>
    %c0_5 = arith.constant 0 : index
    %c0_6 = arith.constant 0 : index
    %14 = vector.load %arg4[%c0_5, %c0_6] : memref<8x32xf32, #tpu.memory_space<vmem>>, vector<8x32xf32>
    %cst_7 = arith.constant dense<0.000000e+00> : vector<64x32xf32>
    %15 = tpu.matmul %13, %14, %cst_7 {dimension_numbers = #tpu.dot_dimension_numbers<[1], [0], [0], [1], [0, 0, 1, 1], [], []>, precision = #tpu.contract_precision<fp32>} : vector<64x8xf32>, vector<8x32xf32>, vector<64x32xf32> -> vector<64x32xf32>
    %16 = vector.extract_strided_slice %7 {offsets = [0, 0], sizes = [64, 32], strides = [1, 1]} : vector<128x32xf32> to vector<64x32xf32>
    %cst_8 = arith.constant dense<0.000000e+00> : vector<32xf32>
    %17 = vector.multi_reduction <add>, %16, %cst_8 [0] : vector<64x32xf32> to vector<32xf32>
    %18 = vector.shape_cast %17 : vector<32xf32> to vector<1x32xf32>
    %cst_9 = arith.constant 6.400000e+01 : f32
    %19 = vector.broadcast %cst_9 : f32 to vector<1x32xf32>
    %20 = arith.divf %18, %19 : vector<1x32xf32>
    %21 = vector.broadcast %20 : vector<1x32xf32> to vector<64x32xf32>
    %22 = arith.subf %16, %21 : vector<64x32xf32>
    %23 = arith.mulf %22, %22 : vector<64x32xf32>
    %cst_10 = arith.constant dense<0.000000e+00> : vector<32xf32>
    %24 = vector.multi_reduction <add>, %23, %cst_10 [0] : vector<64x32xf32> to vector<32xf32>
    %25 = vector.shape_cast %24 : vector<32xf32> to vector<1x32xf32>
    %cst_11 = arith.constant 6.400000e+01 : f32
    %26 = vector.broadcast %cst_11 : f32 to vector<1x32xf32>
    %27 = arith.divf %25, %26 : vector<1x32xf32>
    %28 = vector.broadcast %20 : vector<1x32xf32> to vector<64x32xf32>
    %29 = arith.subf %16, %28 : vector<64x32xf32>
    %cst_12 = arith.constant 9.99999974E-6 : f32
    %30 = vector.broadcast %cst_12 : f32 to vector<1x32xf32>
    %31 = arith.addf %27, %30 : vector<1x32xf32>
    %32 = math.rsqrt %31 : vector<1x32xf32>
    %33 = vector.broadcast %32 : vector<1x32xf32> to vector<64x32xf32>
    %34 = arith.mulf %29, %33 : vector<64x32xf32>
    %35 = vector.extract_strided_slice %7 {offsets = [64, 0], sizes = [64, 32], strides = [1, 1]} : vector<128x32xf32> to vector<64x32xf32>
    %cst_13 = arith.constant dense<0.000000e+00> : vector<32xf32>
    %36 = vector.multi_reduction <add>, %35, %cst_13 [0] : vector<64x32xf32> to vector<32xf32>
    %37 = vector.shape_cast %36 : vector<32xf32> to vector<1x32xf32>
    %cst_14 = arith.constant 6.400000e+01 : f32
    %38 = vector.broadcast %cst_14 : f32 to vector<1x32xf32>
    %39 = arith.divf %37, %38 : vector<1x32xf32>
    %40 = vector.broadcast %39 : vector<1x32xf32> to vector<64x32xf32>
    %41 = arith.subf %35, %40 : vector<64x32xf32>
    %42 = arith.mulf %41, %41 : vector<64x32xf32>
    %cst_15 = arith.constant dense<0.000000e+00> : vector<32xf32>
    %43 = vector.multi_reduction <add>, %42, %cst_15 [0] : vector<64x32xf32> to vector<32xf32>
    %44 = vector.shape_cast %43 : vector<32xf32> to vector<1x32xf32>
    %cst_16 = arith.constant 6.400000e+01 : f32
    %45 = vector.broadcast %cst_16 : f32 to vector<1x32xf32>
    %46 = arith.divf %44, %45 : vector<1x32xf32>
    %47 = vector.broadcast %39 : vector<1x32xf32> to vector<64x32xf32>
    %48 = arith.subf %35, %47 : vector<64x32xf32>
    %cst_17 = arith.constant 9.99999974E-6 : f32
    %49 = vector.broadcast %cst_17 : f32 to vector<1x32xf32>
    %50 = arith.addf %46, %49 : vector<1x32xf32>
    %51 = math.rsqrt %50 : vector<1x32xf32>
    %52 = vector.broadcast %51 : vector<1x32xf32> to vector<64x32xf32>
    %53 = arith.mulf %48, %52 : vector<64x32xf32>
    %cst_18 = arith.constant dense<0.000000e+00> : vector<32xf32>
    %54 = vector.multi_reduction <add>, %15, %cst_18 [0] : vector<64x32xf32> to vector<32xf32>
    %55 = vector.shape_cast %54 : vector<32xf32> to vector<1x32xf32>
    %cst_19 = arith.constant 6.400000e+01 : f32
    %56 = vector.broadcast %cst_19 : f32 to vector<1x32xf32>
    %57 = arith.divf %55, %56 : vector<1x32xf32>
    %58 = vector.broadcast %57 : vector<1x32xf32> to vector<64x32xf32>
    %59 = arith.subf %15, %58 : vector<64x32xf32>
    %60 = arith.mulf %59, %59 : vector<64x32xf32>
    %cst_20 = arith.constant dense<0.000000e+00> : vector<32xf32>
    %61 = vector.multi_reduction <add>, %60, %cst_20 [0] : vector<64x32xf32> to vector<32xf32>
    %62 = vector.shape_cast %61 : vector<32xf32> to vector<1x32xf32>
    %cst_21 = arith.constant 6.400000e+01 : f32
    %63 = vector.broadcast %cst_21 : f32 to vector<1x32xf32>
    %64 = arith.divf %62, %63 : vector<1x32xf32>
    %65 = vector.broadcast %57 : vector<1x32xf32> to vector<64x32xf32>
    %66 = arith.subf %15, %65 : vector<64x32xf32>
    %cst_22 = arith.constant 9.99999974E-6 : f32
    %67 = vector.broadcast %cst_22 : f32 to vector<1x32xf32>
    %68 = arith.addf %64, %67 : vector<1x32xf32>
    %69 = math.rsqrt %68 : vector<1x32xf32>
    %70 = vector.broadcast %69 : vector<1x32xf32> to vector<64x32xf32>
    %71 = arith.mulf %66, %70 : vector<64x32xf32>
    %c0_23 = arith.constant 0 : index
    %c0_24 = arith.constant 0 : index
    %72 = vector.load %arg5[%c0_23, %c0_24] : memref<32x128xf32, #tpu.memory_space<vmem>>, vector<32x128xf32>
    %cst_25 = arith.constant dense<0.000000e+00> : vector<64x128xf32>
    %73 = tpu.matmul %71, %72, %cst_25 {dimension_numbers = #tpu.dot_dimension_numbers<[1], [0], [0], [1], [0, 0, 1, 1], [], []>, precision = #tpu.contract_precision<fp32>} : vector<64x32xf32>, vector<32x128xf32>, vector<64x128xf32> -> vector<64x128xf32>
    %c0_26 = arith.constant 0 : index
    %c0_27 = arith.constant 0 : index
    %74 = vector.load %arg6[%c0_26, %c0_27] : memref<32x128xf32, #tpu.memory_space<vmem>>, vector<32x128xf32>
    %cst_28 = arith.constant dense<0.000000e+00> : vector<64x128xf32>
    %75 = tpu.matmul %53, %74, %cst_28 {dimension_numbers = #tpu.dot_dimension_numbers<[1], [0], [0], [1], [0, 0, 1, 1], [], []>, precision = #tpu.contract_precision<fp32>} : vector<64x32xf32>, vector<32x128xf32>, vector<64x128xf32> -> vector<64x128xf32>
    %76 = arith.mulf %73, %75 : vector<64x128xf32>
    %c0_29 = arith.constant 0 : index
    %c0_30 = arith.constant 0 : index
    %77 = vector.load %arg6[%c0_29, %c0_30] : memref<32x128xf32, #tpu.memory_space<vmem>>, vector<32x128xf32>
    %cst_31 = arith.constant dense<0.000000e+00> : vector<64x128xf32>
    %78 = tpu.matmul %34, %77, %cst_31 {dimension_numbers = #tpu.dot_dimension_numbers<[1], [0], [0], [1], [0, 0, 1, 1], [], []>, precision = #tpu.contract_precision<fp32>} : vector<64x32xf32>, vector<32x128xf32>, vector<64x128xf32> -> vector<64x128xf32>
    %79 = arith.mulf %73, %78 : vector<64x128xf32>
    %c0_32 = arith.constant 0 : index
    %c0_33 = arith.constant 0 : index
    %80 = vector.load %arg7[%c0_32, %c0_33] : memref<128x128xf32, #tpu.memory_space<vmem>>, vector<128x128xf32>
    %cst_34 = arith.constant dense<0.000000e+00> : vector<64x128xf32>
    %81 = tpu.matmul %76, %80, %cst_34 {dimension_numbers = #tpu.dot_dimension_numbers<[1], [0], [0], [1], [0, 0, 1, 1], [], []>, precision = #tpu.contract_precision<fp32>} : vector<64x128xf32>, vector<128x128xf32>, vector<64x128xf32> -> vector<64x128xf32>
    %c0_35 = arith.constant 0 : index
    %c0_36 = arith.constant 0 : index
    %82 = vector.load %arg8[%c0_35, %c0_36] : memref<128x128xf32, #tpu.memory_space<vmem>>, vector<128x128xf32>
    %cst_37 = arith.constant dense<0.000000e+00> : vector<64x128xf32>
    %83 = tpu.matmul %79, %82, %cst_37 {dimension_numbers = #tpu.dot_dimension_numbers<[1], [0], [0], [1], [0, 0, 1, 1], [], []>, precision = #tpu.contract_precision<fp32>} : vector<64x128xf32>, vector<128x128xf32>, vector<64x128xf32> -> vector<64x128xf32>
    %84 = tpu.concatenate %81, %83 in 0 : vector<64x128xf32>, vector<64x128xf32> -> vector<128x128xf32>
    %cst_38 = arith.constant dense<0xFF800000> : vector<128xf32>
    %85 = vector.multi_reduction <maximumf>, %84, %cst_38 [1] : vector<128x128xf32> to vector<128xf32>
    %86 = vector.shape_cast %85 : vector<128xf32> to vector<128x1xf32>
    %87 = vector.broadcast %86 : vector<128x1xf32> to vector<128x128xf32>
    %88 = arith.subf %84, %87 : vector<128x128xf32>
    %89 = math.exp %88 : vector<128x128xf32>
    %cst_39 = arith.constant dense<0.000000e+00> : vector<128xf32>
    %90 = vector.multi_reduction <add>, %89, %cst_39 [1] : vector<128x128xf32> to vector<128xf32>
    %91 = vector.shape_cast %90 : vector<128xf32> to vector<128x1xf32>
    %92 = math.log %91 : vector<128x1xf32>
    %93 = arith.addf %86, %92 : vector<128x1xf32>
    %94 = vector.broadcast %93 : vector<128x1xf32> to vector<128x128xf32>
    %95 = arith.subf %84, %94 : vector<128x128xf32>
    %cst_40 = arith.constant -1.000000e+02 : f32
    %96 = vector.broadcast %cst_40 : f32 to vector<128x128xf32>
    %97 = arith.maximumf %95, %96 : vector<128x128xf32>
    %98 = vector.broadcast %91 : vector<128x1xf32> to vector<128x128xf32>
    %99 = arith.subf %98, %89 : vector<128x128xf32>
    %100 = math.log %99 : vector<128x128xf32>
    %101 = vector.broadcast %92 : vector<128x1xf32> to vector<128x128xf32>
    %102 = arith.subf %100, %101 : vector<128x128xf32>
    %cst_41 = arith.constant -1.000000e+02 : f32
    %103 = vector.broadcast %cst_41 : f32 to vector<128x128xf32>
    %104 = arith.maximumf %102, %103 : vector<128x128xf32>
    %105 = arith.subf %97, %104 : vector<128x128xf32>
    %106 = arith.mulf %5, %105 : vector<128x128xf32>
    %107 = arith.addf %104, %106 : vector<128x128xf32>
    %cst_42 = arith.constant 0.000000e+00 : f32
    %108 = vector.broadcast %cst_42 : f32 to vector<128x128xf32>
    %109 = arith.subf %108, %107 : vector<128x128xf32>
    %cst_43 = arith.constant dense<0.000000e+00> : vector<128xf32>
    %110 = vector.multi_reduction <add>, %109, %cst_43 [1] : vector<128x128xf32> to vector<128xf32>
    %111 = vector.shape_cast %110 : vector<128xf32> to vector<128x1xf32>
    %cst_44 = arith.constant dense<0.000000e+00> : vector<1xf32>
    %112 = vector.multi_reduction <add>, %111, %cst_44 [0] : vector<128x1xf32> to vector<1xf32>
    %113 = vector.shape_cast %112 : vector<1xf32> to vector<1x1xf32>
    %cst_45 = arith.constant 1.22070313E-4 : f32
    %114 = vector.broadcast %cst_45 : f32 to vector<1x1xf32>
    %115 = arith.mulf %113, %114 : vector<1x1xf32>
    %116 = vector.shape_cast %115 : vector<1x1xf32> to vector<1x1x1xf32>
    %117 = vector.broadcast %116 : vector<1x1x1xf32> to vector<1x8x128xf32>
    %c0_46 = arith.constant 0 : index
    %c0_47 = arith.constant 0 : index
    %c0_48 = arith.constant 0 : index
    %118 = vector.load %arg9[%c0_46, %c0_47, %c0_48] : memref<1x8x128xf32, #tpu.memory_space<vmem>>, vector<1x8x128xf32>
    tpu.vector_store %arg9[%c0_46, %c0_47, %c0_48], %117 {strides = array<i32>} : memref<1x8x128xf32, #tpu.memory_space<vmem>>, vector<1x8x128xf32>,
    return
  }
  func.func @transform_0(%arg0: i32) -> (i32, i32) {
    %c0_i32 = arith.constant 0 : i32
    %c0_i32_0 = arith.constant 0 : i32
    return %arg0, %c0_i32 : i32, i32
  }
  func.func @transform_1(%arg0: i32) -> (i32, i32) {
    %c0_i32 = arith.constant 0 : i32
    %c0_i32_0 = arith.constant 0 : i32
    return %arg0, %c0_i32 : i32, i32
  }
  func.func @transform_2(%arg0: i32) -> (i32, i32) {
    %c0_i32 = arith.constant 0 : i32
    %c0_i32_0 = arith.constant 0 : i32
    %c0_i32_1 = arith.constant 0 : i32
    return %c0_i32, %c0_i32_0 : i32, i32
  }
  func.func @transform_3(%arg0: i32) -> (i32, i32) {
    %c0_i32 = arith.constant 0 : i32
    %c0_i32_0 = arith.constant 0 : i32
    %c0_i32_1 = arith.constant 0 : i32
    return %c0_i32, %c0_i32_0 : i32, i32
  }
  func.func @transform_4(%arg0: i32) -> (i32, i32) {
    %c0_i32 = arith.constant 0 : i32
    %c0_i32_0 = arith.constant 0 : i32
    %c0_i32_1 = arith.constant 0 : i32
    return %c0_i32, %c0_i32_0 : i32, i32
  }
  func.func @transform_5(%arg0: i32) -> (i32, i32) {
    %c0_i32 = arith.constant 0 : i32
    %c0_i32_0 = arith.constant 0 : i32
    %c0_i32_1 = arith.constant 0 : i32
    return %c0_i32, %c0_i32_0 : i32, i32
  }
  func.func @transform_6(%arg0: i32) -> (i32, i32) {
    %c0_i32 = arith.constant 0 : i32
    %c0_i32_0 = arith.constant 0 : i32
    %c0_i32_1 = arith.constant 0 : i32
    return %c0_i32, %c0_i32_0 : i32, i32
  }
  func.func @transform_7(%arg0: i32) -> (i32, i32) {
    %c0_i32 = arith.constant 0 : i32
    %c0_i32_0 = arith.constant 0 : i32
    %c0_i32_1 = arith.constant 0 : i32
    return %c0_i32, %c0_i32_0 : i32, i32
  }
  func.func @transform_8(%arg0: i32) -> (i32, i32, i32) {
    %c0_i32 = arith.constant 0 : i32
    %c0_i32_0 = arith.constant 0 : i32
    %c0_i32_1 = arith.constant 0 : i32
    return %arg0, %c0_i32, %c0_i32_0 : i32, i32, i32
  }
}

</mosaic_0001>

<bundles_post_ra>
// kernel: mul.15
= control target key start
LH: loop header
LB: loop body
LE: loop exit
PB: predicated region body
PF: predicated region fallthrough
CT: control target
= control target key end

     0   :  { %vm21_vm0 = vcmask 31744   ;;  %s56_s14 = smov 4   ;;  %s57_s15 = smov 8   ;;  %vm27_vm1 = vcmask 130144   ;;  %vm33_vm2 = vcmask 97344   ;;  %vm39_vm3 = vcmask 64544   ;;  %s83_s0 = inlined_call_operand.vmem [shape: f32[4,4,4], index: 0, kind: input, shape index: {}]   ;;  %s84_s1 = inlined_call_operand.vmem [shape: f32[16,4], index: 1, kind: output, shape index: {}]  }
   0x1   :  { %v49_v0 = vld [vmem:[%s83_s0 + $0xc] sm:$0xf]  ;;  %v50_v1 = vld [vmem:[%s83_s0 + $0x8] sm:$0xf]  ;;  %v51_v2 = vld [vmem:[%s83_s0 + $0x4] sm:$0xf] }
   0x2   :  { %8 = vst [vmem:[#allocation1 + $0x18] sm:$0xf] %v49_v0  ;;  %13 = vst [vmem:[#allocation1 + $0x10] sm:$0xf] %v50_v1  ;;  %v18_v3 = vld [vmem:[%s83_s0] sm:$0xf] }
   0x3   :  { %17 = vst [vmem:[#allocation1 + $0x8] sm:$0xf] %v51_v2  ;;  %19 = vst [vmem:[#allocation1] sm:$0xf] %v18_v3  ;;  %s55_s0 = smov 12  }
   0xa   :  { %v24_v4 = vld [vmem:[#allocation1 + $0x3] ss:$8 sm:$0xf]   ;;  %v36_v5 = vld [vmem:[#allocation1 + $0x1] ss:$8 sm:$0xf]  }
   0xb   :  { %25 = vrot.lane.b32.xlu0 %v24_v4, %s55_s0  ;;  %v20_v6 = vld [vmem:[#allocation1] ss:$8 sm:$0xf]   ;;  %v30_v7 = vld [vmem:[#allocation1 + $0x2] ss:$8 sm:$0xf]   ;;  %37 = vrot.lane.b32.xlu1 %v36_v5, %s56_s14 }
   0xc   :  { %22 = vst.msk [vmem:[#allocation0] sm:$0xf] %vm21_vm0, %v20_v6  }
   0xf   :  { %31 = vrot.lane.b32.xlu0 %v30_v7, %s57_s15 }
  0x7d   :  { %v26_v8 = vpop.permute.xlu0 %25   ;;  %v38_v9 = vpop.permute.xlu1 %37  }
  0x7e   :  { %28 = vst.msk [vmem:[#allocation0] sm:$0xf] %vm27_vm1, %v26_v8  }
  0x81   :  { %v32_v10 = vpop.permute.xlu0 %31  }
  0x82   :  { %34 = vst.msk [vmem:[#allocation0] sm:$0xf] %vm33_vm2, %v32_v10  }
  0x83   :  { %40 = vst.msk [vmem:[#allocation0] sm:$0xf] %vm39_vm3, %v38_v9  }
  0x8a   :  { %v44_v11 = vld [vmem:[#allocation0] sm:$0xf] }
  0x8b   :  { %46 = vst [vmem:[%s84_s1] sm:$0xf] %v44_v11 }

// kernel: squeeze.0
= control target key start
LH: loop header
LB: loop body
LE: loop exit
PB: predicated region body
PF: predicated region fallthrough
CT: control target
= control target key end

     0   :  { %s1090_s8 = smov 125   ;;  %s1091_s9 = smov 126   ;;  %vm7_vm0 = vcmask 7168   ;;  %s2189_s0 = inlined_call_operand.vmem [shape: s32[4,64,1], index: 0, kind: input, shape index: {}]   ;;  %s2190_s1 = inlined_call_operand.vmem [shape: s32[256,1], index: 1, kind: output, shape index: {}]  }
   0x1   :  { %v4_v0 = vld [vmem:[%s2189_s0] sm:$0xf]  ;;  %s1089_s0 = smov 127   ;;  %s1092_s10 = smov 124  }
   0x2   :  { %5 = vst [vmem:[#allocation0] sm:$0xf] %v4_v0  ;;  %s1093_s11 = smov 123   ;;  %s1094_s12 = smov 122  }
   0x3   :  { %s1095_s13 = smov 121   ;;  %s1096_s14 = smov 120  }
   0x4   :  { %s1097_s15 = smov 119   ;;  %s1098_s16 = smov 118  }
   0x5   :  { %s1099_s17 = smov 117   ;;  %s1100_s18 = smov 116  }
   0x6   :  { %s1101_s19 = smov 115   ;;  %s1102_s20 = smov 114  }
   0x7   :  { %s1103_s21 = smov 113   ;;  %s1104_s22 = smov 112  }
   0x8   :  { %s1105_s23 = smov 111   ;;  %s1106_s24 = smov 110  }
   0x9   :  { %v15_v1 = vld [vmem:[#allocation0] sm:$0xf]   ;;  %s1107_s25 = smov 109   ;;  %s1108_s26 = smov 108  }
   0xa   :  { %v39_v2 = vld [vmem:[#allocation0] sm:$0xf]   ;;  %16 = vrot.lane.b32.xlu0 %v15_v1, %s1089_s0  ;;  %s1109_s27 = smov 107   ;;  %s1110_s28 = smov 106  }
   0xb   :  { %40 = vrot.lane.b32.xlu1 %v39_v2, %s1090_s8  ;;  %v27_v3 = vld [vmem:[#allocation0] sm:$0xf]   ;;  %s1111_s29 = smov 105   ;;  %s1112_s30 = smov 104  }
   0xc   :  { %v51_v4 = vld [vmem:[#allocation0] sm:$0xf]   ;;  %s1113_s2 = smov 103   ;;  %s1114_s3 = smov 102  }
   0xd   :  { %v63_v5 = vld [vmem:[#allocation0] sm:$0xf]   ;;  %s1115_s4 = smov 101   ;;  %s1116_s5 = smov 100  }
   0xe   :  { %28 = vrot.lane.b32.xlu0 %v27_v3, %s1091_s9  ;;  %v75_v6 = vld [vmem:[#allocation0] sm:$0xf]   ;;  %s1117_s6 = smov 99   ;;  %s1118_s7 = smov 98  }
   0xf   :  { %52 = vrot.lane.b32.xlu1 %v51_v4, %s1092_s10  ;;  %v87_v7 = vld [vmem:[#allocation0] sm:$0xf]   ;;  %s1119_s0 = smov 97   ;;  %s1120_s8 = smov 96  }
  0x10   :  { %v99_v8 = vld [vmem:[#allocation0] sm:$0xf]   ;;  %s1121_s9 = smov 95   ;;  %s1122_s10 = smov 94  }
  0x11   :  { %v111_v9 = vld [vmem:[#allocation0] sm:$0xf]  }
  0x12   :  { %64 = vrot.lane.b32.xlu0 %v63_v5, %s1093_s11  ;;  %v123_v10 = vld [vmem:[#allocation0] sm:$0xf]   ;;  %s1123_s11 = smov 93  }
  0x13   :  { %76 = vrot.lane.b32.xlu1 %v75_v6, %s1094_s12  ;;  %v135_v11 = vld [vmem:[#allocation0] sm:$0xf]   ;;  %s1124_s12 = smov 92  }
  0x14   :  { %v147_v12 = vld [vmem:[#allocation0] sm:$0xf]  }
  0x15   :  { %v159_v13 = vld [vmem:[#allocation0] sm:$0xf]  }
  0x16   :  { %88 = vrot.lane.b32.xlu0 %v87_v7, %s1095_s13  ;;  %v171_v14 = vld [vmem:[#allocation0] sm:$0xf]   ;;  %s1125_s13 = smov 91  }
  0x17   :  { %100 = vrot.lane.b32.xlu1 %v99_v8, %s1096_s14  ;;  %v183_v15 = vld [vmem:[#allocation0] sm:$0xf]   ;;  %s1126_s14 = smov 90  }
  0x18   :  { %v195_v16 = vld [vmem:[#allocation0] sm:$0xf]  }
  0x19   :  { %v207_v17 = vld [vmem:[#allocation0] sm:$0xf]  }
  0x1a   :  { %112 = vrot.lane.b32.xlu0 %v111_v9, %s1097_s15  ;;  %v219_v18 = vld [vmem:[#allocation0] sm:$0xf]   ;;  %s1127_s15 = smov 89  }
  0x1b   :  { %124 = vrot.lane.b32.xlu1 %v123_v10, %s1098_s16  ;;  %v231_v19 = vld [vmem:[#allocation0] sm:$0xf]   ;;  %s1128_s16 = smov 88  }
  0x1c   :  { %v243_v20 = vld [vmem:[#allocation0] sm:$0xf]  }
  0x1d   :  { %v255_v21 = vld [vmem:[#allocation0] sm:$0xf]  }
  0x1e   :  { %136 = vrot.lane.b32.xlu0 %v135_v11, %s1099_s17  ;;  %v267_v22 = vld [vmem:[#allocation0] sm:$0xf]   ;;  %s1129_s17 = smov 87  }
  0x1f   :  { %148 = vrot.lane.b32.xlu1 %v147_v12, %s1100_s18  ;;  %v279_v23 = vld [vmem:[#allocation0] sm:$0xf]   ;;  %s1130_s18 = smov 86  }
  0x20   :  { %v291_v24 = vld [vmem:[#allocation0] sm:$0xf]  }
  0x21   :  { %v303_v25 = vld [vmem:[#allocation0] sm:$0xf]  }
  0x22   :  { %160 = vrot.lane.b32.xlu0 %v159_v13, %s1101_s19  ;;  %v315_v26 = vld [vmem:[#allocation0] sm:$0xf]   ;;  %s1131_s19 = smov 85  }
  0x23   :  { %172 = vrot.lane.b32.xlu1 %v171_v14, %s1102_s20  ;;  %v327_v27 = vld [vmem:[#allocation0] sm:$0xf]   ;;  %s1132_s20 = smov 84  }
  0x24   :  { %v339_v28 = vld [vmem:[#allocation0] sm:$0xf]  }
  0x25   :  { %v351_v29 = vld [vmem:[#allocation0] sm:$0xf]  }
  0x26   :  { %184 = vrot.lane.b32.xlu0 %v183_v15, %s1103_s21  ;;  %v363_v30 = vld [vmem:[#allocation0] sm:$0xf]   ;;  %s1133_s21 = smov 83  }
  0x27   :  { %196 = vrot.lane.b32.xlu1 %v195_v16, %s1104_s22  ;;  %v375_v31 = vld [vmem:[#allocation0] sm:$0xf]   ;;  %s1134_s22 = smov 82  }
  0x28   :  { %v387_v32 = vld [vmem:[#allocation0] sm:$0xf]  }
  0x29   :  { %v399_v33 = vld [vmem:[#allocation0] sm:$0xf]  }
  0x2a   :  { %208 = vrot.lane.b32.xlu0 %v207_v17, %s1105_s23  ;;  %v411_v34 = vld [vmem:[#allocation0] sm:$0xf]   ;;  %s1135_s23 = smov 81  }
  0x2b   :  { %220 = vrot.lane.b32.xlu1 %v219_v18, %s1106_s24  ;;  %v423_v35 = vld [vmem:[#allocation0] sm:$0xf]   ;;  %s1136_s24 = smov 80  }
  0x2c   :  { %v435_v36 = vld [vmem:[#allocation0] sm:$0xf]  }
  0x2d   :  { %v447_v37 = vld [vmem:[#allocation0] sm:$0xf]  }
  0x2e   :  { %232 = vrot.lane.b32.xlu0 %v231_v19, %s1107_s25  ;;  %v459_v38 = vld [vmem:[#allocation0] sm:$0xf]   ;;  %s1137_s25 = smov 79  }
  0x2f   :  { %244 = vrot.lane.b32.xlu1 %v243_v20, %s1108_s26  ;;  %v471_v39 = vld [vmem:[#allocation0] sm:$0xf]   ;;  %s1138_s26 = smov 78  }
  0x30   :  { %v483_v40 = vld [vmem:[#allocation0] sm:$0xf]  }
  0x31   :  { %v495_v41 = vld [vmem:[#allocation0] sm:$0xf]  }
  0x32   :  { %256 = vrot.lane.b32.xlu0 %v255_v21, %s1109_s27  ;;  %v507_v42 = vld [vmem:[#allocation0] sm:$0xf]   ;;  %s1139_s27 = smov 77  }
  0x33   :  { %268 = vrot.lane.b32.xlu1 %v267_v22, %s1110_s28  ;;  %v519_v43 = vld [vmem:[#allocation0] sm:$0xf]   ;;  %s1140_s28 = smov 76  }
  0x34   :  { %v531_v44 = vld [vmem:[#allocation0] sm:$0xf]  }
  0x35   :  { %v543_v45 = vld [vmem:[#allocation0] sm:$0xf]  }
  0x36   :  { %280 = vrot.lane.b32.xlu0 %v279_v23, %s1111_s29  ;;  %v555_v46 = vld [vmem:[#allocation0] sm:$0xf]   ;;  %s1141_s29 = smov 75  }
  0x37   :  { %292 = vrot.lane.b32.xlu1 %v291_v24, %s1112_s30  ;;  %v567_v47 = vld [vmem:[#allocation0] sm:$0xf]   ;;  %s1142_s30 = smov 74  }
  0x38   :  { %v579_v48 = vld [vmem:[#allocation0] sm:$0xf]  }
  0x39   :  { %v591_v49 = vld [vmem:[#allocation0] sm:$0xf]  }
  0x3a   :  { %304 = vrot.lane.b32.xlu0 %v303_v25, %s1113_s2  ;;  %v603_v50 = vld [vmem:[#allocation0] sm:$0xf]   ;;  %s1143_s2 = smov 73  }
  0x3b   :  { %316 = vrot.lane.b32.xlu1 %v315_v26, %s1114_s3  ;;  %v615_v51 = vld [vmem:[#allocation0] sm:$0xf]   ;;  %s1144_s3 = smov 72  }
  0x3c   :  { %v627_v52 = vld [vmem:[#allocation0] sm:$0xf]  }
  0x3d   :  { %v639_v53 = vld [vmem:[#allocation0] sm:$0xf]  }
  0x3e   :  { %328 = vrot.lane.b32.xlu0 %v327_v27, %s1115_s4  ;;  %v651_v54 = vld [vmem:[#allocation0] sm:$0xf]  }
  0x3f   :  { %340 = vrot.lane.b32.xlu1 %v339_v28, %s1116_s5  ;;  %v663_v55 = vld [vmem:[#allocation0] sm:$0xf]  }
  0x40   :  { %v675_v56 = vld [vmem:[#allocation0] sm:$0xf]  }
  0x41   :  { %v687_v57 = vld [vmem:[#allocation0] sm:$0xf]  }
  0x42   :  { %352 = vrot.lane.b32.xlu0 %v351_v29, %s1117_s6  ;;  %v699_v58 = vld [vmem:[#allocation0] sm:$0xf]   ;;  %s1151_s6 = smov 65  }
  0x43   :  { %364 = vrot.lane.b32.xlu1 %v363_v30, %s1118_s7  ;;  %v6_v59 = vld [vmem:[#allocation0] sm:$0xf]  }
  0x44   :  { %8 = vst.msk [vmem:[%s2190_s1] sm:$0x1] %vm7_vm0, %v6_v59   ;;  %771 = vst.msk [vmem:[%s2190_s1 + $0x3f] sm:$0x2] %vm7_vm0, %v6_v59   ;;  %v711_v60 = vld [vmem:[#allocation0] sm:$0xf]  }
  0x45   :  { %772 = vst.msk [vmem:[%s2190_s1 + $0x7e] sm:$0x4] %vm7_vm0, %v6_v59   ;;  %773 = vst.msk [vmem:[%s2190_s1 + $0xbd] sm:$0x8] %vm7_vm0, %v6_v59   ;;  %v723_v61 = vld [vmem:[#allocation0] sm:$0xf]  }
  0x46   :  { %376 = vrot.lane.b32.xlu0 %v375_v31, %s1119_s0  ;;  %v735_v0 = vld [vmem:[#allocation0] sm:$0xf]  }
  0x47   :  { %388 = vrot.lane.b32.xlu1 %v387_v32, %s1120_s8  ;;  %v747_v1 = vld [vmem:[#allocation0] sm:$0xf]  }
  0x48   :  { %v759_v4 = vld [vmem:[#allocation0] sm:$0xf]  }
  0x4a   :  { %400 = vrot.lane.b32.xlu0 %v399_v33, %s1121_s9 }
  0x4b   :  { %412 = vrot.lane.b32.xlu1 %v411_v34, %s1122_s10 }
  0x4e   :  { %424 = vrot.lane.b32.xlu0 %v423_v35, %s1123_s11  ;;  %s1145_s11 = smov 71  }
  0x4f   :  { %436 = vrot.lane.b32.xlu1 %v435_v36, %s1124_s12  ;;  %s1146_s12 = smov 70  }
  0x52   :  { %448 = vrot.lane.b32.xlu0 %v447_v37, %s1125_s13 }
  0x53   :  { %460 = vrot.lane.b32.xlu1 %v459_v38, %s1126_s14 }
  0x56   :  { %472 = vrot.lane.b32.xlu0 %v471_v39, %s1127_s15 }
  0x57   :  { %484 = vrot.lane.b32.xlu1 %v483_v40, %s1128_s16 }
  0x5a   :  { %496 = vrot.lane.b32.xlu0 %v495_v41, %s1129_s17  ;;  %s1149_s17 = smov 67  }
  0x5b   :  { %508 = vrot.lane.b32.xlu1 %v507_v42, %s1130_s18  ;;  %s1150_s18 = smov 66  }
  0x5e   :  { %520 = vrot.lane.b32.xlu0 %v519_v43, %s1131_s19 }
  0x5f   :  { %532 = vrot.lane.b32.xlu1 %v531_v44, %s1132_s20 }
  0x62   :  { %544 = vrot.lane.b32.xlu0 %v543_v45, %s1133_s21 }
  0x63   :  { %556 = vrot.lane.b32.xlu1 %v555_v46, %s1134_s22 }
  0x66   :  { %568 = vrot.lane.b32.xlu0 %v567_v47, %s1135_s23 }
  0x67   :  { %580 = vrot.lane.b32.xlu1 %v579_v48, %s1136_s24 }
  0x6a   :  { %592 = vrot.lane.b32.xlu0 %v591_v49, %s1137_s25 }
  0x6b   :  { %604 = vrot.lane.b32.xlu1 %v603_v50, %s1138_s26 }
  0x6e   :  { %616 = vrot.lane.b32.xlu0 %v615_v51, %s1139_s27 }
  0x6f   :  { %628 = vrot.lane.b32.xlu1 %v627_v52, %s1140_s28 }
  0x72   :  { %640 = vrot.lane.b32.xlu0 %v639_v53, %s1141_s29  ;;  %s1147_s29 = smov 69  }
  0x73   :  { %652 = vrot.lane.b32.xlu1 %v651_v54, %s1142_s30  ;;  %s1148_s30 = smov 68  }
  0x76   :  { %664 = vrot.lane.b32.xlu0 %v663_v55, %s1143_s2 }
  0x77   :  { %676 = vrot.lane.b32.xlu1 %v675_v56, %s1144_s3 }
  0x7a   :  { %688 = vrot.lane.b32.xlu0 %v687_v57, %s1145_s11 }
  0x7b   :  { %700 = vrot.lane.b32.xlu1 %v699_v58, %s1146_s12 }
  0x7c   :  { %v17_v62 = vpop.permute.xlu0 %16  }
  0x7d   :  { %v41_v63 = vpop.permute.xlu1 %40   ;;  %774 = vst.msk [vmem:[%s2190_s1 + $0x1] sm:$0x1] %vm7_vm0, %v17_v62   ;;  %775 = vst.msk [vmem:[%s2190_s1 + $0x40] sm:$0x2] %vm7_vm0, %v17_v62  }
  0x7e   :  { %776 = vst.msk [vmem:[%s2190_s1 + $0x7f] sm:$0x4] %vm7_vm0, %v17_v62   ;;  %777 = vst.msk [vmem:[%s2190_s1 + $0xbe] sm:$0x8] %vm7_vm0, %v17_v62   ;;  %712 = vrot.lane.b32.xlu0 %v711_v60, %s1147_s29 }
  0x7f   :  { %782 = vst.msk [vmem:[%s2190_s1 + $0x3] sm:$0x1] %vm7_vm0, %v41_v63   ;;  %783 = vst.msk [vmem:[%s2190_s1 + $0x42] sm:$0x2] %vm7_vm0, %v41_v63   ;;  %724 = vrot.lane.b32.xlu1 %v723_v61, %s1148_s30 }
  0x80   :  { %784 = vst.msk [vmem:[%s2190_s1 + $0x81] sm:$0x4] %vm7_vm0, %v41_v63   ;;  %785 = vst.msk [vmem:[%s2190_s1 + $0xc0] sm:$0x8] %vm7_vm0, %v41_v63   ;;  %v29_v2 = vpop.permute.xlu0 %28  }
  0x81   :  { %v53_v3 = vpop.permute.xlu1 %52   ;;  %778 = vst.msk [vmem:[%s2190_s1 + $0x2] sm:$0x1] %vm7_vm0, %v29_v2   ;;  %779 = vst.msk [vmem:[%s2190_s1 + $0x41] sm:$0x2] %vm7_vm0, %v29_v2  }
  0x82   :  { %780 = vst.msk [vmem:[%s2190_s1 + $0x80] sm:$0x4] %vm7_vm0, %v29_v2   ;;  %781 = vst.msk [vmem:[%s2190_s1 + $0xbf] sm:$0x8] %vm7_vm0, %v29_v2   ;;  %736 = vrot.lane.b32.xlu0 %v735_v0, %s1149_s17 }
  0x83   :  { %786 = vst.msk [vmem:[%s2190_s1 + $0x4] sm:$0x1] %vm7_vm0, %v53_v3   ;;  %787 = vst.msk [vmem:[%s2190_s1 + $0x43] sm:$0x2] %vm7_vm0, %v53_v3   ;;  %748 = vrot.lane.b32.xlu1 %v747_v1, %s1150_s18 }
  0x84   :  { %788 = vst.msk [vmem:[%s2190_s1 + $0x82] sm:$0x4] %vm7_vm0, %v53_v3   ;;  %789 = vst.msk [vmem:[%s2190_s1 + $0xc1] sm:$0x8] %vm7_vm0, %v53_v3   ;;  %v65_v5 = vpop.permute.xlu0 %64  }
  0x85   :  { %v77_v6 = vpop.permute.xlu1 %76   ;;  %790 = vst.msk [vmem:[%s2190_s1 + $0x5] sm:$0x1] %vm7_vm0, %v65_v5   ;;  %791 = vst.msk [vmem:[%s2190_s1 + $0x44] sm:$0x2] %vm7_vm0, %v65_v5  }
  0x86   :  { %792 = vst.msk [vmem:[%s2190_s1 + $0x83] sm:$0x4] %vm7_vm0, %v65_v5   ;;  %793 = vst.msk [vmem:[%s2190_s1 + $0xc2] sm:$0x8] %vm7_vm0, %v65_v5   ;;  %760 = vrot.lane.b32.xlu0 %v759_v4, %s1151_s6 }
  0x87   :  { %794 = vst.msk [vmem:[%s2190_s1 + $0x6] sm:$0x1] %vm7_vm0, %v77_v6   ;;  %795 = vst.msk [vmem:[%s2190_s1 + $0x45] sm:$0x2] %vm7_vm0, %v77_v6  }
  0x88   :  { %796 = vst.msk [vmem:[%s2190_s1 + $0x84] sm:$0x4] %vm7_vm0, %v77_v6   ;;  %797 = vst.msk [vmem:[%s2190_s1 + $0xc3] sm:$0x8] %vm7_vm0, %v77_v6   ;;  %v89_v7 = vpop.permute.xlu0 %88  }
  0x89   :  { %v101_v8 = vpop.permute.xlu1 %100   ;;  %798 = vst.msk [vmem:[%s2190_s1 + $0x7] sm:$0x1] %vm7_vm0, %v89_v7   ;;  %799 = vst.msk [vmem:[%s2190_s1 + $0x46] sm:$0x2] %vm7_vm0, %v89_v7  }
  0x8a   :  { %800 = vst.msk [vmem:[%s2190_s1 + $0x85] sm:$0x4] %vm7_vm0, %v89_v7   ;;  %801 = vst.msk [vmem:[%s2190_s1 + $0xc4] sm:$0x8] %vm7_vm0, %v89_v7  }
  0x8b   :  { %802 = vst.msk [vmem:[%s2190_s1 + $0x8] sm:$0x1] %vm7_vm0, %v101_v8   ;;  %803 = vst.msk [vmem:[%s2190_s1 + $0x47] sm:$0x2] %vm7_vm0, %v101_v8  }
  0x8c   :  { %804 = vst.msk [vmem:[%s2190_s1 + $0x86] sm:$0x4] %vm7_vm0, %v101_v8   ;;  %805 = vst.msk [vmem:[%s2190_s1 + $0xc5] sm:$0x8] %vm7_vm0, %v101_v8   ;;  %v113_v9 = vpop.permute.xlu0 %112  }
  0x8d   :  { %v125_v10 = vpop.permute.xlu1 %124   ;;  %806 = vst.msk [vmem:[%s2190_s1 + $0x9] sm:$0x1] %vm7_vm0, %v113_v9   ;;  %807 = vst.msk [vmem:[%s2190_s1 + $0x48] sm:$0x2] %vm7_vm0, %v113_v9  }
  0x8e   :  { %808 = vst.msk [vmem:[%s2190_s1 + $0x87] sm:$0x4] %vm7_vm0, %v113_v9   ;;  %809 = vst.msk [vmem:[%s2190_s1 + $0xc6] sm:$0x8] %vm7_vm0, %v113_v9  }
  0x8f   :  { %810 = vst.msk [vmem:[%s2190_s1 + $0xa] sm:$0x1] %vm7_vm0, %v125_v10   ;;  %811 = vst.msk [vmem:[%s2190_s1 + $0x49] sm:$0x2] %vm7_vm0, %v125_v10  }
  0x90   :  { %812 = vst.msk [vmem:[%s2190_s1 + $0x88] sm:$0x4] %vm7_vm0, %v125_v10   ;;  %813 = vst.msk [vmem:[%s2190_s1 + $0xc7] sm:$0x8] %vm7_vm0, %v125_v10   ;;  %v137_v11 = vpop.permute.xlu0 %136  }
  0x91   :  { %v149_v12 = vpop.permute.xlu1 %148   ;;  %814 = vst.msk [vmem:[%s2190_s1 + $0xb] sm:$0x1] %vm7_vm0, %v137_v11   ;;  %815 = vst.msk [vmem:[%s2190_s1 + $0x4a] sm:$0x2] %vm7_vm0, %v137_v11  }
  0x92   :  { %816 = vst.msk [vmem:[%s2190_s1 + $0x89] sm:$0x4] %vm7_vm0, %v137_v11   ;;  %817 = vst.msk [vmem:[%s2190_s1 + $0xc8] sm:$0x8] %vm7_vm0, %v137_v11  }
  0x93   :  { %818 = vst.msk [vmem:[%s2190_s1 + $0xc] sm:$0x1] %vm7_vm0, %v149_v12   ;;  %819 = vst.msk [vmem:[%s2190_s1 + $0x4b] sm:$0x2] %vm7_vm0, %v149_v12  }
  0x94   :  { %820 = vst.msk [vmem:[%s2190_s1 + $0x8a] sm:$0x4] %vm7_vm0, %v149_v12   ;;  %821 = vst.msk [vmem:[%s2190_s1 + $0xc9] sm:$0x8] %vm7_vm0, %v149_v12   ;;  %v161_v13 = vpop.permute.xlu0 %160  }
  0x95   :  { %v173_v14 = vpop.permute.xlu1 %172   ;;  %822 = vst.msk [vmem:[%s2190_s1 + $0xd] sm:$0x1] %vm7_vm0, %v161_v13   ;;  %823 = vst.msk [vmem:[%s2190_s1 + $0x4c] sm:$0x2] %vm7_vm0, %v161_v13  }
  0x96   :  { %824 = vst.msk [vmem:[%s2190_s1 + $0x8b] sm:$0x4] %vm7_vm0, %v161_v13   ;;  %825 = vst.msk [vmem:[%s2190_s1 + $0xca] sm:$0x8] %vm7_vm0, %v161_v13  }
  0x97   :  { %826 = vst.msk [vmem:[%s2190_s1 + $0xe] sm:$0x1] %vm7_vm0, %v173_v14   ;;  %827 = vst.msk [vmem:[%s2190_s1 + $0x4d] sm:$0x2] %vm7_vm0, %v173_v14  }
  0x98   :  { %828 = vst.msk [vmem:[%s2190_s1 + $0x8c] sm:$0x4] %vm7_vm0, %v173_v14   ;;  %829 = vst.msk [vmem:[%s2190_s1 + $0xcb] sm:$0x8] %vm7_vm0, %v173_v14   ;;  %v185_v15 = vpop.permute.xlu0 %184  }
  0x99   :  { %v197_v16 = vpop.permute.xlu1 %196   ;;  %830 = vst.msk [vmem:[%s2190_s1 + $0xf] sm:$0x1] %vm7_vm0, %v185_v15   ;;  %831 = vst.msk [vmem:[%s2190_s1 + $0x4e] sm:$0x2] %vm7_vm0, %v185_v15  }
  0x9a   :  { %832 = vst.msk [vmem:[%s2190_s1 + $0x8d] sm:$0x4] %vm7_vm0, %v185_v15   ;;  %833 = vst.msk [vmem:[%s2190_s1 + $0xcc] sm:$0x8] %vm7_vm0, %v185_v15  }
  0x9b   :  { %834 = vst.msk [vmem:[%s2190_s1 + $0x10] sm:$0x1] %vm7_vm0, %v197_v16   ;;  %835 = vst.msk [vmem:[%s2190_s1 + $0x4f] sm:$0x2] %vm7_vm0, %v197_v16  }
  0x9c   :  { %836 = vst.msk [vmem:[%s2190_s1 + $0x8e] sm:$0x4] %vm7_vm0, %v197_v16   ;;  %837 = vst.msk [vmem:[%s2190_s1 + $0xcd] sm:$0x8] %vm7_vm0, %v197_v16   ;;  %v209_v17 = vpop.permute.xlu0 %208  }
  0x9d   :  { %v221_v18 = vpop.permute.xlu1 %220   ;;  %838 = vst.msk [vmem:[%s2190_s1 + $0x11] sm:$0x1] %vm7_vm0, %v209_v17   ;;  %839 = vst.msk [vmem:[%s2190_s1 + $0x50] sm:$0x2] %vm7_vm0, %v209_v17  }
  0x9e   :  { %840 = vst.msk [vmem:[%s2190_s1 + $0x8f] sm:$0x4] %vm7_vm0, %v209_v17   ;;  %841 = vst.msk [vmem:[%s2190_s1 + $0xce] sm:$0x8] %vm7_vm0, %v209_v17  }
  0x9f   :  { %842 = vst.msk [vmem:[%s2190_s1 + $0x12] sm:$0x1] %vm7_vm0, %v221_v18   ;;  %843 = vst.msk [vmem:[%s2190_s1 + $0x51] sm:$0x2] %vm7_vm0, %v221_v18  }
  0xa0   :  { %844 = vst.msk [vmem:[%s2190_s1 + $0x90] sm:$0x4] %vm7_vm0, %v221_v18   ;;  %845 = vst.msk [vmem:[%s2190_s1 + $0xcf] sm:$0x8] %vm7_vm0, %v221_v18   ;;  %v233_v19 = vpop.permute.xlu0 %232  }
  0xa1   :  { %v245_v20 = vpop.permute.xlu1 %244   ;;  %846 = vst.msk [vmem:[%s2190_s1 + $0x13] sm:$0x1] %vm7_vm0, %v233_v19   ;;  %847 = vst.msk [vmem:[%s2190_s1 + $0x52] sm:$0x2] %vm7_vm0, %v233_v19  }
  0xa2   :  { %848 = vst.msk [vmem:[%s2190_s1 + $0x91] sm:$0x4] %vm7_vm0, %v233_v19   ;;  %849 = vst.msk [vmem:[%s2190_s1 + $0xd0] sm:$0x8] %vm7_vm0, %v233_v19  }
  0xa3   :  { %850 = vst.msk [vmem:[%s2190_s1 + $0x14] sm:$0x1] %vm7_vm0, %v245_v20   ;;  %851 = vst.msk [vmem:[%s2190_s1 + $0x53] sm:$0x2] %vm7_vm0, %v245_v20  }
  0xa4   :  { %852 = vst.msk [vmem:[%s2190_s1 + $0x92] sm:$0x4] %vm7_vm0, %v245_v20   ;;  %853 = vst.msk [vmem:[%s2190_s1 + $0xd1] sm:$0x8] %vm7_vm0, %v245_v20   ;;  %v257_v21 = vpop.permute.xlu0 %256  }
  0xa5   :  { %v269_v22 = vpop.permute.xlu1 %268   ;;  %854 = vst.msk [vmem:[%s2190_s1 + $0x15] sm:$0x1] %vm7_vm0, %v257_v21   ;;  %855 = vst.msk [vmem:[%s2190_s1 + $0x54] sm:$0x2] %vm7_vm0, %v257_v21  }
  0xa6   :  { %856 = vst.msk [vmem:[%s2190_s1 + $0x93] sm:$0x4] %vm7_vm0, %v257_v21   ;;  %857 = vst.msk [vmem:[%s2190_s1 + $0xd2] sm:$0x8] %vm7_vm0, %v257_v21  }
  0xa7   :  { %858 = vst.msk [vmem:[%s2190_s1 + $0x16] sm:$0x1] %vm7_vm0, %v269_v22   ;;  %859 = vst.msk [vmem:[%s2190_s1 + $0x55] sm:$0x2] %vm7_vm0, %v269_v22  }
  0xa8   :  { %860 = vst.msk [vmem:[%s2190_s1 + $0x94] sm:$0x4] %vm7_vm0, %v269_v22   ;;  %861 = vst.msk [vmem:[%s2190_s1 + $0xd3] sm:$0x8] %vm7_vm0, %v269_v22   ;;  %v281_v23 = vpop.permute.xlu0 %280  }
  0xa9   :  { %v293_v24 = vpop.permute.xlu1 %292   ;;  %862 = vst.msk [vmem:[%s2190_s1 + $0x17] sm:$0x1] %vm7_vm0, %v281_v23   ;;  %863 = vst.msk [vmem:[%s2190_s1 + $0x56] sm:$0x2] %vm7_vm0, %v281_v23  }
  0xaa   :  { %864 = vst.msk [vmem:[%s2190_s1 + $0x95] sm:$0x4] %vm7_vm0, %v281_v23   ;;  %865 = vst.msk [vmem:[%s2190_s1 + $0xd4] sm:$0x8] %vm7_vm0, %v281_v23  }
  0xab   :  { %866 = vst.msk [vmem:[%s2190_s1 + $0x18] sm:$0x1] %vm7_vm0, %v293_v24   ;;  %867 = vst.msk [vmem:[%s2190_s1 + $0x57] sm:$0x2] %vm7_vm0, %v293_v24  }
  0xac   :  { %868 = vst.msk [vmem:[%s2190_s1 + $0x96] sm:$0x4] %vm7_vm0, %v293_v24   ;;  %869 = vst.msk [vmem:[%s2190_s1 + $0xd5] sm:$0x8] %vm7_vm0, %v293_v24   ;;  %v305_v25 = vpop.permute.xlu0 %304  }
  0xad   :  { %v317_v26 = vpop.permute.xlu1 %316   ;;  %870 = vst.msk [vmem:[%s2190_s1 + $0x19] sm:$0x1] %vm7_vm0, %v305_v25   ;;  %871 = vst.msk [vmem:[%s2190_s1 + $0x58] sm:$0x2] %vm7_vm0, %v305_v25  }
  0xae   :  { %872 = vst.msk [vmem:[%s2190_s1 + $0x97] sm:$0x4] %vm7_vm0, %v305_v25   ;;  %873 = vst.msk [vmem:[%s2190_s1 + $0xd6] sm:$0x8] %vm7_vm0, %v305_v25  }
  0xaf   :  { %874 = vst.msk [vmem:[%s2190_s1 + $0x1a] sm:$0x1] %vm7_vm0, %v317_v26   ;;  %875 = vst.msk [vmem:[%s2190_s1 + $0x59] sm:$0x2] %vm7_vm0, %v317_v26  }
  0xb0   :  { %876 = vst.msk [vmem:[%s2190_s1 + $0x98] sm:$0x4] %vm7_vm0, %v317_v26   ;;  %877 = vst.msk [vmem:[%s2190_s1 + $0xd7] sm:$0x8] %vm7_vm0, %v317_v26   ;;  %v329_v27 = vpop.permute.xlu0 %328  }
  0xb1   :  { %v341_v28 = vpop.permute.xlu1 %340   ;;  %878 = vst.msk [vmem:[%s2190_s1 + $0x1b] sm:$0x1] %vm7_vm0, %v329_v27   ;;  %879 = vst.msk [vmem:[%s2190_s1 + $0x5a] sm:$0x2] %vm7_vm0, %v329_v27  }
  0xb2   :  { %880 = vst.msk [vmem:[%s2190_s1 + $0x99] sm:$0x4] %vm7_vm0, %v329_v27   ;;  %881 = vst.msk [vmem:[%s2190_s1 + $0xd8] sm:$0x8] %vm7_vm0, %v329_v27  }
  0xb3   :  { %882 = vst.msk [vmem:[%s2190_s1 + $0x1c] sm:$0x1] %vm7_vm0, %v341_v28   ;;  %883 = vst.msk [vmem:[%s2190_s1 + $0x5b] sm:$0x2] %vm7_vm0, %v341_v28  }
  0xb4   :  { %884 = vst.msk [vmem:[%s2190_s1 + $0x9a] sm:$0x4] %vm7_vm0, %v341_v28   ;;  %885 = vst.msk [vmem:[%s2190_s1 + $0xd9] sm:$0x8] %vm7_vm0, %v341_v28   ;;  %v353_v29 = vpop.permute.xlu0 %352  }
  0xb5   :  { %v365_v30 = vpop.permute.xlu1 %364   ;;  %886 = vst.msk [vmem:[%s2190_s1 + $0x1d] sm:$0x1] %vm7_vm0, %v353_v29   ;;  %887 = vst.msk [vmem:[%s2190_s1 + $0x5c] sm:$0x2] %vm7_vm0, %v353_v29  }
  0xb6   :  { %888 = vst.msk [vmem:[%s2190_s1 + $0x9b] sm:$0x4] %vm7_vm0, %v353_v29   ;;  %889 = vst.msk [vmem:[%s2190_s1 + $0xda] sm:$0x8] %vm7_vm0, %v353_v29  }
  0xb7   :  { %890 = vst.msk [vmem:[%s2190_s1 + $0x1e] sm:$0x1] %vm7_vm0, %v365_v30   ;;  %891 = vst.msk [vmem:[%s2190_s1 + $0x5d] sm:$0x2] %vm7_vm0, %v365_v30  }
  0xb8   :  { %892 = vst.msk [vmem:[%s2190_s1 + $0x9c] sm:$0x4] %vm7_vm0, %v365_v30   ;;  %893 = vst.msk [vmem:[%s2190_s1 + $0xdb] sm:$0x8] %vm7_vm0, %v365_v30   ;;  %v377_v31 = vpop.permute.xlu0 %376  }
  0xb9   :  { %v389_v32 = vpop.permute.xlu1 %388   ;;  %894 = vst.msk [vmem:[%s2190_s1 + $0x1f] sm:$0x1] %vm7_vm0, %v377_v31   ;;  %895 = vst.msk [vmem:[%s2190_s1 + $0x5e] sm:$0x2] %vm7_vm0, %v377_v31  }
  0xba   :  { %896 = vst.msk [vmem:[%s2190_s1 + $0x9d] sm:$0x4] %vm7_vm0, %v377_v31   ;;  %897 = vst.msk [vmem:[%s2190_s1 + $0xdc] sm:$0x8] %vm7_vm0, %v377_v31  }
  0xbb   :  { %898 = vst.msk [vmem:[%s2190_s1 + $0x20] sm:$0x1] %vm7_vm0, %v389_v32   ;;  %899 = vst.msk [vmem:[%s2190_s1 + $0x5f] sm:$0x2] %vm7_vm0, %v389_v32  }
  0xbc   :  { %900 = vst.msk [vmem:[%s2190_s1 + $0x9e] sm:$0x4] %vm7_vm0, %v389_v32   ;;  %901 = vst.msk [vmem:[%s2190_s1 + $0xdd] sm:$0x8] %vm7_vm0, %v389_v32   ;;  %v401_v33 = vpop.permute.xlu0 %400  }
  0xbd   :  { %v413_v34 = vpop.permute.xlu1 %412   ;;  %902 = vst.msk [vmem:[%s2190_s1 + $0x21] sm:$0x1] %vm7_vm0, %v401_v33   ;;  %903 = vst.msk [vmem:[%s2190_s1 + $0x60] sm:$0x2] %vm7_vm0, %v401_v33  }
  0xbe   :  { %904 = vst.msk [vmem:[%s2190_s1 + $0x9f] sm:$0x4] %vm7_vm0, %v401_v33   ;;  %905 = vst.msk [vmem:[%s2190_s1 + $0xde] sm:$0x8] %vm7_vm0, %v401_v33  }
  0xbf   :  { %906 = vst.msk [vmem:[%s2190_s1 + $0x22] sm:$0x1] %vm7_vm0, %v413_v34   ;;  %907 = vst.msk [vmem:[%s2190_s1 + $0x61] sm:$0x2] %vm7_vm0, %v413_v34  }
  0xc0   :  { %908 = vst.msk [vmem:[%s2190_s1 + $0xa0] sm:$0x4] %vm7_vm0, %v413_v34   ;;  %909 = vst.msk [vmem:[%s2190_s1 + $0xdf] sm:$0x8] %vm7_vm0, %v413_v34   ;;  %v425_v35 = vpop.permute.xlu0 %424  }
  0xc1   :  { %v437_v36 = vpop.permute.xlu1 %436   ;;  %910 = vst.msk [vmem:[%s2190_s1 + $0x23] sm:$0x1] %vm7_vm0, %v425_v35   ;;  %911 = vst.msk [vmem:[%s2190_s1 + $0x62] sm:$0x2] %vm7_vm0, %v425_v35  }
  0xc2   :  { %912 = vst.msk [vmem:[%s2190_s1 + $0xa1] sm:$0x4] %vm7_vm0, %v425_v35   ;;  %913 = vst.msk [vmem:[%s2190_s1 + $0xe0] sm:$0x8] %vm7_vm0, %v425_v35  }
  0xc3   :  { %914 = vst.msk [vmem:[%s2190_s1 + $0x24] sm:$0x1] %vm7_vm0, %v437_v36   ;;  %915 = vst.msk [vmem:[%s2190_s1 + $0x63] sm:$0x2] %vm7_vm0, %v437_v36  }
  0xc4   :  { %916 = vst.msk [vmem:[%s2190_s1 + $0xa2] sm:$0x4] %vm7_vm0, %v437_v36   ;;  %917 = vst.msk [vmem:[%s2190_s1 + $0xe1] sm:$0x8] %vm7_vm0, %v437_v36   ;;  %v449_v37 = vpop.permute.xlu0 %448  }
  0xc5   :  { %v461_v38 = vpop.permute.xlu1 %460   ;;  %918 = vst.msk [vmem:[%s2190_s1 + $0x25] sm:$0x1] %vm7_vm0, %v449_v37   ;;  %919 = vst.msk [vmem:[%s2190_s1 + $0x64] sm:$0x2] %vm7_vm0, %v449_v37  }
  0xc6   :  { %920 = vst.msk [vmem:[%s2190_s1 + $0xa3] sm:$0x4] %vm7_vm0, %v449_v37   ;;  %921 = vst.msk [vmem:[%s2190_s1 + $0xe2] sm:$0x8] %vm7_vm0, %v449_v37  }
  0xc7   :  { %922 = vst.msk [vmem:[%s2190_s1 + $0x26] sm:$0x1] %vm7_vm0, %v461_v38   ;;  %923 = vst.msk [vmem:[%s2190_s1 + $0x65] sm:$0x2] %vm7_vm0, %v461_v38  }
  0xc8   :  { %924 = vst.msk [vmem:[%s2190_s1 + $0xa4] sm:$0x4] %vm7_vm0, %v461_v38   ;;  %925 = vst.msk [vmem:[%s2190_s1 + $0xe3] sm:$0x8] %vm7_vm0, %v461_v38   ;;  %v473_v39 = vpop.permute.xlu0 %472  }
  0xc9   :  { %v485_v40 = vpop.permute.xlu1 %484   ;;  %926 = vst.msk [vmem:[%s2190_s1 + $0x27] sm:$0x1] %vm7_vm0, %v473_v39   ;;  %927 = vst.msk [vmem:[%s2190_s1 + $0x66] sm:$0x2] %vm7_vm0, %v473_v39  }
  0xca   :  { %928 = vst.msk [vmem:[%s2190_s1 + $0xa5] sm:$0x4] %vm7_vm0, %v473_v39   ;;  %929 = vst.msk [vmem:[%s2190_s1 + $0xe4] sm:$0x8] %vm7_vm0, %v473_v39  }
  0xcb   :  { %930 = vst.msk [vmem:[%s2190_s1 + $0x28] sm:$0x1] %vm7_vm0, %v485_v40   ;;  %931 = vst.msk [vmem:[%s2190_s1 + $0x67] sm:$0x2] %vm7_vm0, %v485_v40  }
  0xcc   :  { %932 = vst.msk [vmem:[%s2190_s1 + $0xa6] sm:$0x4] %vm7_vm0, %v485_v40   ;;  %933 = vst.msk [vmem:[%s2190_s1 + $0xe5] sm:$0x8] %vm7_vm0, %v485_v40   ;;  %v497_v41 = vpop.permute.xlu0 %496  }
  0xcd   :  { %v509_v42 = vpop.permute.xlu1 %508   ;;  %934 = vst.msk [vmem:[%s2190_s1 + $0x29] sm:$0x1] %vm7_vm0, %v497_v41   ;;  %935 = vst.msk [vmem:[%s2190_s1 + $0x68] sm:$0x2] %vm7_vm0, %v497_v41  }
  0xce   :  { %936 = vst.msk [vmem:[%s2190_s1 + $0xa7] sm:$0x4] %vm7_vm0, %v497_v41   ;;  %937 = vst.msk [vmem:[%s2190_s1 + $0xe6] sm:$0x8] %vm7_vm0, %v497_v41  }
  0xcf   :  { %938 = vst.msk [vmem:[%s2190_s1 + $0x2a] sm:$0x1] %vm7_vm0, %v509_v42   ;;  %939 = vst.msk [vmem:[%s2190_s1 + $0x69] sm:$0x2] %vm7_vm0, %v509_v42  }
  0xd0   :  { %940 = vst.msk [vmem:[%s2190_s1 + $0xa8] sm:$0x4] %vm7_vm0, %v509_v42   ;;  %941 = vst.msk [vmem:[%s2190_s1 + $0xe7] sm:$0x8] %vm7_vm0, %v509_v42   ;;  %v521_v43 = vpop.permute.xlu0 %520  }
  0xd1   :  { %v533_v44 = vpop.permute.xlu1 %532   ;;  %942 = vst.msk [vmem:[%s2190_s1 + $0x2b] sm:$0x1] %vm7_vm0, %v521_v43   ;;  %943 = vst.msk [vmem:[%s2190_s1 + $0x6a] sm:$0x2] %vm7_vm0, %v521_v43  }
  0xd2   :  { %944 = vst.msk [vmem:[%s2190_s1 + $0xa9] sm:$0x4] %vm7_vm0, %v521_v43   ;;  %945 = vst.msk [vmem:[%s2190_s1 + $0xe8] sm:$0x8] %vm7_vm0, %v521_v43  }
  0xd3   :  { %946 = vst.msk [vmem:[%s2190_s1 + $0x2c] sm:$0x1] %vm7_vm0, %v533_v44   ;;  %947 = vst.msk [vmem:[%s2190_s1 + $0x6b] sm:$0x2] %vm7_vm0, %v533_v44  }
  0xd4   :  { %948 = vst.msk [vmem:[%s2190_s1 + $0xaa] sm:$0x4] %vm7_vm0, %v533_v44   ;;  %949 = vst.msk [vmem:[%s2190_s1 + $0xe9] sm:$0x8] %vm7_vm0, %v533_v44   ;;  %v545_v45 = vpop.permute.xlu0 %544  }
  0xd5   :  { %v557_v46 = vpop.permute.xlu1 %556   ;;  %950 = vst.msk [vmem:[%s2190_s1 + $0x2d] sm:$0x1] %vm7_vm0, %v545_v45   ;;  %951 = vst.msk [vmem:[%s2190_s1 + $0x6c] sm:$0x2] %vm7_vm0, %v545_v45  }
  0xd6   :  { %952 = vst.msk [vmem:[%s2190_s1 + $0xab] sm:$0x4] %vm7_vm0, %v545_v45   ;;  %953 = vst.msk [vmem:[%s2190_s1 + $0xea] sm:$0x8] %vm7_vm0, %v545_v45  }
  0xd7   :  { %954 = vst.msk [vmem:[%s2190_s1 + $0x2e] sm:$0x1] %vm7_vm0, %v557_v46   ;;  %955 = vst.msk [vmem:[%s2190_s1 + $0x6d] sm:$0x2] %vm7_vm0, %v557_v46  }
  0xd8   :  { %956 = vst.msk [vmem:[%s2190_s1 + $0xac] sm:$0x4] %vm7_vm0, %v557_v46   ;;  %957 = vst.msk [vmem:[%s2190_s1 + $0xeb] sm:$0x8] %vm7_vm0, %v557_v46   ;;  %v569_v47 = vpop.permute.xlu0 %568  }
  0xd9   :  { %v581_v48 = vpop.permute.xlu1 %580   ;;  %958 = vst.msk [vmem:[%s2190_s1 + $0x2f] sm:$0x1] %vm7_vm0, %v569_v47   ;;  %959 = vst.msk [vmem:[%s2190_s1 + $0x6e] sm:$0x2] %vm7_vm0, %v569_v47  }
  0xda   :  { %960 = vst.msk [vmem:[%s2190_s1 + $0xad] sm:$0x4] %vm7_vm0, %v569_v47   ;;  %961 = vst.msk [vmem:[%s2190_s1 + $0xec] sm:$0x8] %vm7_vm0, %v569_v47  }
  0xdb   :  { %962 = vst.msk [vmem:[%s2190_s1 + $0x30] sm:$0x1] %vm7_vm0, %v581_v48   ;;  %963 = vst.msk [vmem:[%s2190_s1 + $0x6f] sm:$0x2] %vm7_vm0, %v581_v48  }
  0xdc   :  { %964 = vst.msk [vmem:[%s2190_s1 + $0xae] sm:$0x4] %vm7_vm0, %v581_v48   ;;  %965 = vst.msk [vmem:[%s2190_s1 + $0xed] sm:$0x8] %vm7_vm0, %v581_v48   ;;  %v593_v49 = vpop.permute.xlu0 %592  }
  0xdd   :  { %v605_v50 = vpop.permute.xlu1 %604   ;;  %966 = vst.msk [vmem:[%s2190_s1 + $0x31] sm:$0x1] %vm7_vm0, %v593_v49   ;;  %967 = vst.msk [vmem:[%s2190_s1 + $0x70] sm:$0x2] %vm7_vm0, %v593_v49  }
  0xde   :  { %968 = vst.msk [vmem:[%s2190_s1 + $0xaf] sm:$0x4] %vm7_vm0, %v593_v49   ;;  %969 = vst.msk [vmem:[%s2190_s1 + $0xee] sm:$0x8] %vm7_vm0, %v593_v49  }
  0xdf   :  { %970 = vst.msk [vmem:[%s2190_s1 + $0x32] sm:$0x1] %vm7_vm0, %v605_v50   ;;  %971 = vst.msk [vmem:[%s2190_s1 + $0x71] sm:$0x2] %vm7_vm0, %v605_v50  }
  0xe0   :  { %972 = vst.msk [vmem:[%s2190_s1 + $0xb0] sm:$0x4] %vm7_vm0, %v605_v50   ;;  %973 = vst.msk [vmem:[%s2190_s1 + $0xef] sm:$0x8] %vm7_vm0, %v605_v50   ;;  %v617_v51 = vpop.permute.xlu0 %616  }
  0xe1   :  { %v629_v52 = vpop.permute.xlu1 %628   ;;  %974 = vst.msk [vmem:[%s2190_s1 + $0x33] sm:$0x1] %vm7_vm0, %v617_v51   ;;  %975 = vst.msk [vmem:[%s2190_s1 + $0x72] sm:$0x2] %vm7_vm0, %v617_v51  }
  0xe2   :  { %976 = vst.msk [vmem:[%s2190_s1 + $0xb1] sm:$0x4] %vm7_vm0, %v617_v51   ;;  %977 = vst.msk [vmem:[%s2190_s1 + $0xf0] sm:$0x8] %vm7_vm0, %v617_v51  }
  0xe3   :  { %978 = vst.msk [vmem:[%s2190_s1 + $0x34] sm:$0x1] %vm7_vm0, %v629_v52   ;;  %979 = vst.msk [vmem:[%s2190_s1 + $0x73] sm:$0x2] %vm7_vm0, %v629_v52  }
  0xe4   :  { %980 = vst.msk [vmem:[%s2190_s1 + $0xb2] sm:$0x4] %vm7_vm0, %v629_v52   ;;  %981 = vst.msk [vmem:[%s2190_s1 + $0xf1] sm:$0x8] %vm7_vm0, %v629_v52   ;;  %v641_v53 = vpop.permute.xlu0 %640  }
  0xe5   :  { %v653_v54 = vpop.permute.xlu1 %652   ;;  %982 = vst.msk [vmem:[%s2190_s1 + $0x35] sm:$0x1] %vm7_vm0, %v641_v53   ;;  %983 = vst.msk [vmem:[%s2190_s1 + $0x74] sm:$0x2] %vm7_vm0, %v641_v53  }
  0xe6   :  { %984 = vst.msk [vmem:[%s2190_s1 + $0xb3] sm:$0x4] %vm7_vm0, %v641_v53   ;;  %985 = vst.msk [vmem:[%s2190_s1 + $0xf2] sm:$0x8] %vm7_vm0, %v641_v53  }
  0xe7   :  { %986 = vst.msk [vmem:[%s2190_s1 + $0x36] sm:$0x1] %vm7_vm0, %v653_v54   ;;  %987 = vst.msk [vmem:[%s2190_s1 + $0x75] sm:$0x2] %vm7_vm0, %v653_v54  }
  0xe8   :  { %988 = vst.msk [vmem:[%s2190_s1 + $0xb4] sm:$0x4] %vm7_vm0, %v653_v54   ;;  %989 = vst.msk [vmem:[%s2190_s1 + $0xf3] sm:$0x8] %vm7_vm0, %v653_v54   ;;  %v665_v55 = vpop.permute.xlu0 %664  }
  0xe9   :  { %v677_v56 = vpop.permute.xlu1 %676   ;;  %990 = vst.msk [vmem:[%s2190_s1 + $0x37] sm:$0x1] %vm7_vm0, %v665_v55   ;;  %991 = vst.msk [vmem:[%s2190_s1 + $0x76] sm:$0x2] %vm7_vm0, %v665_v55  }
  0xea   :  { %992 = vst.msk [vmem:[%s2190_s1 + $0xb5] sm:$0x4] %vm7_vm0, %v665_v55   ;;  %993 = vst.msk [vmem:[%s2190_s1 + $0xf4] sm:$0x8] %vm7_vm0, %v665_v55  }
  0xeb   :  { %994 = vst.msk [vmem:[%s2190_s1 + $0x38] sm:$0x1] %vm7_vm0, %v677_v56   ;;  %995 = vst.msk [vmem:[%s2190_s1 + $0x77] sm:$0x2] %vm7_vm0, %v677_v56  }
  0xec   :  { %996 = vst.msk [vmem:[%s2190_s1 + $0xb6] sm:$0x4] %vm7_vm0, %v677_v56   ;;  %997 = vst.msk [vmem:[%s2190_s1 + $0xf5] sm:$0x8] %vm7_vm0, %v677_v56   ;;  %v689_v57 = vpop.permute.xlu0 %688  }
  0xed   :  { %v701_v58 = vpop.permute.xlu1 %700   ;;  %998 = vst.msk [vmem:[%s2190_s1 + $0x39] sm:$0x1] %vm7_vm0, %v689_v57   ;;  %999 = vst.msk [vmem:[%s2190_s1 + $0x78] sm:$0x2] %vm7_vm0, %v689_v57  }
  0xee   :  { %1000 = vst.msk [vmem:[%s2190_s1 + $0xb7] sm:$0x4] %vm7_vm0, %v689_v57   ;;  %1001 = vst.msk [vmem:[%s2190_s1 + $0xf6] sm:$0x8] %vm7_vm0, %v689_v57  }
  0xef   :  { %1002 = vst.msk [vmem:[%s2190_s1 + $0x3a] sm:$0x1] %vm7_vm0, %v701_v58   ;;  %1003 = vst.msk [vmem:[%s2190_s1 + $0x79] sm:$0x2] %vm7_vm0, %v701_v58  }
  0xf0   :  { %1004 = vst.msk [vmem:[%s2190_s1 + $0xb8] sm:$0x4] %vm7_vm0, %v701_v58   ;;  %1005 = vst.msk [vmem:[%s2190_s1 + $0xf7] sm:$0x8] %vm7_vm0, %v701_v58   ;;  %v713_v59 = vpop.permute.xlu0 %712  }
  0xf1   :  { %v725_v60 = vpop.permute.xlu1 %724   ;;  %1006 = vst.msk [vmem:[%s2190_s1 + $0x3b] sm:$0x1] %vm7_vm0, %v713_v59   ;;  %1007 = vst.msk [vmem:[%s2190_s1 + $0x7a] sm:$0x2] %vm7_vm0, %v713_v59  }
  0xf2   :  { %1008 = vst.msk [vmem:[%s2190_s1 + $0xb9] sm:$0x4] %vm7_vm0, %v713_v59   ;;  %1009 = vst.msk [vmem:[%s2190_s1 + $0xf8] sm:$0x8] %vm7_vm0, %v713_v59  }
  0xf3   :  { %1010 = vst.msk [vmem:[%s2190_s1 + $0x3c] sm:$0x1] %vm7_vm0, %v725_v60   ;;  %1011 = vst.msk [vmem:[%s2190_s1 + $0x7b] sm:$0x2] %vm7_vm0, %v725_v60  }
  0xf4   :  { %1012 = vst.msk [vmem:[%s2190_s1 + $0xba] sm:$0x4] %vm7_vm0, %v725_v60   ;;  %1013 = vst.msk [vmem:[%s2190_s1 + $0xf9] sm:$0x8] %vm7_vm0, %v725_v60   ;;  %v737_v61 = vpop.permute.xlu0 %736  }
  0xf5   :  { %v749_v62 = vpop.permute.xlu1 %748   ;;  %1014 = vst.msk [vmem:[%s2190_s1 + $0x3d] sm:$0x1] %vm7_vm0, %v737_v61   ;;  %1015 = vst.msk [vmem:[%s2190_s1 + $0x7c] sm:$0x2] %vm7_vm0, %v737_v61  }
  0xf6   :  { %1016 = vst.msk [vmem:[%s2190_s1 + $0xbb] sm:$0x4] %vm7_vm0, %v737_v61   ;;  %1017 = vst.msk [vmem:[%s2190_s1 + $0xfa] sm:$0x8] %vm7_vm0, %v737_v61  }
  0xf7   :  { %1018 = vst.msk [vmem:[%s2190_s1 + $0x3e] sm:$0x1] %vm7_vm0, %v749_v62   ;;  %1019 = vst.msk [vmem:[%s2190_s1 + $0x7d] sm:$0x2] %vm7_vm0, %v749_v62  }
  0xf8   :  { %1020 = vst.msk [vmem:[%s2190_s1 + $0xbc] sm:$0x4] %vm7_vm0, %v749_v62   ;;  %1021 = vst.msk [vmem:[%s2190_s1 + $0xfb] sm:$0x8] %vm7_vm0, %v749_v62   ;;  %v761_v63 = vpop.permute.xlu0 %760  }
  0xf9   :  { %1022 = vst.msk [vmem:[%s2190_s1 + $0x3f] sm:$0x1] %vm7_vm0, %v761_v63   ;;  %1023 = vst.msk [vmem:[%s2190_s1 + $0x7e] sm:$0x2] %vm7_vm0, %v761_v63  }
  0xfa   :  { %1024 = vst.msk [vmem:[%s2190_s1 + $0xbd] sm:$0x4] %vm7_vm0, %v761_v63   ;;  %1025 = vst.msk [vmem:[%s2190_s1 + $0xfc] sm:$0x8] %vm7_vm0, %v761_v63  }

// kernel: kge_forward.1
= control target key start
LH: loop header
LB: loop body
LE: loop exit
PB: predicated region body
PF: predicated region fallthrough
CT: control target
= control target key end

     0   :  { %s10988_s27 = smov 0   ;;  %s14590_s0 = inlined_call_operand.vmem [shape: s32[512,1], index: 0, kind: input, shape index: {}]   ;;  %s14591_s1 = inlined_call_operand.vmem [shape: s32[256,1], index: 1, kind: input, shape index: {}]   ;;  %s14592_s2 = inlined_call_operand.vmem [shape: f32[128,32], index: 2, kind: input, shape index: {}]   ;;  %s14593_s3 = inlined_call_operand.vmem [shape: f32[8,32], index: 3, kind: input, shape index: {}]   ;;  %s14594_s4 = inlined_call_operand.vmem [shape: f32[32,128], index: 4, kind: input, shape index: {}]   ;;  %s14595_s5 = inlined_call_operand.vmem [shape: f32[32,128], index: 5, kind: input, shape index: {}]   ;;  %s14596_s6 = inlined_call_operand.vmem [shape: f32[128,128], index: 6, kind: input, shape index: {}]   ;;  %s14597_s7 = inlined_call_operand.vmem [shape: f32[128,128], index: 7, kind: input, shape index: {}]   ;;  %s14598_s8 = inlined_call_operand.vmem [shape: f32[4,8,128], index: 8, kind: output, shape index: {}]  }
   0x1 LB: > { %s10994_s28 = sadd.s32 4294967295, %s10938_s27   ;;  %p7615_p0 = scmp.ge.s32.totalorder %s10938_s27, 1  ;;  %s10938_s27 = sphi %s10988_s27, %s18_s27  }
   0x2   : > { %p274_p1 = scmp.lt.s32.totalorder %s10938_s27, 5 }
   0x4   : > { %p275_p2 = pnand %p7615_p0, %p274_p1 }
   0x6   : > { %278 = sbr.rel (%p275_p2) target bundleno = 1872 (0x750), region = 52 }
   0xd   : > { %s7618_s29 = sshll.u32 %s10994_s28, 3  ;;  %s7616_s30 = sshll.u32 %s10994_s28, 4  ;;  %v11003_v0 = vld [vmem:[%s14592_s2] sm:$0xff]  ;;  %v11008_v1 = vld [vmem:[%s14592_s2 + $0x8] sm:$0xff]  ;;  %v11013_v2 = vld [vmem:[%s14592_s2 + $0x10] sm:$0xff]  ;;  %v10940_v3 = vmov 0  }
   0xe   : > { %10829 = vset.pattern.permute.xlu1 %v10940_v3  ;;  %10828 = vset.pattern.permute.xlu0 %v10940_v3  ;;  %p319_p3 = scmp.lt.s32.totalorder %s7618_s29, 31  ;;  %p313_p4 = scmp.lt.s32.totalorder %s7616_s30, 63  ;;  %v459_v4 = vand.u32 4294901760, %v11003_v0  ;;  %v462_v5 = vand.u32 4294901760, %v11008_v1  ;;  %v11020_v6 = vld [vmem:[%s14592_s2 + $0x18] sm:$0xff]  ;;  %v465_v7 = vand.u32 4294901760, %v11013_v2 }
   0xf   : > { %v468_v8 = vand.u32 4294901760, %v11020_v6  ;;  %v11027_v9 = vld [vmem:[%s14592_s2 + $0x20] sm:$0xff]  ;;  %v11032_v10 = vld [vmem:[%s14592_s2 + $0x28] sm:$0xff]  ;;  %v11051_v15 = vld [vmem:[%s14592_s2 + $0x30] sm:$0xff]  ;;  %vm1801_vm0 = vcmask 64512   ;;  %p324_p5 = scmp.lt.s32.totalorder %s10994_s28, 3 }
  0x10   : > { %s15174_s29 = smov (!%p319_p3, %s7618_s29), 31  ;;  %v11038_v11 = vpack.c.bf16 %v462_v5, %v459_v4  ;;  %v471_v12 = vand.u32 4294901760, %v11027_v9  ;;  %v474_v13 = vand.u32 4294901760, %v11032_v10  ;;  %s15176_s30 = smov (!%p313_p4, %s7616_s30), 63  ;;  %v11056_v16 = vld [vmem:[%s14592_s2 + $0x38] sm:$0xff]  ;;  %v477_v20 = vand.u32 4294901760, %v11051_v15 }
  0x11   : > { %v11046_v14 = vpack.c.bf16 %v468_v8, %v465_v7  ;;  %s7619_s25 = sshll.u32 %s15174_s29, 3  ;;  %s7617_s11 = sshll.u32 %s15176_s30, 3  ;;  %v480_v21 = vand.u32 4294901760, %v11056_v16  ;;  %v11084_v22 = vld [vmem:[%s14592_s2 + $0x40] sm:$0xff]  ;;  %v11089_v23 = vld [vmem:[%s14592_s2 + $0x48] sm:$0xff]  ;;  %v11106_v29 = vld [vmem:[%s14592_s2 + $0x50] sm:$0xff]  ;;  %v11182_v54 = vsub.f32 %v11003_v0, %v459_v4  ;;  %v11187_v55 = vsub.f32 %v11008_v1, %v462_v5 }
  0x12   : > { %9778 = vmatprep.subr.bf16.mxu0 %v11038_v11  ;;  %s11062_s10 = scalar_lea.vmem %s14591_s1, %s7619_s25  ;;  %s11070_s14 = scalar_lea.vmem %s14590_s0, %s7617_s11  ;;  %v11077_v19 = vpack.c.bf16 %v474_v13, %v471_v12  ;;  %v483_v27 = vand.u32 4294901760, %v11084_v22  ;;  %v486_v28 = vand.u32 4294901760, %v11089_v23  ;;  %v11111_v30 = vld [vmem:[%s14592_s2 + $0x58] sm:$0xff]  ;;  %v489_v34 = vand.u32 4294901760, %v11106_v29  ;;  %v1800_v36 = vld [vmem:[%s14593_s3] sm:$0xff]  ;;  %v11136_v38 = vld [vmem:[%s14592_s2 + $0x68] sm:$0xff] }
  0x13   : > { %9780 = vmatpush3.bf16.msra.mxu0 %v11038_v11  ;;  %v1745_v17 = vld [vmem:[%s11062_s10 + $0x8] sm:$0xff]  ;;  %v1744_v18 = vld [vmem:[%s11062_s10] sm:$0xff]  ;;  %v11099_v26 = vpack.c.bf16 %v480_v21, %v477_v20  ;;  %v332_v31 = vld [vmem:[%s11070_s14 + $0x10] sm:$0xff]  ;;  %v492_v35 = vand.u32 4294901760, %v11111_v30  ;;  %v11138_v39 = vand.u32 4294901760, %v1800_v36  ;;  %v498_v44 = vand.u32 4294901760, %v11136_v38 }
  0x14   : > { %9782 = vmatprep.subr.bf16.mxu0 %v11046_v14  ;;  %14832 = vst [vmem:[#allocation2_spill] sm:$0xff] %v11077_v19  ;;  %1756 = vperm.xlu1 %10829, %v1745_v17   ;;  %v331_v24 = vld [vmem:[%s11070_s14 + $0x8] sm:$0xff]  ;;  %v330_v25 = vld [vmem:[%s11070_s14] sm:$0xff]  ;;  %v1746_v32 = vld [vmem:[%s11062_s10 + $0x10] sm:$0xff]  ;;  %v11121_v33 = vpack.c.bf16 %v486_v28, %v483_v27  ;;  %v14614_v57 = vand.u32 4294901760, %v11182_v54  ;;  %v14613_v58 = vand.u32 4294901760, %v11187_v55  ;;  %v11210_v63 = vsub.f32 %v11013_v2, %v465_v7 }
  0x15   : > { %1753 = vperm.xlu0 %10828, %v1744_v18   ;;  %14833 = vst [vmem:[#allocation3_spill] sm:$0xff] %v11099_v26  ;;  %v11131_v37 = vld [vmem:[%s14592_s2 + $0x60] sm:$0xff]  ;;  %v333_v40 = vld [vmem:[%s11070_s14 + $0x18] sm:$0xff]  ;;  %8805 = vmatprep.subr.mxu1 %v11138_v39  ;;  %v11149_v42 = vpack.c.bf16 %v492_v35, %v489_v34  ;;  %v11157_v45 = vld [vmem:[%s14592_s2 + $0x70] sm:$0xff]  ;;  %v11215_v0 = vsub.f32 %v11020_v6, %v468_v8  ;;  %s15178_s28 = smov (!%p324_p5, %s10994_s28), 3 }
  0x16   : > { %14834 = vst [vmem:[#allocation4_spill] sm:$0xff] %v11121_v33  ;;  %v1747_v41 = vld [vmem:[%s11062_s10 + $0x18] sm:$0xff]  ;;  %v495_v43 = vand.u32 4294901760, %v11131_v37  ;;  %8806 = vmatpush3.msra.mxu1 %v11138_v39  ;;  %v334_v47 = vld [vmem:[%s11070_s14 + $0x20] sm:$0xff]  ;;  %v501_v50 = vand.u32 4294901760, %v11157_v45  ;;  %v335_v52 = vld [vmem:[%s11070_s14 + $0x28] sm:$0xff]  ;;  %v703_v61 = vsub.f32 %v11182_v54, %v14614_v57  ;;  %v710_v62 = vsub.f32 %v11187_v55, %v14613_v58 }
  0x17   : > { %9784 = vmatpush3.bf16.msra.mxu0 %v11046_v14  ;;  %14835 = vst [vmem:[#allocation5_spill] sm:$0xff] %v11149_v42  ;;  %v11162_v46 = vld [vmem:[%s14592_s2 + $0x78] sm:$0xff]  ;;  %v1748_v48 = vld [vmem:[%s11062_s10 + $0x20] sm:$0xff]  ;;  %v1749_v53 = vld [vmem:[%s11062_s10 + $0x28] sm:$0xff]  ;;  %v14612_v4 = vand.u32 4294901760, %v11210_v63  ;;  %v14611_v5 = vand.u32 4294901760, %v11215_v0  ;;  %v11234_v18 = vsub.f32 %v11027_v9, %v471_v12 }
  0x18   : > { %9786 = vmatprep.subr.bf16.mxu0 %v11077_v19  ;;  %350 = vperm.xlu1 %10829, %v331_v24   ;;  %v11172_v49 = vpack.c.bf16 %v498_v44, %v495_v43  ;;  %v504_v51 = vand.u32 4294901760, %v11162_v46  ;;  %14837 = vst [vmem:[#allocation7_spill] sm:$0xff] %v11182_v54  ;;  %14838 = vst [vmem:[#allocation8_spill] sm:$0xff] %v11187_v55  ;;  %v336_v59 = vld [vmem:[%s11070_s14 + $0x30] sm:$0xff]  ;;  %v704_v1 = vand.u32 4294901760, %v703_v61  ;;  %v711_v3 = vand.u32 4294901760, %v710_v62 }
  0x19   : > { %347 = vperm.xlu0 %10828, %v330_v25   ;;  %v1750_v60 = vld [vmem:[%s11062_s10 + $0x30] sm:$0xff]  ;;  %14840 = vst [vmem:[#allocation10_spill] sm:$0xff] %v11210_v63  ;;  %14841 = vst [vmem:[#allocation11_spill] sm:$0xff] %v11215_v0  ;;  %v337_v17 = vld [vmem:[%s11070_s14 + $0x38] sm:$0xff]  ;;  %v717_v6 = vsub.f32 %v11210_v63, %v14612_v4  ;;  %v724_v8 = vsub.f32 %v11215_v0, %v14611_v5  ;;  %v11237_v24 = vsub.f32 %v1800_v36, %v11138_v39 }
  0x1a   : > { %14836 = vst [vmem:[#allocation6_spill] sm:$0xff] %v11172_v49  ;;  %v11194_v56 = vpack.c.bf16 %v504_v51, %v501_v50  ;;  %v1751_v2 = vld [vmem:[%s11062_s10 + $0x38] sm:$0xff]  ;;  %v11223_v7 = vpack.c.bf16 %v711_v3, %v704_v1  ;;  %14842 = vst [vmem:[#allocation12_spill] sm:$0xff] %v11234_v18  ;;  %v11242_v25 = vsub.f32 %v11032_v10, %v474_v13  ;;  %v340_v61 = vld [vmem:[%s11070_s14 + $0x50] sm:$0xff]  ;;  %s7620_s10 = sshll.u32 %s15178_s28, 3 }
  0x1b   : > { %9788 = vmatpush3.bf16.msra.mxu0 %v11077_v19  ;;  %v11249_v9 = vand.u32 4294901760, %v11237_v24  ;;  %v11260_v13 = vsub.f32 %v11051_v15, %v477_v20  ;;  %v341_v20 = vld [vmem:[%s11070_s14 + $0x58] sm:$0xff]  ;;  %v11287_v3 = vsub.f32 %v11084_v22, %v483_v27  ;;  %v343_v27 = vld [vmem:[%s11070_s14 + $0x68] sm:$0xff]  ;;  %s327_s30 = scalar_lea.vmem %s14598_s8, %s7620_s10 }
  0x1c   : > { %9790 = vmatprep.subr.bf16.mxu0 %v11099_v26  ;;  %353 = vperm.xlu1 %10829, %v332_v31   ;;  %14839 = vst [vmem:[#allocation9_spill] sm:$0xff] %v11194_v56  ;;  %14843 = vst [vmem:[#allocation13_spill] sm:$0xff] %v11242_v25  ;;  %v718_v31 = vand.u32 4294901760, %v717_v6  ;;  %v14609_v12 = vand.u32 4294901760, %v11242_v25 }
  0x1d   : > { %1759 = vperm.xlu0 %10828, %v1746_v32   ;;  %v725_v32 = vand.u32 4294901760, %v724_v8  ;;  %14844 = vst [vmem:[#allocation14_spill] sm:$0xff] %v11260_v13  ;;  %14846 = vst [vmem:[#allocation16_spill] sm:$0xff] %v11287_v3 }
  0x1f   : > { %9792 = vmatpush3.bf16.msra.mxu0 %v11099_v26  ;;  %v11252_v36 = vpack.c.bf16 %v725_v32, %v718_v31  ;;  %v14606_v31 = vand.u32 4294901760, %v11287_v3  ;;  %v342_v32 = vld [vmem:[%s11070_s14 + $0x60] sm:$0xff] }
  0x20   : > { %9794 = vmatprep.subr.bf16.mxu0 %v11121_v33  ;;  %356 = vperm.xlu1 %10829, %v333_v40   ;;  %v14610_v40 = vand.u32 4294901760, %v11234_v18 }
  0x21   : > { %1762 = vperm.xlu0 %10828, %v1747_v41   ;;  %v339_v41 = vld [vmem:[%s11070_s14 + $0x48] sm:$0xff] }
  0x22   : > { %v731_v10 = vsub.f32 %v11234_v18, %v14610_v40 }
  0x23   : > { %9796 = vmatpush3.bf16.msra.mxu0 %v11121_v33 }
  0x24   : > { %9798 = vmatprep.subr.bf16.mxu0 %v11149_v42  ;;  %359 = vperm.xlu1 %10829, %v334_v47   ;;  %v338_v47 = vld [vmem:[%s11070_s14 + $0x40] sm:$0xff] }
  0x25   : > { %1765 = vperm.xlu0 %10828, %v1748_v48   ;;  %v11265_v48 = vsub.f32 %v11056_v16, %v480_v21 }
  0x27   : > { %9800 = vmatpush3.bf16.msra.mxu0 %v11149_v42  ;;  %14845 = vst [vmem:[#allocation15_spill] sm:$0xff] %v11265_v48  ;;  %v14607_v15 = vand.u32 4294901760, %v11265_v48 }
  0x28   : > { %9802 = vmatprep.subr.bf16.mxu0 %v11172_v49  ;;  %362 = vperm.xlu1 %10829, %v335_v52   ;;  %v1976_v52 = vsub.f32 %v11237_v24, %v11249_v9 }
  0x29   : > { %1768 = vperm.xlu0 %10828, %v1749_v53   ;;  %v738_v53 = vsub.f32 %v11242_v25, %v14609_v12  ;;  %v752_v1 = vsub.f32 %v11265_v48, %v14607_v15 }
  0x2a   : > { %v11276_v16 = vand.u32 4294901760, %v1976_v52 }
  0x2b   : > { %9804 = vmatpush3.bf16.msra.mxu0 %v11172_v49  ;;  %v739_v21 = vand.u32 4294901760, %v738_v53  ;;  %v753_v8 = vand.u32 4294901760, %v752_v1 }
  0x2c   : > { %9806 = vmatprep.subr.bf16.mxu0 %v11194_v56  ;;  %365 = vperm.xlu1 %10829, %v336_v59   ;;  %v732_v59 = vand.u32 4294901760, %v731_v10  ;;  %v11317_v10 = vsub.f32 %v11111_v30, %v492_v35  ;;  %v11331_v30 = vsub.f32 %v11131_v37, %v495_v43  ;;  %v11352_v43 = vsub.f32 %v11157_v45, %v501_v50 }
  0x2d   : > { %1771 = vperm.xlu0 %10828, %v1750_v60   ;;  %v14608_v60 = vand.u32 4294901760, %v11260_v13  ;;  %8819 = vmatprep.subr.mxu1 %v11276_v16 }
  0x2e   : > { %14849 = vst [vmem:[#allocation19_spill] sm:$0xff] %v11317_v10  ;;  %14850 = vst [vmem:[#allocation20_spill] sm:$0xff] %v11331_v30 }
  0x2f   : > { %9808 = vmatpush3.bf16.msra.mxu0 %v11194_v56  ;;  %v745_v62 = vsub.f32 %v11260_v13, %v14608_v60  ;;  %14852 = vst [vmem:[#allocation22_spill] sm:$0xff] %v11352_v43 }
  0x30   : > { %368 = vperm.xlu1 %10829, %v337_v17   ;;  %9810 = vmatprep.subr.bf16.mxu0 %v11223_v7  ;;  %v11292_v17 = vsub.f32 %v11089_v23, %v486_v28  ;;  %v759_v23 = vsub.f32 %v11287_v3, %v14606_v31 }
  0x31   : > { %1774 = vperm.xlu0 %10828, %v1751_v2   ;;  %v11295_v2 = vpack.c.bf16 %v739_v21, %v732_v59  ;;  %v746_v6 = vand.u32 4294901760, %v745_v62  ;;  %v14603_v21 = vand.u32 4294901760, %v11317_v10 }
  0x32   : > { %14847 = vst [vmem:[#allocation17_spill] sm:$0xff] %v11292_v17  ;;  %v14605_v22 = vand.u32 4294901760, %v11292_v17  ;;  %v760_v52 = vand.u32 4294901760, %v759_v23 }
  0x33   : > { %v780_v35 = vsub.f32 %v11317_v10, %v14603_v21 }
  0x34   : > { %374 = vperm.xlu1 %10829, %v339_v41   ;;  %v11301_v41 = vpack.c.bf16 %v753_v8, %v746_v6  ;;  %v766_v28 = vsub.f32 %v11292_v17, %v14605_v22  ;;  %v14602_v6 = vand.u32 4294901760, %v11331_v30 }
  0x35   : > { %371 = vperm.xlu0 %10828, %v338_v47   ;;  %v11312_v47 = vsub.f32 %v11106_v29, %v489_v34  ;;  %v11336_v34 = vsub.f32 %v11136_v38, %v498_v44  ;;  %v11357_v44 = vsub.f32 %v11162_v46, %v504_v51 }
  0x36   : > { %v767_v53 = vand.u32 4294901760, %v766_v28  ;;  %v787_v37 = vsub.f32 %v11331_v30, %v14602_v6 }
  0x37   : > { %14848 = vst [vmem:[#allocation18_spill] sm:$0xff] %v11312_v47  ;;  %v14604_v59 = vand.u32 4294901760, %v11312_v47  ;;  %14851 = vst [vmem:[#allocation21_spill] sm:$0xff] %v11336_v34  ;;  %v14601_v8 = vand.u32 4294901760, %v11336_v34 }
  0x38   : > { %380 = vperm.xlu1 %10829, %v341_v20   ;;  %v345_v20 = vld [vmem:[%s11070_s14 + $0x78] sm:$0xff]  ;;  %v11323_v62 = vpack.c.bf16 %v767_v53, %v760_v52  ;;  %14853 = vst [vmem:[#allocation23_spill] sm:$0xff] %v11357_v44  ;;  %v788_v23 = vand.u32 4294901760, %v787_v37  ;;  %v14600_v52 = vand.u32 4294901760, %v11352_v43  ;;  %v14599_v53 = vand.u32 4294901760, %v11357_v44 }
  0x39   : > { %377 = vperm.xlu0 %10828, %v340_v61   ;;  %v344_v61 = vld [vmem:[%s11070_s14 + $0x70] sm:$0xff]  ;;  %v773_v29 = vsub.f32 %v11312_v47, %v14604_v59  ;;  %v794_v38 = vsub.f32 %v11336_v34, %v14601_v8  ;;  %v11391_v37 = vpack.c.bf16 %v11292_v17, %v11287_v3 }
  0x3a   : > { %v801_v45 = vsub.f32 %v11352_v43, %v14600_v52  ;;  %v808_v50 = vsub.f32 %v11357_v44, %v14599_v53  ;;  %v14623_v53 = vmov 0.0  }
  0x3b   : > { %v774_v1 = vand.u32 4294901760, %v773_v29  ;;  %v795_v28 = vand.u32 4294901760, %v794_v38  ;;  %v11375_v29 = vpack.c.bf16 %v11187_v55, %v11182_v54  ;;  %v11395_v38 = vpack.c.bf16 %v11317_v10, %v11312_v47 }
  0x3c   : > { %386 = vperm.xlu1 %10829, %v343_v27   ;;  %v781_v27 = vand.u32 4294901760, %v780_v35  ;;  %v802_v46 = vand.u32 4294901760, %v801_v45  ;;  %v809_v51 = vand.u32 4294901760, %v808_v50  ;;  %v11379_v35 = vpack.c.bf16 %v11215_v0, %v11210_v63 }
  0x3d   : > { %383 = vperm.xlu0 %10828, %v342_v32   ;;  %v328_v45 = vlaneseq  ;;  %v14858_v10 = vmov 0.0  }
  0x3e   : > { %v11359_v32 = vpack.c.bf16 %v781_v27, %v774_v1  ;;  %v11383_v1 = vpack.c.bf16 %v11242_v25, %v11234_v18  ;;  %v11387_v27 = vpack.c.bf16 %v11265_v48, %v11260_v13 }
  0x3f   : > { %v11405_v50 = vand.u32 127, %v328_v45 }
  0x40   : > { %392 = vperm.xlu1 %10829, %v345_v20   ;;  %v11363_v20 = vpack.c.bf16 %v795_v28, %v788_v23  ;;  %v11399_v23 = vpack.c.bf16 %v11336_v34, %v11331_v30  ;;  %v11403_v28 = vpack.c.bf16 %v11357_v44, %v11352_v43 }
  0x41   : > { %389 = vperm.xlu0 %10828, %v344_v61   ;;  %v11371_v61 = vpack.c.bf16 %v809_v51, %v802_v46 }
  0x93   : > { %v1757_v46 = vpop.permute.xlu1 %1756 }
  0x94   : > { %v1754_v51 = vpop.permute.xlu0 %1753  ;;  %vm1777_vm1 = vcmp.eq.s32.totalorder %v1757_v46, %v11405_v50 }
  0x95   : > { %vm1776_vm2 = vcmp.eq.s32.totalorder %v1754_v51, %v11405_v50  ;;  %v11410_v52 = vsel %vm1777_vm1, 1.0, %v14623_v53 }
  0x96   : > { %v11413_v8 = vsel %vm1776_vm2, 1.0, %v14623_v53  ;;  %v1806_v6 = vsel %vm1801_vm0, %v11410_v52, 0 }
  0x97   : > { %v1803_v45 = vsel %vm1801_vm0, %v11413_v8, 0  ;;  %v11419_v21 = vsub.f32 %v1806_v6, %v1806_v6  ;;  %v11421_v59 = vpop.permute.xlu1 %350 }
  0x98   : > { %v11423_v46 = vpop.permute.xlu0 %347  ;;  %v11425_v51 = vsub.f32 %v1803_v45, %v1803_v45  ;;  %vm395_vm3 = vcmp.eq.s32.totalorder %v11421_v59, %v11405_v50  ;;  %v2788_v59 = vld [vmem:[%s14594_s4 + $0x18] sm:$0xff] }
  0x99   : > { %vm394_vm4 = vcmp.eq.s32.totalorder %v11423_v46, %v11405_v50  ;;  %v11435_v22 = vsel %vm395_vm3, 1.0, %v14623_v53  ;;  %v14618_v31 = vand.u32 4294901760, %v11419_v21  ;;  %v2823_v46 = vand.u32 4294901760, %v2788_v59 }
  0x9a   : > { %14854 = vst [vmem:[#allocation24_spill] sm:$0xff] %v11435_v22  ;;  %v11441_v6 = vsel %vm394_vm4, 1.0, %v14623_v53  ;;  %v14616_v45 = vand.u32 4294901760, %v11425_v51  ;;  %v11447_v15 = vsub.f32 %v11435_v22, %v11435_v22 }
  0x9b   : > { %14855 = vst [vmem:[#allocation25_spill] sm:$0xff] %v11441_v6  ;;  %v11451_v60 = vsub.f32 %v11441_v6, %v11441_v6  ;;  %v11453_v12 = vpop.permute.xlu1 %353  ;;  %v1905_v4 = vsub.f32 %v11419_v21, %v14618_v31 }
  0x9c   : > { %v1760_v40 = vpop.permute.xlu0 %1759  ;;  %v1895_v5 = vsub.f32 %v11425_v51, %v14616_v45  ;;  %vm396_vm5 = vcmp.eq.s32.totalorder %v11453_v12, %v11405_v50  ;;  %v14857_v43 = vand.u32 4294901760, %v11447_v15  ;;  %v2787_v12 = vld [vmem:[%s14594_s4 + $0x10] sm:$0xff] }
  0x9d   : > { %vm1778_vm6 = vcmp.eq.s32.totalorder %v1760_v40, %v11405_v50  ;;  %v14627_v58 = vand.u32 4294901760, %v11451_v60  ;;  %v11470_v6 = vsel %vm396_vm5, 1.0, %v14623_v53  ;;  %v1906_v31 = vand.u32 4294901760, %v1905_v4 }
  0x9e   : > { %14856 = vst [vmem:[#allocation26_spill] sm:$0xff] %v11470_v6  ;;  %v11473_v45 = vsel %vm1778_vm6, 1.0, %v14623_v53  ;;  %v1896_v22 = vand.u32 4294901760, %v1895_v5  ;;  %v11477_v44 = vsub.f32 %v11470_v6, %v11470_v6  ;;  %v552_v34 = vsub.f32 %v11447_v15, %v14857_v43 }
  0x9f   : > { %v1809_v40 = vsel %vm1801_vm0, %v11473_v45, 0  ;;  %v542_v57 = vsub.f32 %v11451_v60, %v14627_v58  ;;  %v11489_v5 = vpop.permute.xlu1 %356 }
  0xa0   : > { %v11487_v30 = vsub.f32 %v1809_v40, %v1809_v40  ;;  %8807 = vmatprep.mubr.f32.mxu1 %v1896_v22  ;;  %v1763_v4 = vpop.permute.xlu0 %1762  ;;  %vm397_vm7 = vcmp.eq.s32.totalorder %v11489_v5, %v11405_v50  ;;  %v553_v6 = vand.u32 4294901760, %v552_v34  ;;  %v14860_v40 = vand.u32 4294901760, %v11477_v44 }
  0xa1   : > { %vm1779_vm8 = vcmp.eq.s32.totalorder %v1763_v4, %v11405_v50  ;;  %8808 = vmatmul.mubr.f32.vlgmr.msra.gmra.mrb[0].mxu1 %v1906_v31  ;;  %v543_v53 = vand.u32 4294901760, %v542_v57  ;;  %v11498_v58 = vsel %vm397_vm7, 1.0, %v14858_v10 }
  0xa2   : > { %14859 = vst [vmem:[#allocation27_spill] sm:$0xff] %v11498_v58  ;;  %v11501_v43 = vsel %vm1779_vm8, 1.0, %v14858_v10  ;;  %8820 = vmatpush3.msra.mxu1 %v11276_v16  ;;  %v11508_v31 = vsub.f32 %v11498_v58, %v11498_v58  ;;  %v562_v16 = vsub.f32 %v11477_v44, %v14860_v40  ;;  %v14861_v47 = vand.u32 4294901760, %v11487_v30 }
  0xa3   : > { %v1812_v57 = vsel %vm1801_vm0, %v11501_v43, 0  ;;  %8501 = vmatprep.mubr.f32.mxu0 %v543_v53  ;;  %8833 = vmatprep.subr.mxu1 %v11237_v24  ;;  %v11515_v4 = vpop.permute.xlu1 %359 }
  0xa4   : > { %v11513_v34 = vsub.f32 %v1812_v57, %v1812_v57  ;;  %8502 = vmatmul.mubr.f32.vlgmr.msra.gmra.mrb[0].mxu0 %v553_v6  ;;  %v1766_v22 = vpop.permute.xlu0 %1765  ;;  %v1915_v58 = vsub.f32 %v11487_v30, %v14861_v47  ;;  %vm398_vm9 = vcmp.eq.s32.totalorder %v11515_v4, %v11405_v50  ;;  %v14635_v53 = vand.u32 4294901760, %v11508_v31 }
  0xa5   : > { %vm1780_vm10 = vcmp.eq.s32.totalorder %v1766_v22, %v11405_v50  ;;  %9812 = vmatpush3.bf16.msra.mxu0 %v11223_v7  ;;  %v11532_v6 = vsel %vm398_vm9, 1.0, %v14858_v10  ;;  %v563_v57 = vand.u32 4294901760, %v562_v16 }
  0xa6   : > { %14862 = vst [vmem:[#allocation28_spill] sm:$0xff] %v11532_v6  ;;  %v11535_v40 = vsel %vm1780_vm10, 1.0, %v14858_v10  ;;  %v1916_v47 = vand.u32 4294901760, %v1915_v58  ;;  %9814 = vmatprep.subr.bf16.mxu0 %v11252_v36  ;;  %v11540_v22 = vsub.f32 %v11532_v6, %v11532_v6  ;;  %v572_v17 = vsub.f32 %v11508_v31, %v14635_v53 }
  0xa7   : > { %v1815_v7 = vsel %vm1801_vm0, %v11535_v40, 0  ;;  %v14636_v3 = vand.u32 4294901760, %v11513_v34  ;;  %8504 = vmatprep.mubr.f32.mxu0 %v563_v57  ;;  %v11550_v16 = vpop.permute.xlu1 %362 }
  0xa8   : > { %14863 = vst [vmem:[#allocation29_spill] sm:$0xff] %v11540_v22  ;;  %v11548_v48 = vsub.f32 %v1815_v7, %v1815_v7  ;;  %8810 = vmatprep.mubr.f32.mxu1 %v1916_v47  ;;  %v1769_v58 = vpop.permute.xlu0 %1768  ;;  %vm399_vm11 = vcmp.eq.s32.totalorder %v11550_v16, %v11405_v50  ;;  %v573_v6 = vand.u32 4294901760, %v572_v17  ;;  %v14641_v7 = vand.u32 4294901760, %v11540_v22 }
  0xa9   : > { %vm1781_vm12 = vcmp.eq.s32.totalorder %v1769_v58, %v11405_v50  ;;  %v1925_v13 = vsub.f32 %v11513_v34, %v14636_v3  ;;  %9816 = vmatpush3.bf16.msra.mxu0 %v11252_v36  ;;  %v11563_v57 = vsel %vm399_vm11, 1.0, %v14858_v10 }
  0xaa   : > { %14864 = vst [vmem:[#allocation30_spill] sm:$0xff] %v11563_v57  ;;  %v11566_v47 = vsel %vm1781_vm12, 1.0, %v14858_v10  ;;  %9818 = vmatprep.subr.bf16.mxu0 %v11295_v2  ;;  %v11573_v17 = vsub.f32 %v11563_v57, %v11563_v57  ;;  %8505 = vmatmul.mubr.f32.gmra.mrb[2].mxu0 %v573_v6  ;;  %v582_v58 = vsub.f32 %v11540_v22, %v14641_v7  ;;  %v14866_v0 = vand.u32 4294901760, %v11548_v48 }
  0xab   : > { %v1818_v36 = vsel %vm1801_vm0, %v11566_v47, 0  ;;  %v1926_v53 = vand.u32 4294901760, %v1925_v13  ;;  %v11579_v25 = vpop.permute.xlu1 %365 }
  0xac   : > { %14865 = vst [vmem:[#allocation31_spill] sm:$0xff] %v11573_v17  ;;  %v11577_v3 = vsub.f32 %v1818_v36, %v1818_v36  ;;  %v1772_v18 = vpop.permute.xlu0 %1771  ;;  %v1935_v63 = vsub.f32 %v11548_v48, %v14866_v0  ;;  %vm400_vm13 = vcmp.eq.s32.totalorder %v11579_v25, %v11405_v50  ;;  %v14646_v13 = vand.u32 4294901760, %v11573_v17 }
  0xad   : > { %8811 = vmatmul.mubr.f32.gmra.mrb[2].mxu1 %v1926_v53  ;;  %vm1782_vm14 = vcmp.eq.s32.totalorder %v1772_v18, %v11405_v50  ;;  %9820 = vmatpush3.bf16.msra.mxu0 %v11295_v2  ;;  %v11596_v6 = vsel %vm400_vm13, 1.0, %v14858_v10  ;;  %v583_v0 = vand.u32 4294901760, %v582_v58 }
  0xae   : > { %14867 = vst [vmem:[#allocation32_spill] sm:$0xff] %v11596_v6  ;;  %v11599_v36 = vsel %vm1782_vm14, 1.0, %v14858_v10  ;;  %v1936_v7 = vand.u32 4294901760, %v1935_v63  ;;  %9822 = vmatprep.subr.bf16.mxu0 %v11301_v41  ;;  %v11604_v18 = vsub.f32 %v11596_v6, %v11596_v6  ;;  %v592_v53 = vsub.f32 %v11573_v17, %v14646_v13 }
  0xaf   : > { %v1821_v2 = vsel %vm1801_vm0, %v11599_v36, 0  ;;  %v14647_v57 = vand.u32 4294901760, %v11577_v3  ;;  %8507 = vmatprep.mubr.f32.mxu0 %v583_v0  ;;  %v11614_v58 = vpop.permute.xlu1 %368 }
  0xb0   : > { %14868 = vst [vmem:[#allocation33_spill] sm:$0xff] %v11604_v18  ;;  %v11612_v55 = vsub.f32 %v1821_v2, %v1821_v2  ;;  %8813 = vmatprep.mubr.f32.mxu1 %v1936_v7  ;;  %v1775_v63 = vpop.permute.xlu0 %1774  ;;  %vm401_vm15 = vcmp.eq.s32.totalorder %v11614_v58, %v11405_v50  ;;  %v593_v6 = vand.u32 4294901760, %v592_v53  ;;  %v14655_v2 = vand.u32 4294901760, %v11604_v18 }
  0xb1   : > { %vm1783_vm1 = vcmp.eq.s32.totalorder %v1775_v63, %v11405_v50  ;;  %v1945_v54 = vsub.f32 %v11577_v3, %v14647_v57  ;;  %9824 = vmatpush3.bf16.msra.mxu0 %v11301_v41  ;;  %v11627_v0 = vsel %vm401_vm15, 1.0, %v14858_v10 }
  0xb2   : > { %14869 = vst [vmem:[#allocation34_spill] sm:$0xff] %v11627_v0  ;;  %v11630_v7 = vsel %vm1783_vm1, 1.0, %v14858_v10  ;;  %9826 = vmatprep.subr.bf16.mxu0 %v11323_v62  ;;  %v11637_v53 = vsub.f32 %v11627_v0, %v11627_v0  ;;  %8508 = vmatmul.mubr.f32.gmra.mrb[4].mxu0 %v593_v6  ;;  %v602_v63 = vsub.f32 %v11604_v18, %v14655_v2  ;;  %v14871_v42 = vand.u32 4294901760, %v11612_v55 }
  0xb3   : > { %v1824_v41 = vsel %vm1801_vm0, %v11630_v7, 0  ;;  %v1946_v13 = vand.u32 4294901760, %v1945_v54  ;;  %v11643_v56 = vpop.permute.xlu1 %374 }
  0xb4   : > { %14870 = vst [vmem:[#allocation35_spill] sm:$0xff] %v11637_v53  ;;  %v11641_v57 = vsub.f32 %v1824_v41, %v1824_v41  ;;  %v11645_v49 = vpop.permute.xlu0 %371  ;;  %v1955_v0 = vsub.f32 %v11612_v55, %v14871_v42  ;;  %vm403_vm2 = vcmp.eq.s32.totalorder %v11643_v56, %v11405_v50  ;;  %v14663_v54 = vand.u32 4294901760, %v11637_v53 }
  0xb5   : > { %8814 = vmatmul.mubr.f32.gmra.mrb[4].mxu1 %v1946_v13  ;;  %vm402_vm6 = vcmp.eq.s32.totalorder %v11645_v49, %v11405_v50  ;;  %9828 = vmatpush3.bf16.msra.mxu0 %v11323_v62  ;;  %v11663_v6 = vsel %vm403_vm2, 1.0, %v14858_v10  ;;  %v603_v13 = vand.u32 4294901760, %v602_v63 }
  0xb6   : > { %14872 = vst [vmem:[#allocation36_spill] sm:$0xff] %v11663_v6  ;;  %v11669_v42 = vsel %vm402_vm6, 1.0, %v14858_v10  ;;  %v1956_v41 = vand.u32 4294901760, %v1955_v0  ;;  %9830 = vmatprep.subr.bf16.mxu0 %v11359_v32  ;;  %v11674_v2 = vsub.f32 %v11663_v6, %v11663_v6  ;;  %v612_v33 = vsub.f32 %v11637_v53, %v14663_v54 }
  0xb7   : > { %14873 = vst [vmem:[#allocation37_spill] sm:$0xff] %v11669_v42  ;;  %v11678_v62 = vsub.f32 %v11669_v42, %v11669_v42  ;;  %v14664_v26 = vand.u32 4294901760, %v11641_v57  ;;  %8510 = vmatprep.mubr.f32.mxu0 %v603_v13  ;;  %v11684_v18 = vpop.permute.xlu1 %380 }
  0xb8   : > { %14874 = vst [vmem:[#allocation38_spill] sm:$0xff] %v11674_v2  ;;  %8816 = vmatprep.mubr.f32.mxu1 %v1956_v41  ;;  %v11686_v0 = vpop.permute.xlu0 %377  ;;  %vm405_vm8 = vcmp.eq.s32.totalorder %v11684_v18, %v11405_v50  ;;  %v613_v63 = vand.u32 4294901760, %v612_v33  ;;  %v14878_v19 = vand.u32 4294901760, %v11674_v2 }
  0xb9   : > { %14875 = vst [vmem:[#allocation39_spill] sm:$0xff] %v11678_v62  ;;  %vm14690_vm10 = vcmp.eq.s32.totalorder %v11686_v0, %v11405_v50  ;;  %v1965_v6 = vsub.f32 %v11641_v57, %v14664_v26  ;;  %9832 = vmatpush3.bf16.msra.mxu0 %v11359_v32  ;;  %v11700_v13 = vsel %vm405_vm8, 1.0, %v14858_v10  ;;  %v14674_v33 = vand.u32 4294901760, %v11678_v62 }
  0xba   : > { %14876 = vst [vmem:[#allocation40_spill] sm:$0xff] %v11700_v13  ;;  %v11706_v41 = vsel %vm14690_vm10, 1.0, %v14858_v10  ;;  %9834 = vmatprep.subr.bf16.mxu0 %v11363_v20  ;;  %v11713_v32 = vsub.f32 %v11700_v13, %v11700_v13  ;;  %8511 = vmatmul.mubr.f32.gmra.mrb[6].mxu0 %v613_v63  ;;  %v632_v22 = vsub.f32 %v11674_v2, %v14878_v19 }
  0xbb   : > { %14877 = vst [vmem:[#allocation41_spill] sm:$0xff] %v11706_v41  ;;  %v11717_v26 = vsub.f32 %v11706_v41, %v11706_v41  ;;  %v1966_v42 = vand.u32 4294901760, %v1965_v6  ;;  %v11719_v53 = vpop.permute.xlu1 %386  ;;  %v622_v54 = vsub.f32 %v11678_v62, %v14674_v33 }
  0xbc   : > { %v11721_v17 = vpop.permute.xlu0 %383  ;;  %vm14681_vm12 = vcmp.eq.s32.totalorder %v11719_v53, %v11405_v50  ;;  %v633_v6 = vand.u32 4294901760, %v632_v22  ;;  %v14883_v2 = vand.u32 4294901760, %v11713_v32 }
  0xbd   : > { %8817 = vmatmul.mubr.f32.gmra.mrb[6].mxu1 %v1966_v42  ;;  %vm406_vm14 = vcmp.eq.s32.totalorder %v11721_v17, %v11405_v50  ;;  %9836 = vmatpush3.bf16.msra.mxu0 %v11363_v20  ;;  %v11740_v33 = vsel %vm14681_vm12, 1.0, %v14858_v10  ;;  %v623_v42 = vand.u32 4294901760, %v622_v54  ;;  %v14882_v13 = vand.u32 4294901760, %v11717_v26 }
  0xbe   : > { %14879 = vst [vmem:[#allocation42_spill] sm:$0xff] %v11740_v33  ;;  %v11746_v19 = vsel %vm406_vm14, 1.0, %v14858_v10  ;;  %8821 = vmatprep.mubr.msk.f32.mxu1 %vm1801_vm0, %v11413_v8  ;;  %9838 = vmatprep.subr.bf16.mxu0 %v11371_v61  ;;  %v11753_v20 = vsub.f32 %v11740_v33, %v11740_v33  ;;  %v652_v62 = vsub.f32 %v11713_v32, %v14883_v2 }
  0xbf   : > { %14880 = vst [vmem:[#allocation43_spill] sm:$0xff] %v11746_v19  ;;  %v11757_v63 = vsub.f32 %v11746_v19, %v11746_v19  ;;  %v642_v41 = vsub.f32 %v11717_v26, %v14882_v13  ;;  %8513 = vmatprep.mubr.f32.mxu0 %v623_v42  ;;  %v11765_v22 = vpop.permute.xlu1 %392 }
  0xc0   : > { %14881 = vst [vmem:[#allocation44_spill] sm:$0xff] %v11753_v20  ;;  %v11767_v54 = vpop.permute.xlu0 %389  ;;  %vm409_vm1 = vcmp.eq.s32.totalorder %v11765_v22, %v11405_v50  ;;  %8514 = vmatmul.mubr.f32.gmra.mrb[8].mxu0 %v633_v6  ;;  %v653_v33 = vand.u32 4294901760, %v652_v62  ;;  %v14686_v62 = vand.u32 4294901760, %v11753_v20 }
  0xc1   : > { %8822 = vmatmul.mubr.msk.f32.vlgmr.msra.gmra.mrb[0].mxu1 %vm1801_vm0, %v11410_v52  ;;  %vm408_vm12 = vcmp.eq.s32.totalorder %v11767_v54, %v11405_v50  ;;  %v643_v13 = vand.u32 4294901760, %v642_v41  ;;  %v11779_v2 = vsel %vm409_vm1, 1.0, %v14858_v10  ;;  %v14684_v41 = vand.u32 4294901760, %v11757_v63  ;;  %9840 = vmatpush3.bf16.msra.mxu0 %v11371_v61 }
  0xc2   : > { %14884 = vst [vmem:[#allocation45_spill] sm:$0xff] %v11779_v2  ;;  %8834 = vmatpush3.msra.mxu1 %v11237_v24  ;;  %v11786_v6 = vsel %vm408_vm12, 1.0, %v14858_v10  ;;  %8824 = vmatprep.mubr.msk.f32.mxu1 %vm1801_vm0, %v11473_v45  ;;  %v11794_v42 = vsub.f32 %v11779_v2, %v11779_v2  ;;  %v672_v19 = vsub.f32 %v11753_v20, %v14686_v62 }
  0xc3   : > { %14885 = vst [vmem:[#allocation46_spill] sm:$0xff] %v11786_v6  ;;  %v11798_v24 = vsub.f32 %v11786_v6, %v11786_v6  ;;  %8516 = vmatprep.mubr.f32.mxu0 %v643_v13  ;;  %v662_v10 = vsub.f32 %v11757_v63, %v14684_v41  ;;  %9842 = vmatprep.subr.bf16.mxu0 %v11375_v29 }
  0xc4   : > { %8847 = vmatprep.subr.mxu1 %v11138_v39  ;;  %8517 = vmatmul.mubr.f32.gmra.mrb[10].mxu0 %v653_v33  ;;  %v691_v61 = vand.u32 4294901760, %v11794_v42  ;;  %v673_v2 = vand.u32 4294901760, %v672_v19  ;;  %v10942_v19 = vmov 1.0  }
  0xc5   : > { %8825 = vmatmul.mubr.msk.f32.gmra.mrb[2].mxu1 %vm1801_vm0, %v11501_v43  ;;  %v681_v13 = vand.u32 4294901760, %v11798_v24  ;;  %v663_v41 = vand.u32 4294901760, %v662_v10 }
  0xc6   : > { %8827 = vmatprep.mubr.msk.f32.mxu1 %vm1801_vm0, %v11535_v40  ;;  %v692_v33 = vsub.f32 %v11794_v42, %v691_v61 }
  0xc7   : > { %v682_v62 = vsub.f32 %v11798_v24, %v681_v13  ;;  %8519 = vmatprep.mubr.f32.mxu0 %v663_v41  ;;  %v14913_v41 = vld [vmem:[#allocation10_spill] sm:$0xff] }
  0xc8   : > { %8520 = vmatmul.mubr.f32.gmra.mrb[12].mxu0 %v673_v2  ;;  %v693_v20 = vand.u32 4294901760, %v692_v33  ;;  %v14910_v2 = vld [vmem:[#allocation8_spill] sm:$0xff] }
  0xc9   : > { %8828 = vmatmul.mubr.msk.f32.gmra.mrb[4].mxu1 %vm1801_vm0, %v11566_v47  ;;  %v683_v6 = vand.u32 4294901760, %v682_v62  ;;  %v14915_v62 = vld [vmem:[#allocation11_spill] sm:$0xff] }
  0xca   : > { %8830 = vmatprep.mubr.msk.f32.mxu1 %vm1801_vm0, %v11599_v36  ;;  %v14916_v10 = vand.u32 4294901760, %v14915_v62 }
  0xcb   : > { %8522 = vmatprep.mubr.f32.mxu0 %v683_v6 }
  0xcc   : > { %8523 = vmatmul.mubr.f32.gmra.mrb[14].mxu0 %v693_v20 }
  0xcd   : > { %8831 = vmatmul.mubr.msk.f32.gmra.mrb[6].mxu1 %vm1801_vm0, %v11630_v7  ;;  %8557 = vmatprep.mubr.msk.f32.mxu0 %vm394_vm4, %v10942_v19 }
  0xce   : > { %8835 = vmatprep.mubr.f32.mxu1 %v11425_v51 }
  0xd0   : > { %8558 = vmatmul.mubr.msk.f32.vlgmr.msra.gmra.mrb[0].mxu0 %vm395_vm3, %v10942_v19 }
  0xd1   : > { %8836 = vmatmul.mubr.f32.vlgmr.msra.gmra.mrb[0].mxu1 %v11419_v21  ;;  %9844 = vmatpush3.bf16.msra.mxu0 %v11375_v29  ;;  %v14886_v29 = vand.u32 4294901760, %v11425_v51  ;;  %v14902_v51 = vld [vmem:[#allocation4_spill] sm:$0xff] }
  0xd2   : > { %8848 = vmatpush3.msra.mxu1 %v11138_v39  ;;  %8560 = vmatprep.mubr.msk.f32.mxu0 %vm396_vm5, %v10942_v19 }
  0xd3   : > { %8838 = vmatprep.mubr.f32.mxu1 %v11487_v30  ;;  %9846 = vmatprep.subr.bf16.mxu0 %v11379_v35 }
  0xd4   : > { %8861 = vmatprep.subr.mxu1 %v11249_v9  ;;  %8561 = vmatmul.mubr.msk.f32.gmra.mrb[2].mxu0 %vm397_vm7, %v10942_v19 }
  0xd5   : > { %8839 = vmatmul.mubr.f32.gmra.mrb[2].mxu1 %v11513_v34  ;;  %9848 = vmatpush3.bf16.msra.mxu0 %v11379_v35  ;;  %v14887_v35 = vand.u32 4294901760, %v11419_v21  ;;  %v14889_v21 = vand.u32 4294901760, %v11513_v34  ;;  %v14903_v34 = vld [vmem:[#allocation38_spill] sm:$0xff] }
  0xd6   : > { %8563 = vmatprep.mubr.msk.f32.mxu0 %vm398_vm9, %v10942_v19  ;;  %8841 = vmatprep.mubr.f32.mxu1 %v11548_v48 }
  0xd7   : > { %9850 = vmatprep.subr.bf16.mxu0 %v11383_v1 }
  0xd8   : > { %8564 = vmatmul.mubr.msk.f32.gmra.mrb[4].mxu0 %vm399_vm11, %v10942_v19 }
  0xd9   : > { %8842 = vmatmul.mubr.f32.gmra.mrb[4].mxu1 %v11577_v3  ;;  %9852 = vmatpush3.bf16.msra.mxu0 %v11383_v1  ;;  %v14888_v1 = vand.u32 4294901760, %v11487_v30  ;;  %v14892_v30 = vand.u32 4294901760, %v11577_v3  ;;  %v14894_v3 = vand.u32 4294901760, %v11641_v57 }
  0xda   : > { %8566 = vmatprep.mubr.msk.f32.mxu0 %vm400_vm13, %v10942_v19  ;;  %8844 = vmatprep.mubr.f32.mxu1 %v11612_v55 }
  0xdb   : > { %9854 = vmatprep.subr.bf16.mxu0 %v11387_v27 }
  0xdc   : > { %8567 = vmatmul.mubr.msk.f32.gmra.mrb[6].mxu0 %vm401_vm15, %v10942_v19 }
  0xdd   : > { %8845 = vmatmul.mubr.f32.gmra.mrb[6].mxu1 %v11641_v57  ;;  %9856 = vmatpush3.bf16.msra.mxu0 %v11387_v27  ;;  %v14897_v27 = vld [vmem:[#allocation31_spill] sm:$0xff]  ;;  %v14904_v57 = vld [vmem:[#allocation5_spill] sm:$0xff] }
  0xde   : > { %8569 = vmatprep.mubr.msk.f32.mxu0 %vm402_vm6, %v10942_v19  ;;  %8849 = vmatprep.mubr.f32.mxu1 %v14886_v29  ;;  %v14917_v29 = vand.u32 4294901760, %v11447_v15 }
  0xdf   : > { %9858 = vmatprep.subr.bf16.mxu0 %v11391_v37 }
  0xe0   : > { %8570 = vmatmul.mubr.msk.f32.gmra.mrb[8].mxu0 %vm403_vm2, %v10942_v19 }
  0xe1   : > { %8850 = vmatmul.mubr.f32.vlgmr.msra.gmra.mrb[0].mxu1 %v14887_v35  ;;  %9860 = vmatpush3.bf16.msra.mxu0 %v11391_v37  ;;  %v14898_v37 = vld [vmem:[#allocation33_spill] sm:$0xff]  ;;  %v14918_v35 = vand.u32 4294901760, %v11477_v44 }
  0xe2   : > { %8862 = vmatpush3.msra.mxu1 %v11249_v9  ;;  %8572 = vmatprep.mubr.msk.f32.mxu0 %vm14690_vm10, %v10942_v19  ;;  %v14890_v9 = vand.u32 4294901760, %v11548_v48  ;;  %vm14891_vm10 = vcmp.eq.s32.totalorder %v11719_v53, %v11405_v50  ;;  %v14893_v48 = vand.u32 4294901760, %v11612_v55  ;;  %v14895_v55 = vld [vmem:[#allocation29_spill] sm:$0xff] }
  0xe3   : > { %8852 = vmatprep.mubr.f32.mxu1 %v14888_v1  ;;  %9862 = vmatprep.subr.bf16.mxu0 %v11395_v38 }
  0xe4   : > { %8875 = vmatprep.subr.mxu1 %v11138_v39  ;;  %8573 = vmatmul.mubr.msk.f32.gmra.mrb[10].mxu0 %vm405_vm8, %v10942_v19 }
  0xe5   : > { %8853 = vmatmul.mubr.f32.gmra.mrb[2].mxu1 %v14889_v21  ;;  %9864 = vmatpush3.bf16.msra.mxu0 %v11395_v38  ;;  %v14899_v38 = vld [vmem:[#allocation3_spill] sm:$0xff]  ;;  %v14921_v21 = vld [vmem:[#allocation13_spill] sm:$0xff] }
  0xe6   : > { %8575 = vmatprep.mubr.msk.f32.mxu0 %vm406_vm14, %v10942_v19  ;;  %8855 = vmatprep.mubr.f32.mxu1 %v14890_v9  ;;  %v14922_v9 = vand.u32 4294901760, %v14921_v21  ;;  %v14945_v21 = vld [vmem:[#allocation21_spill] sm:$0xff] }
  0xe7   : > { %9866 = vmatprep.subr.bf16.mxu0 %v11399_v23 }
  0xe8   : > { %8576 = vmatmul.mubr.msk.f32.gmra.mrb[12].mxu0 %vm14891_vm10, %v10942_v19 }
  0xe9   : > { %8856 = vmatmul.mubr.f32.gmra.mrb[4].mxu1 %v14892_v30  ;;  %9868 = vmatpush3.bf16.msra.mxu0 %v11399_v23  ;;  %v14900_v23 = vld [vmem:[#allocation35_spill] sm:$0xff]  ;;  %v14923_v30 = vand.u32 4294901760, %v11508_v31 }
  0xea   : > { %8578 = vmatprep.mubr.msk.f32.mxu0 %vm408_vm12, %v10942_v19  ;;  %8858 = vmatprep.mubr.f32.mxu1 %v14893_v48  ;;  %v14924_v48 = vand.u32 4294901760, %v14895_v55 }
  0xeb   : > { %9870 = vmatprep.subr.bf16.mxu0 %v11403_v28 }
  0xec   : > { %8579 = vmatmul.mubr.msk.f32.gmra.mrb[14].mxu0 %vm409_vm1, %v10942_v19 }
  0xed   : > { %8859 = vmatmul.mubr.f32.gmra.mrb[6].mxu1 %v14894_v3  ;;  %9872 = vmatpush3.bf16.msra.mxu0 %v11403_v28  ;;  %v14901_v28 = vld [vmem:[#allocation39_spill] sm:$0xff] }
  0xee   : > { %8613 = vmatprep.mubr.f32.mxu0 %v11451_v60  ;;  %8863 = vmatprep.mubr.msk.f32.mxu1 %vm1801_vm0, %v11413_v8  ;;  %v14936_v62 = vand.u32 4294901760, %v14901_v28 }
  0xef   : > { %9874 = vmatprep.subr.bf16.mxu0 %v11038_v11 }
  0xf0   : > { %8614 = vmatmul.mubr.f32.vlgmr.msra.gmra.mrb[0].mxu0 %v11447_v15  ;;  %v14925_v15 = vld [vmem:[#allocation14_spill] sm:$0xff] }
  0xf1   : > { %8864 = vmatmul.mubr.msk.f32.vlgmr.msra.gmra.mrb[0].mxu1 %vm1801_vm0, %v11410_v52  ;;  %9876 = vmatpush3.bf16.msra.mxu0 %v11038_v11  ;;  %v14926_v3 = vand.u32 4294901760, %v14925_v15  ;;  %v14951_v15 = vld [vmem:[#allocation23_spill] sm:$0xff] }
  0xf2   : > { %8876 = vmatpush3.msra.mxu1 %v11138_v39  ;;  %8616 = vmatprep.mubr.f32.mxu0 %v11477_v44  ;;  %v14896_v39 = vld [vmem:[#allocation2_spill] sm:$0xff] }
  0xf3   : > { %8866 = vmatprep.mubr.msk.f32.mxu1 %vm1801_vm0, %v11473_v45  ;;  %9878 = vmatprep.subr.bf16.mxu0 %v11046_v14 }
  0xf4   : > { %8617 = vmatmul.mubr.f32.gmra.mrb[2].mxu0 %v11508_v31  ;;  %v14931_v31 = vld [vmem:[#allocation16_spill] sm:$0xff] }
  0xf5   : > { %8867 = vmatmul.mubr.msk.f32.gmra.mrb[2].mxu1 %vm1801_vm0, %v11501_v43  ;;  %9880 = vmatpush3.bf16.msra.mxu0 %v11046_v14 }
  0xf6   : > { %8619 = vmatprep.mubr.f32.mxu0 %v14895_v55  ;;  %8869 = vmatprep.mubr.msk.f32.mxu1 %vm1801_vm0, %v11535_v40 }
  0xf7   : > { %9882 = vmatprep.subr.bf16.mxu0 %v14896_v39 }
  0xf8   : > { %8620 = vmatmul.mubr.f32.gmra.mrb[4].mxu0 %v14897_v27 }
  0xf9   : > { %8870 = vmatmul.mubr.msk.f32.gmra.mrb[4].mxu1 %vm1801_vm0, %v11566_v47  ;;  %9884 = vmatpush3.bf16.msra.mxu0 %v14896_v39 }
  0xfa   : > { %8622 = vmatprep.mubr.f32.mxu0 %v14898_v37  ;;  %8872 = vmatprep.mubr.msk.f32.mxu1 %vm1801_vm0, %v11599_v36 }
  0xfb   : > { %9886 = vmatprep.subr.bf16.mxu0 %v14899_v38 }
  0xfc   : > { %8623 = vmatmul.mubr.f32.gmra.mrb[6].mxu0 %v14900_v23 }
  0xfd   : > { %8873 = vmatmul.mubr.msk.f32.gmra.mrb[6].mxu1 %vm1801_vm0, %v11630_v7  ;;  %9888 = vmatpush3.bf16.msra.mxu0 %v14899_v38 }
  0xfe   : > { %8625 = vmatprep.mubr.f32.mxu0 %v14901_v28  ;;  %8877 = vmatprep.mubr.msk.f32.mxu1 %vm1801_vm0, %v11413_v8  ;;  %v14905_v8 = vld [vmem:[#allocation6_spill] sm:$0xff] }
  0xff   : > { %9890 = vmatprep.subr.bf16.mxu0 %v14902_v51 }
 0x100   : > { %8626 = vmatmul.mubr.f32.gmra.mrb[8].mxu0 %v14903_v34 }
 0x101   : > { %8878 = vmatmul.mubr.msk.f32.vlgmr.msra.gmra.mrb[0].mxu1 %vm1801_vm0, %v11410_v52  ;;  %9892 = vmatpush3.bf16.msra.mxu0 %v14902_v51  ;;  %v14906_v52 = vld [vmem:[#allocation44_spill] sm:$0xff] }
 0x102   : > { %8628 = vmatprep.mubr.f32.mxu0 %v11717_v26  ;;  %8880 = vmatprep.mubr.msk.f32.mxu1 %vm1801_vm0, %v11473_v45  ;;  %v14907_v45 = vld [vmem:[#allocation9_spill] sm:$0xff] }
 0x103   : > { %9894 = vmatprep.subr.bf16.mxu0 %v14904_v57 }
 0x104   : > { %8629 = vmatmul.mubr.f32.gmra.mrb[10].mxu0 %v11713_v32 }
 0x105   : > { %8881 = vmatmul.mubr.msk.f32.gmra.mrb[2].mxu1 %vm1801_vm0, %v11501_v43  ;;  %9896 = vmatpush3.bf16.msra.mxu0 %v14904_v57  ;;  %v14908_v43 = vld [vmem:[#allocation7_spill] sm:$0xff] }
 0x106   : > { %8631 = vmatprep.mubr.f32.mxu0 %v11757_v63  ;;  %8883 = vmatprep.mubr.msk.f32.mxu1 %vm1801_vm0, %v11535_v40  ;;  %v14909_v20 = vand.u32 4294901760, %v14908_v43  ;;  %v14911_v40 = vand.u32 4294901760, %v14910_v2  ;;  %v14927_v43 = vld [vmem:[#allocation15_spill] sm:$0xff]  ;;  %v14929_v2 = vand.u32 4294901760, %v14897_v27  ;;  %v14937_v27 = vld [vmem:[#allocation18_spill] sm:$0xff] }
 0x107   : > { %9898 = vmatprep.subr.bf16.mxu0 %v14905_v8 }
 0x108   : > { %8632 = vmatmul.mubr.f32.gmra.mrb[12].mxu0 %v14906_v52  ;;  %v9905_v6 = vpack.c.bf16 %v14911_v40, %v14909_v20  ;;  %v14928_v20 = vand.u32 4294901760, %v14927_v43  ;;  %v14930_v40 = vand.u32 4294901760, %v14898_v37  ;;  %v14953_v43 = vand.u32 4294901760, %v14906_v52 }
 0x109   : > { %8884 = vmatmul.mubr.msk.f32.gmra.mrb[4].mxu1 %vm1801_vm0, %v11566_v47  ;;  %9900 = vmatpush3.bf16.msra.mxu0 %v14905_v8  ;;  %v14912_v47 = vand.u32 4294901760, %v11451_v60 }
 0x10a   : > { %8634 = vmatprep.mubr.f32.mxu0 %v11798_v24  ;;  %8886 = vmatprep.mubr.msk.f32.mxu1 %vm1801_vm0, %v11599_v36  ;;  %v14914_v36 = vand.u32 4294901760, %v14913_v41  ;;  %v9917_v44 = vpack.c.bf16 %v14928_v20, %v14926_v3  ;;  %v14952_v3 = vand.u32 4294901760, %v14951_v15 }
 0x10b   : > { %9902 = vmatprep.subr.bf16.mxu0 %v14907_v45 }
 0x10c   : > { %8635 = vmatmul.mubr.f32.gmra.mrb[14].mxu0 %v11794_v42  ;;  %v9909_v33 = vpack.c.bf16 %v14916_v10, %v14914_v36  ;;  %v14935_v36 = vand.u32 4294901760, %v14900_v23  ;;  %v14938_v10 = vand.u32 4294901760, %v14937_v27  ;;  %v14943_v23 = vld [vmem:[#allocation20_spill] sm:$0xff] }
 0x10d   : > { %8887 = vmatmul.mubr.msk.f32.gmra.mrb[6].mxu1 %vm1801_vm0, %v11630_v7  ;;  %9904 = vmatpush3.bf16.msra.mxu0 %v14907_v45  ;;  %v14919_v7 = vld [vmem:[#allocation12_spill] sm:$0xff]  ;;  %vm14954_vm0 = vcmp.eq.s32.totalorder %v11686_v0, %v11405_v50  ;;  %v2820_v50 = vand.u32 4294901760, %v2787_v12 }
 0x10e   : > { %8669 = vmatprep.mubr.f32.mxu0 %v14912_v47  ;;  %9906 = vmatprep.subr.bf16.mxu0 %v9905_v6  ;;  %v14920_v1 = vand.u32 4294901760, %v14919_v7  ;;  %v14933_v47 = vld [vmem:[#allocation17_spill] sm:$0xff]  ;;  %v14942_v7 = vand.u32 4294901760, %v11717_v26 }
 0x10f   : > { %v14934_v41 = vand.u32 4294901760, %v14933_v47  ;;  %v12223_v5 = vpack.c.bf16 %v2823_v46, %v2820_v50  ;;  %v12227_v0 = vsub.f32 %v2787_v12, %v2820_v50 }
 0x110   : > { %8670 = vmatmul.mubr.f32.vlgmr.msra.gmra.mrb[0].mxu0 %v14917_v29  ;;  %v9913_v60 = vpack.c.bf16 %v14922_v9, %v14920_v1  ;;  %v14944_v1 = vand.u32 4294901760, %v14943_v23  ;;  %v14946_v9 = vand.u32 4294901760, %v14945_v21 }
 0x111   : > { %9908 = vmatpush3.bf16.msra.mxu0 %v9905_v6  ;;  %8672 = vmatprep.mubr.f32.mxu0 %v14918_v35  ;;  %v14932_v6 = vand.u32 4294901760, %v14931_v31  ;;  %v14941_v35 = vand.u32 4294901760, %v14903_v34  ;;  %v14949_v34 = vld [vmem:[#allocation22_spill] sm:$0xff]  ;;  %v2979_v54 = vand.u32 4294901760, %v12227_v0 }
 0x112   : > { %9910 = vmatprep.subr.bf16.mxu0 %v9909_v33  ;;  %v9929_v28 = vpack.c.bf16 %v14946_v9, %v14944_v1 }
 0x113   : > { %v9921_v55 = vpack.c.bf16 %v14934_v41, %v14932_v6 }
 0x114   : > { %8673 = vmatmul.mubr.f32.gmra.mrb[2].mxu0 %v14923_v30  ;;  %v14948_v30 = vand.u32 4294901760, %v11757_v63 }
 0x115   : > { %9912 = vmatpush3.bf16.msra.mxu0 %v9909_v33  ;;  %8675 = vmatprep.mubr.f32.mxu0 %v14924_v48  ;;  %v14939_v33 = vld [vmem:[#allocation19_spill] sm:$0xff]  ;;  %v14950_v48 = vand.u32 4294901760, %v14949_v34  ;;  %v12261_v34 = vld [vmem:[%s14595_s5] sm:$0xff] }
 0x116   : > { %9914 = vmatprep.subr.bf16.mxu0 %v9913_v60  ;;  %v14940_v29 = vand.u32 4294901760, %v14939_v33 }
 0x117   : > { %v9933_v26 = vpack.c.bf16 %v14952_v3, %v14950_v48  ;;  %v12266_v48 = vld [vmem:[%s14595_s5 + $0x8] sm:$0xff]  ;;  %v3628_v3 = vand.u32 4294901760, %v12261_v34 }
 0x118   : > { %8676 = vmatmul.mubr.f32.gmra.mrb[4].mxu0 %v14929_v2  ;;  %v9925_v37 = vpack.c.bf16 %v14940_v29, %v14938_v10 }
 0x119   : > { %9916 = vmatpush3.bf16.msra.mxu0 %v9913_v60  ;;  %8678 = vmatprep.mubr.f32.mxu0 %v14930_v40  ;;  %v14947_v60 = vand.u32 4294901760, %v11713_v32  ;;  %v12229_v32 = vsub.f32 %v2788_v59, %v2823_v46 }
 0x11a   : > { %9918 = vmatprep.subr.bf16.mxu0 %v9917_v44 }
 0x11b   : > { %v2986_v42 = vand.u32 4294901760, %v12229_v32 }
 0x11c   : > { %8679 = vmatmul.mubr.f32.gmra.mrb[6].mxu0 %v14935_v36 }
 0x11d   : > { %9920 = vmatpush3.bf16.msra.mxu0 %v9917_v44  ;;  %8681 = vmatprep.mubr.f32.mxu0 %v14936_v62  ;;  %v12250_v44 = vpack.c.bf16 %v12229_v32, %v12227_v0 }
 0x11e   : > { %9922 = vmatprep.subr.bf16.mxu0 %v9921_v55 }
 0x120   : > { %8682 = vmatmul.mubr.f32.gmra.mrb[8].mxu0 %v14941_v35 }
 0x121   : > { %9924 = vmatpush3.bf16.msra.mxu0 %v9921_v55  ;;  %8684 = vmatprep.mubr.f32.mxu0 %v14942_v7 }
 0x122   : > { %9926 = vmatprep.subr.bf16.mxu0 %v9925_v37 }
 0x124   : > { %8685 = vmatmul.mubr.f32.gmra.mrb[10].mxu0 %v14947_v60 }
 0x125   : > { %9928 = vmatpush3.bf16.msra.mxu0 %v9925_v37  ;;  %8687 = vmatprep.mubr.f32.mxu0 %v14948_v30 }
 0x126   : > { %9930 = vmatprep.subr.bf16.mxu0 %v9929_v28 }
 0x128   : > { %8688 = vmatmul.mubr.f32.gmra.mrb[12].mxu0 %v14953_v43 }
 0x129   : > { %9932 = vmatpush3.bf16.msra.mxu0 %v9929_v28  ;;  %8690 = vmatprep.mubr.f32.mxu0 %v681_v13  ;;  %v2980_v13 = vsub.f32 %v12227_v0, %v2979_v54 }
 0x12a   : > { %9934 = vmatprep.subr.bf16.mxu0 %v9933_v26 }
 0x12c   : > { %8691 = vmatmul.mubr.f32.gmra.mrb[14].mxu0 %v691_v61  ;;  %v2987_v61 = vsub.f32 %v12229_v32, %v2986_v42 }
 0x12d   : > { %9936 = vmatpush3.bf16.msra.mxu0 %v9933_v26  ;;  %8725 = vmatprep.mubr.msk.f32.mxu0 %vm394_vm4, %v10942_v19 }
 0x12e   : > { %9938 = vmatprep.subr.bf16.mxu0 %v11038_v11 }
 0x130   : > { %8726 = vmatmul.mubr.msk.f32.vlgmr.msra.gmra.mrb[0].mxu0 %vm395_vm3, %v10942_v19 }
 0x131   : > { %9940 = vmatpush3.bf16.msra.mxu0 %v11038_v11  ;;  %8728 = vmatprep.mubr.msk.f32.mxu0 %vm396_vm5, %v10942_v19  ;;  %v2785_v11 = vld [vmem:[%s14594_s4] sm:$0xff] }
 0x132   : > { %9942 = vmatprep.subr.bf16.mxu0 %v11046_v14  ;;  %v2814_v49 = vand.u32 4294901760, %v2785_v11 }
 0x134   : > { %8729 = vmatmul.mubr.msk.f32.gmra.mrb[2].mxu0 %vm397_vm7, %v10942_v19  ;;  %v2964_v4 = vsub.f32 %v2785_v11, %v2814_v49  ;;  %v3631_v11 = vand.u32 4294901760, %v12266_v48 }
 0x135   : > { %9944 = vmatpush3.bf16.msra.mxu0 %v11046_v14  ;;  %8731 = vmatprep.mubr.msk.f32.mxu0 %vm398_vm9, %v10942_v19  ;;  %v2786_v14 = vld [vmem:[%s14594_s4 + $0x8] sm:$0xff] }
 0x136   : > { %9946 = vmatprep.subr.bf16.mxu0 %v14896_v39  ;;  %v2817_v56 = vand.u32 4294901760, %v2786_v14  ;;  %v2965_v17 = vand.u32 4294901760, %v2964_v4 }
 0x138   : > { %8732 = vmatmul.mubr.msk.f32.gmra.mrb[4].mxu0 %vm399_vm11, %v10942_v19  ;;  %v12213_v25 = vpack.c.bf16 %v2817_v56, %v2814_v49  ;;  %v2971_v16 = vsub.f32 %v2786_v14, %v2817_v56  ;;  %v2966_v58 = vsub.f32 %v2964_v4, %v2965_v17  ;;  %v12275_v14 = vsub.f32 %v12261_v34, %v3628_v3 }
 0x139   : > { %9948 = vmatpush3.bf16.msra.mxu0 %v14896_v39  ;;  %8734 = vmatprep.mubr.msk.f32.mxu0 %vm400_vm13, %v10942_v19  ;;  %v2988_v39 = vand.u32 4294901760, %v2987_v61  ;;  %v3601_v61 = vld [vmem:[%s14595_s5 + $0x10] sm:$0xff] }
 0x13a   : > { %9950 = vmatprep.subr.bf16.mxu0 %v14899_v38  ;;  %9970 = vmatprep.subr.bf16.mxu1 %v12213_v25  ;;  %v2972_v18 = vand.u32 4294901760, %v2971_v16  ;;  %v2967_v63 = vand.u32 4294901760, %v2966_v58 }
 0x13b   : > { %9972 = vmatpush3.bf16.msra.mxu1 %v12213_v25 }
 0x13c   : > { %8735 = vmatmul.mubr.msk.f32.gmra.mrb[6].mxu0 %vm401_vm15, %v10942_v19  ;;  %9974 = vmatprep.subr.bf16.mxu1 %v12223_v5  ;;  %v2973_v53 = vsub.f32 %v2971_v16, %v2972_v18  ;;  %v12269_v43 = vpack.c.bf16 %v2972_v18, %v2965_v17 }
 0x13d   : > { %9952 = vmatpush3.bf16.msra.mxu0 %v14899_v38  ;;  %8737 = vmatprep.mubr.msk.f32.mxu0 %vm402_vm6, %v10942_v19 }
 0x13e   : > { %9954 = vmatprep.subr.bf16.mxu0 %v14902_v51  ;;  %v2974_v22 = vand.u32 4294901760, %v2973_v53  ;;  %v12302_v53 = vsub.f32 %v12266_v48, %v3631_v11 }
 0x13f   : > { %9976 = vmatpush3.bf16.msra.mxu1 %v12223_v5 }
 0x140   : > { %8738 = vmatmul.mubr.msk.f32.gmra.mrb[8].mxu0 %vm403_vm2, %v10942_v19  ;;  %v12233_v24 = vpack.c.bf16 %v2974_v22, %v2967_v63 }
 0x141   : > { %9956 = vmatpush3.bf16.msra.mxu0 %v14902_v51  ;;  %8740 = vmatprep.mubr.msk.f32.mxu0 %vm14954_vm0, %v10942_v19  ;;  %v12244_v51 = vpack.c.bf16 %v2971_v16, %v2964_v4 }
 0x142   : > { %9958 = vmatprep.subr.bf16.mxu0 %v14904_v57  ;;  %9978 = vmatprep.subr.bf16.mxu1 %v12233_v24 }
 0x144   : > { %8741 = vmatmul.mubr.msk.f32.gmra.mrb[10].mxu0 %vm405_vm8, %v10942_v19 }
 0x145   : > { %9960 = vmatpush3.bf16.msra.mxu0 %v14904_v57  ;;  %8743 = vmatprep.mubr.msk.f32.mxu0 %vm406_vm14, %v10942_v19 }
 0x146   : > { %9962 = vmatprep.subr.bf16.mxu0 %v14905_v8 }
 0x148   : > { %8744 = vmatmul.mubr.msk.f32.gmra.mrb[12].mxu0 %vm14891_vm10, %v10942_v19 }
 0x149   : > { %9964 = vmatpush3.bf16.msra.mxu0 %v14905_v8  ;;  %8746 = vmatprep.mubr.msk.f32.mxu0 %vm408_vm12, %v10942_v19 }
 0x14a   : > { %9966 = vmatprep.subr.bf16.mxu0 %v14907_v45 }
 0x14c   : > { %8747 = vmatmul.mubr.msk.f32.gmra.mrb[14].mxu0 %vm409_vm1, %v10942_v19 }
 0x14d   : > { %9968 = vmatpush3.bf16.msra.mxu0 %v14907_v45  ;;  %8781 = vmatprep.mubr.msk.f32.mxu0 %vm394_vm4, %v10942_v19  ;;  %vm14956_vm4 = vmmov %vm14891_vm10 }
 0x150   : > { %8782 = vmatmul.mubr.msk.f32.vlgmr.msra.gmra.mrb[0].mxu0 %vm395_vm3, %v10942_v19  ;;  %vm14955_vm3 = vmmov %vm14954_vm0 }
 0x151   : > { %8784 = vmatprep.mubr.msk.f32.mxu0 %vm396_vm5, %v10942_v19  ;;  %vm2573_vm5 = vcmask 261120  }
 0x154   : > { %8785 = vmatmul.mubr.msk.f32.gmra.mrb[2].mxu0 %vm397_vm7, %v10942_v19 }
 0x155   : > { %8787 = vmatprep.mubr.msk.f32.mxu0 %vm398_vm9, %v10942_v19 }
 0x158   : > { %8788 = vmatmul.mubr.msk.f32.gmra.mrb[4].mxu0 %vm399_vm11, %v10942_v19 }
 0x159   : > { %8790 = vmatprep.mubr.msk.f32.mxu0 %vm400_vm13, %v10942_v19 }
 0x15c   : > { %8791 = vmatmul.mubr.msk.f32.gmra.mrb[6].mxu0 %vm401_vm15, %v10942_v19 }
 0x15d   : > { %8793 = vmatprep.mubr.msk.f32.mxu0 %vm402_vm6, %v10942_v19 }
 0x160   : > { %8794 = vmatmul.mubr.msk.f32.gmra.mrb[8].mxu0 %vm403_vm2, %v10942_v19 }
 0x161   : > { %8796 = vmatprep.mubr.msk.f32.mxu0 %vm14955_vm3, %v10942_v19 }
 0x164   : > { %8797 = vmatmul.mubr.msk.f32.gmra.mrb[10].mxu0 %vm405_vm8, %v10942_v19 }
 0x165   : > { %8799 = vmatprep.mubr.msk.f32.mxu0 %vm406_vm14, %v10942_v19 }
 0x168   : > { %8800 = vmatmul.mubr.msk.f32.gmra.mrb[12].mxu0 %vm14956_vm4, %v10942_v19 }
 0x169   : > { %8802 = vmatprep.mubr.msk.f32.mxu0 %vm408_vm12, %v10942_v19 }
 0x16c   : > { %8803 = vmatmul.mubr.msk.f32.gmra.mrb[14].mxu0 %vm409_vm1, %v10942_v19  ;;  %v2981_v19 = vand.u32 4294901760, %v2980_v13 }
 0x16e   : > { %v12242_v38 = vpack.c.bf16 %v2988_v39, %v2981_v19  ;;  %v3602_v19 = vld [vmem:[%s14595_s5 + $0x18] sm:$0xff] }
 0x1d4   : > { %v8879_v57 = vpop.f32.mrb[0].mxu1 }
 0x1d5   : > { %v2716_v8 = vsel %vm2573_vm5, %v8879_v57, 0.0  ;;  %v2527_v52 = vpop.f32.mrb[1].mxu1 }
 0x1d6   : > { %v2715_v45 = vsel %vm2573_vm5, %v2527_v52, 0.0 }
 0x1d7   : > { %v2717_v20 = vadd.f32 %v2716_v8, %v2715_v45  ;;  %v3779_v45 = vand.u32 4294901760, %v12275_v14 }
 0x1d8   : > { %v8882_v2 = vpop.f32.mrb[2].mxu1 }
 0x1d9   : > { %v2539_v40 = vpop.f32.mrb[3].mxu1  ;;  %v2720_v47 = vsel %vm2573_vm5, %v8882_v2, 0.0  ;;  %v3780_v0 = vsub.f32 %v12275_v14, %v3779_v45 }
 0x1da   : > { %v2718_v31 = vsel %vm2573_vm5, %v2539_v40, 0.0 }
 0x1db   : > { %v2719_v6 = vadd.f32 %v2718_v31, %v2717_v20  ;;  %v3786_v20 = vand.u32 4294901760, %v12302_v53  ;;  %v3637_v31 = vand.u32 4294901760, %v3602_v19 }
 0x1dc   : > { %v8885_v41 = vpop.f32.mrb[4].mxu1 }
 0x1dd   : > { %v2551_v55 = vpop.f32.mrb[5].mxu1  ;;  %v2721_v36 = vadd.f32 %v2720_v47, %v2719_v6  ;;  %v2724_v10 = vsel %vm2573_vm5, %v8885_v41, 0.0  ;;  %v3787_v32 = vsub.f32 %v12302_v53, %v3786_v20 }
 0x1de   : > { %v2722_v62 = vsel %vm2573_vm5, %v2551_v55, 0.0 }
 0x1df   : > { %v2723_v27 = vadd.f32 %v2722_v62, %v2721_v36  ;;  %v3781_v62 = vand.u32 4294901760, %v3780_v0 }
 0x1e0   : > { %v8888_v33 = vpop.f32.mrb[6].mxu1 }
 0x1e1   : > { %v2563_v29 = vpop.f32.mrb[7].mxu1  ;;  %v2725_v37 = vadd.f32 %v2724_v10, %v2723_v27  ;;  %v2728_v23 = vsel %vm2573_vm5, %v8888_v33, 0.0  ;;  %v3788_v27 = vand.u32 4294901760, %v3787_v32 }
 0x1e2   : > { %v2726_v35 = vsel %vm2573_vm5, %v2563_v29, 0.0 }
 0x1e3   : > { %v2727_v7 = vadd.f32 %v2726_v35, %v2725_v37 }
 0x1e5   : > { %v2729_v1 = vadd.f32 %v2728_v23, %v2727_v7  ;;  %v12346_v7 = vpack.c.bf16 %v3788_v27, %v3781_v62 }
 0x1e7   : > { %v2730_v21 = vrot.slane %v2729_v1, 4  ;;  %10074 = vmatprep.subr.bf16.mxu0 %v12346_v7 }
 0x1e8   : > { %10076 = vmatpush3.bf16.msra.mxu0 %v12346_v7 }
 0x1e9   : > { %v2731_v9 = vadd.f32 %v2730_v21, %v2729_v1 }
 0x1eb   : > { %v2732_v28 = vrot.slane %v2731_v9, 2 }
 0x1ed   : > { %v2733_v60 = vadd.f32 %v2732_v28, %v2731_v9 }
 0x1ef   : > { %v2734_v30 = vrot.slane %v2733_v60, 1 }
 0x1f1   : > { %v2735_v15 = vadd.f32 %v2734_v30, %v2733_v60 }
 0x1f3   : > { %v2736_v26 = vmul.f32 0.015625, %v2735_v15 }
 0x1f5   : > { %v12277_v49 = vsub.f32 %v2527_v52, %v2736_v26  ;;  %v12279_v56 = vsub.f32 %v8879_v57, %v2736_v26  ;;  %v12281_v12 = vsub.f32 %v2539_v40, %v2736_v26  ;;  %v12283_v59 = vsub.f32 %v8882_v2, %v2736_v26 }
 0x1f6   : > { %v12285_v50 = vsub.f32 %v2551_v55, %v2736_v26  ;;  %v12287_v46 = vsub.f32 %v8885_v41, %v2736_v26  ;;  %v12289_v4 = vsub.f32 %v2563_v29, %v2736_v26  ;;  %v12291_v16 = vsub.f32 %v8888_v33, %v2736_v26 }
 0x1f7   : > { %v2745_v17 = vmul.f32 %v12277_v49, %v12277_v49  ;;  %v2746_v18 = vmul.f32 %v12279_v56, %v12279_v56  ;;  %v2747_v58 = vmul.f32 %v12281_v12, %v12281_v12  ;;  %v2748_v63 = vmul.f32 %v12283_v59, %v12283_v59 }
 0x1f8   : > { %v2749_v39 = vmul.f32 %v12285_v50, %v12285_v50  ;;  %v12321_v52 = vpack.c.bf16 %v2986_v42, %v2979_v54  ;;  %v3634_v40 = vand.u32 4294901760, %v3601_v61  ;;  %v2750_v6 = vmul.f32 %v12287_v46, %v12287_v46 }
 0x1f9   : > { %v2753_v22 = vsel %vm2573_vm5, %v2745_v17, 0.0  ;;  %v2754_v13 = vsel %vm2573_vm5, %v2746_v18, 0.0  ;;  %v2756_v8 = vsel %vm2573_vm5, %v2747_v58, 0.0  ;;  %v2758_v47 = vsel %vm2573_vm5, %v2748_v63, 0.0 }
 0x1fa   : > { %v2755_v57 = vadd.f32 %v2754_v13, %v2753_v22  ;;  %v12334_v42 = vsub.f32 %v3601_v61, %v3634_v40  ;;  %v12336_v41 = vsub.f32 %v3602_v19, %v3637_v31  ;;  %v2751_v55 = vmul.f32 %v12289_v4, %v12289_v4 }
 0x1fb   : > { %v2760_v36 = vsel %vm2573_vm5, %v2749_v39, 0.0  ;;  %v2752_v37 = vmul.f32 %v12291_v16, %v12291_v16  ;;  %v2762_v35 = vsel %vm2573_vm5, %v2750_v6, 0.0  ;;  %v12364_v63 = vpack.c.bf16 %v12302_v53, %v12275_v14 }
 0x1fc   : > { %v2757_v2 = vadd.f32 %v2756_v8, %v2755_v57  ;;  %v3793_v33 = vand.u32 4294901760, %v12334_v42  ;;  %v3800_v29 = vand.u32 4294901760, %v12336_v41  ;;  %v2764_v9 = vsel %vm2573_vm5, %v2751_v55, 0.0 }
 0x1fd   : > { %v2766_v15 = vsel %vm2573_vm5, %v2752_v37, 0.0  ;;  %v12371_v61 = vpack.c.bf16 %v3631_v11, %v3628_v3  ;;  %v12373_v19 = vpack.c.bf16 %v3637_v31, %v3634_v40  ;;  %v12377_v39 = vpack.c.bf16 %v12336_v41, %v12334_v42 }
 0x1fe   : > { %v2759_v54 = vadd.f32 %v2758_v47, %v2757_v2  ;;  %v3794_v1 = vsub.f32 %v12334_v42, %v3793_v33  ;;  %v3801_v21 = vsub.f32 %v12336_v41, %v3800_v29 }
 0x200   : > { %v2761_v10 = vadd.f32 %v2760_v36, %v2759_v54  ;;  %v3795_v60 = vand.u32 4294901760, %v3794_v1  ;;  %v3802_v30 = vand.u32 4294901760, %v3801_v21 }
 0x202   : > { %v2763_v23 = vadd.f32 %v2762_v35, %v2761_v10  ;;  %v12358_v17 = vpack.c.bf16 %v3802_v30, %v3795_v60 }
 0x204   : > { %v2765_v28 = vadd.f32 %v2764_v9, %v2763_v23  ;;  %10078 = vmatprep.subr.bf16.mxu0 %v12358_v17 }
 0x205   : > { %10080 = vmatpush3.bf16.msra.mxu0 %v12358_v17 }
 0x206   : > { %v2767_v26 = vadd.f32 %v2766_v15, %v2765_v28  ;;  %10082 = vmatprep.subr.bf16.mxu0 %v12364_v63 }
 0x208   : > { %v2768_v18 = vrot.slane %v2767_v26, 4 }
 0x20a   : > { %v2769_v58 = vadd.f32 %v2768_v18, %v2767_v26 }
 0x20c   : > { %v2770_v22 = vrot.slane %v2769_v58, 2 }
 0x20e   : > { %v2771_v13 = vadd.f32 %v2770_v22, %v2769_v58 }
 0x210   : > { %v2772_v57 = vrot.slane %v2771_v13, 1 }
 0x212   : > { %v2773_v8 = vadd.f32 %v2772_v57, %v2771_v13 }
 0x214   : > { %v2774_v2 = vmul.f32 0.015625, %v2773_v8 }
 0x216   : > { %v2775_v6 = vadd.f32 1e-05, %v2774_v2 }
 0x218   : > { %10830 = vrsqrt.f32 %v2775_v6 }
 0x222   : > { %v10831_v47 = vpop.eup %10830 }
 0x223   : > { %v2783_v0 = vmul.f32 %v10831_v47, %v12289_v4  ;;  %v2777_v34 = vmul.f32 %v10831_v47, %v12277_v49  ;;  %v2778_v48 = vmul.f32 %v10831_v47, %v12279_v56  ;;  %v2779_v3 = vmul.f32 %v10831_v47, %v12281_v12  ;;  %v12383_v11 = vpop.f32.mrb[0].mxu0 }
 0x224   : > { %v2780_v40 = vmul.f32 %v10831_v47, %v12283_v59  ;;  %v2781_v31 = vmul.f32 %v10831_v47, %v12285_v50  ;;  %v2782_v32 = vmul.f32 %v10831_v47, %v12287_v46  ;;  %v2784_v54 = vmul.f32 %v10831_v47, %v12291_v16  ;;  %v12392_v49 = vpop.f32.mrb[1].mxu0 }
 0x225   : > { %v2808_v55 = vsel %vm2573_vm5, %v2783_v0, 0  ;;  %v2575_v4 = vsel %vm2573_vm5, %v12383_v11, 0.0  ;;  %v2790_v56 = vsel %vm2573_vm5, %v2777_v34, 0  ;;  %v2793_v12 = vsel %vm2573_vm5, %v2778_v48, 0 }
 0x226   : > { %v12396_v36 = vand.u32 4294901760, %v2808_v55  ;;  %v2574_v59 = vsel %vm2573_vm5, %v12392_v49, 0.0  ;;  %v12400_v50 = vand.u32 4294901760, %v2790_v56  ;;  %v12402_v46 = vand.u32 4294901760, %v2793_v12 }
 0x227   : > { %v2576_v16 = vadd.f32 %v2575_v4, %v2574_v59  ;;  %v2796_v62 = vsel %vm2573_vm5, %v2779_v3, 0  ;;  %v2799_v27 = vsel %vm2573_vm5, %v2780_v40, 0  ;;  %v2802_v10 = vsel %vm2573_vm5, %v2781_v31, 0  ;;  %v12407_v37 = vpop.f32.mrb[2].mxu0 }
 0x228   : > { %v12410_v35 = vsub.f32 %v2790_v56, %v12400_v50  ;;  %v12413_v23 = vsub.f32 %v2793_v12, %v12402_v46  ;;  %v12415_v1 = vand.u32 4294901760, %v2796_v62  ;;  %v12418_v21 = vsub.f32 %v2808_v55, %v12396_v36  ;;  %v12420_v9 = vpop.f32.mrb[3].mxu0 }
 0x229   : > { %v12422_v28 = vand.u32 4294901760, %v2799_v27  ;;  %v12424_v60 = vand.u32 4294901760, %v2802_v10  ;;  %v2805_v30 = vsel %vm2573_vm5, %v2782_v32, 0  ;;  %v2577_v15 = vsel %vm2573_vm5, %v12420_v9, 0.0 }
 0x22a   : > { %v2884_v26 = vand.u32 4294901760, %v12410_v35  ;;  %v2894_v18 = vand.u32 4294901760, %v12413_v23  ;;  %v12432_v58 = vsub.f32 %v2796_v62, %v12415_v1  ;;  %v2578_v22 = vadd.f32 %v2577_v15, %v2576_v16 }
 0x22b   : > { %v12435_v13 = vsub.f32 %v2799_v27, %v12422_v28  ;;  %v12438_v57 = vsub.f32 %v2802_v10, %v12424_v60  ;;  %v12440_v8 = vand.u32 4294901760, %v2805_v30  ;;  %v2579_v2 = vsel %vm2573_vm5, %v12407_v37, 0.0  ;;  %v12444_v6 = vpop.f32.mrb[4].mxu0 }
 0x22c   : > { %v2885_v47 = vsub.f32 %v12410_v35, %v2884_v26  ;;  %v2895_v0 = vsub.f32 %v12413_v23, %v2894_v18  ;;  %v2904_v34 = vand.u32 4294901760, %v12432_v58  ;;  %v12453_v48 = vpop.f32.mrb[5].mxu0  ;;  %v2580_v3 = vadd.f32 %v2579_v2, %v2578_v22 }
 0x22d   : > { %v2914_v40 = vand.u32 4294901760, %v12435_v13  ;;  %v14694_v31 = vand.u32 4294901760, %v12438_v57  ;;  %v14691_v32 = vand.u32 4294901760, %v12418_v21  ;;  %v2581_v55 = vsel %vm2573_vm5, %v12453_v48, 0.0 }
 0x22e   : > { %v2886_v4 = vand.u32 4294901760, %v2885_v47  ;;  %v2896_v56 = vand.u32 4294901760, %v2895_v0  ;;  %v2905_v12 = vsub.f32 %v12432_v58, %v2904_v34  ;;  %v2583_v59 = vsel %vm2573_vm5, %v12444_v6, 0.0 }
 0x22f   : > { %v2582_v16 = vadd.f32 %v2581_v55, %v2580_v3  ;;  %v2915_v62 = vsub.f32 %v12435_v13, %v2914_v40  ;;  %v12469_v27 = vsub.f32 %v2805_v30, %v12440_v8  ;;  %v12471_v10 = vpop.f32.mrb[6].mxu0  ;;  %v2925_v22 = vsub.f32 %v12438_v57, %v14694_v31 }
 0x230   : > { %8897 = vmatprep.mubr.f32.mxu1 %v2886_v4  ;;  %v2906_v15 = vand.u32 4294901760, %v2905_v12  ;;  %v2811_v2 = vsel %vm2573_vm5, %v2784_v54, 0  ;;  %v12481_v47 = vpack.c.bf16 %v3786_v20, %v3779_v45  ;;  %v12483_v0 = vpop.f32.mrb[7].mxu0  ;;  %v2945_v53 = vsub.f32 %v12418_v21, %v14691_v32 }
 0x231   : > { %v2584_v30 = vadd.f32 %v2583_v59, %v2582_v16  ;;  %8898 = vmatmul.mubr.f32.vlgmr.msra.gmra.mrb[8].mxu1 %v2896_v56  ;;  %v2585_v3 = vsel %vm2573_vm5, %v12483_v0, 0.0  ;;  %v14693_v55 = vand.u32 4294901760, %v12469_v27  ;;  %v12489_v4 = vand.u32 4294901760, %v2811_v2 }
 0x232   : > { %9980 = vmatpush3.bf16.msra.mxu1 %v12233_v24  ;;  %8900 = vmatprep.mubr.f32.mxu1 %v2906_v15  ;;  %v2916_v14 = vand.u32 4294901760, %v2915_v62  ;;  %v12499_v45 = vpack.c.bf16 %v3800_v29, %v3793_v33  ;;  %v2587_v24 = vsel %vm2573_vm5, %v12471_v10, 0.0  ;;  %v2926_v56 = vand.u32 4294901760, %v2925_v22 }
 0x233   : > { %v2586_v54 = vadd.f32 %v2585_v3, %v2584_v30  ;;  %9982 = vmatprep.subr.bf16.mxu1 %v12242_v38  ;;  %v12503_v20 = vpop.f32.mrb[8].mxu0  ;;  %v2935_v12 = vsub.f32 %v12469_v27, %v14693_v55  ;;  %v12509_v59 = vsub.f32 %v2811_v2, %v12489_v4  ;;  %v2946_v30 = vand.u32 4294901760, %v2945_v53 }
 0x234   : > { %v2646_v42 = vsel %vm2573_vm5, %v12503_v20, 0.0  ;;  %v12513_v41 = vpop.f32.mrb[9].mxu0 }
 0x235   : > { %v2588_v16 = vadd.f32 %v2587_v24, %v2586_v54  ;;  %8901 = vmatmul.mubr.f32.gmra.mrb[10].mxu1 %v2916_v14  ;;  %v2645_v33 = vsel %vm2573_vm5, %v12513_v41, 0.0  ;;  %v14692_v29 = vand.u32 4294901760, %v12509_v59  ;;  %v2936_v22 = vand.u32 4294901760, %v2935_v12 }
 0x236   : > { %8903 = vmatprep.mubr.f32.mxu1 %v2926_v56  ;;  %9984 = vmatpush3.bf16.msra.mxu1 %v12242_v38  ;;  %v2647_v15 = vadd.f32 %v2646_v42, %v2645_v33 }
 0x237   : > { %v2589_v62 = vrot.slane %v2588_v16, 4  ;;  %9986 = vmatprep.subr.bf16.mxu1 %v12244_v51  ;;  %v12520_v2 = vpop.f32.mrb[10].mxu0  ;;  %v2955_v3 = vsub.f32 %v12509_v59, %v14692_v29 }
 0x238   : > { %v12525_v14 = vpop.f32.mrb[11].mxu0  ;;  %v2650_v42 = vsel %vm2573_vm5, %v12520_v2, 0.0 }
 0x239   : > { %v2590_v54 = vadd.f32 %v2589_v62, %v2588_v16  ;;  %8904 = vmatmul.mubr.f32.gmra.mrb[12].mxu1 %v2936_v22  ;;  %v2648_v38 = vsel %vm2573_vm5, %v12525_v14, 0.0  ;;  %v2956_v12 = vand.u32 4294901760, %v2955_v3 }
 0x23a   : > { %8906 = vmatprep.mubr.f32.mxu1 %v2946_v30  ;;  %v2649_v56 = vadd.f32 %v2648_v38, %v2647_v15 }
 0x23b   : > { %v2591_v24 = vrot.slane %v2590_v54, 2  ;;  %v12531_v33 = vpop.f32.mrb[12].mxu0 }
 0x23c   : > { %v12533_v32 = vpop.f32.mrb[13].mxu0  ;;  %v2651_v29 = vadd.f32 %v2650_v42, %v2649_v56  ;;  %v2654_v15 = vsel %vm2573_vm5, %v12531_v33, 0.0 }
 0x23d   : > { %v2592_v53 = vadd.f32 %v2591_v24, %v2590_v54  ;;  %8907 = vmatmul.mubr.f32.gmra.mrb[14].mxu1 %v2956_v12  ;;  %v2652_v16 = vsel %vm2573_vm5, %v12533_v32, 0.0 }
 0x23e   : > { %8917 = vmatprep.mubr.f32.mxu1 %v12400_v50  ;;  %v2653_v22 = vadd.f32 %v2652_v16, %v2651_v29 }
 0x23f   : > { %v2593_v62 = vrot.slane %v2592_v53, 1  ;;  %v12540_v30 = vpop.f32.mrb[14].mxu0 }
 0x240   : > { %v12542_v38 = vpop.f32.mrb[15].mxu0  ;;  %v2655_v54 = vadd.f32 %v2654_v15, %v2653_v22  ;;  %v2658_v15 = vsel %vm2573_vm5, %v12540_v30, 0.0 }
 0x241   : > { %v2594_v3 = vadd.f32 %v2593_v62, %v2592_v53  ;;  %8918 = vmatmul.mubr.f32.vlgmr.msra.gmra.mrb[8].mxu1 %v12402_v46  ;;  %v2656_v24 = vsel %vm2573_vm5, %v12542_v38, 0.0 }
 0x242   : > { %9988 = vmatpush3.bf16.msra.mxu1 %v12244_v51  ;;  %8920 = vmatprep.mubr.f32.mxu1 %v12415_v1  ;;  %v2657_v29 = vadd.f32 %v2656_v24, %v2655_v54 }
 0x243   : > { %v2596_v56 = vmul.f32 0.015625, %v2594_v3  ;;  %9990 = vmatprep.subr.bf16.mxu1 %v12250_v44 }
 0x244   : > { %v2659_v54 = vadd.f32 %v2658_v15, %v2657_v29 }
 0x245   : > { %v12551_v12 = vsub.f32 %v12392_v49, %v2596_v56  ;;  %v12554_v42 = vsub.f32 %v12383_v11, %v2596_v56  ;;  %v12557_v53 = vsub.f32 %v12420_v9, %v2596_v56  ;;  %v12560_v16 = vsub.f32 %v12407_v37, %v2596_v56  ;;  %8921 = vmatmul.mubr.f32.gmra.mrb[10].mxu1 %v12422_v28 }
 0x246   : > { %v12564_v51 = vsub.f32 %v12453_v48, %v2596_v56  ;;  %v12567_v62 = vsub.f32 %v12444_v6, %v2596_v56  ;;  %v12570_v49 = vsub.f32 %v12483_v0, %v2596_v56  ;;  %v12573_v11 = vsub.f32 %v12471_v10, %v2596_v56  ;;  %8923 = vmatprep.mubr.f32.mxu1 %v12424_v60 }
 0x247   : > { %v2605_v37 = vmul.f32 %v12551_v12, %v12551_v12  ;;  %v2606_v9 = vmul.f32 %v12554_v42, %v12554_v42  ;;  %v2607_v48 = vmul.f32 %v12557_v53, %v12557_v53  ;;  %9992 = vmatpush3.bf16.msra.mxu1 %v12250_v44  ;;  %v2608_v6 = vmul.f32 %v12560_v16, %v12560_v16 }
 0x248   : > { %9994 = vmatprep.subr.bf16.mxu1 %v12213_v25  ;;  %v2609_v44 = vmul.f32 %v12564_v51, %v12564_v51  ;;  %v2610_v56 = vmul.f32 %v12567_v62, %v12567_v62  ;;  %v2612_v29 = vmul.f32 %v12573_v11, %v12573_v11 }
 0x249   : > { %v2613_v10 = vsel %vm2573_vm5, %v2605_v37, 0.0  ;;  %v2614_v0 = vsel %vm2573_vm5, %v2606_v9, 0.0  ;;  %8924 = vmatmul.mubr.f32.gmra.mrb[12].mxu1 %v12440_v8  ;;  %v2616_v3 = vsel %vm2573_vm5, %v2607_v48, 0.0  ;;  %v2618_v37 = vsel %vm2573_vm5, %v2608_v6, 0.0 }
 0x24a   : > { %v2615_v22 = vadd.f32 %v2614_v0, %v2613_v10  ;;  %8926 = vmatprep.mubr.f32.mxu1 %v12396_v36  ;;  %v2660_v9 = vrot.slane %v2659_v54, 4  ;;  %v2611_v0 = vmul.f32 %v12570_v49, %v12570_v49  ;;  %v2620_v55 = vsel %vm2573_vm5, %v2609_v44, 0.0 }
 0x24c   : > { %v2617_v24 = vadd.f32 %v2616_v3, %v2615_v22  ;;  %v2661_v31 = vadd.f32 %v2660_v9, %v2659_v54  ;;  %v2622_v22 = vsel %vm2573_vm5, %v2610_v56, 0.0  ;;  %v2624_v3 = vsel %vm2573_vm5, %v2611_v0, 0.0 }
 0x24d   : > { %8927 = vmatmul.mubr.f32.gmra.mrb[14].mxu1 %v12489_v4 }
 0x24e   : > { %v2619_v10 = vadd.f32 %v2618_v37, %v2617_v24  ;;  %8937 = vmatprep.mubr.f32.mxu1 %v12410_v35  ;;  %v2662_v15 = vrot.slane %v2661_v31, 2 }
 0x250   : > { %v2621_v48 = vadd.f32 %v2620_v55, %v2619_v10  ;;  %v2663_v24 = vadd.f32 %v2662_v15, %v2661_v31  ;;  %v2626_v55 = vsel %vm2573_vm5, %v2612_v29, 0.0 }
 0x251   : > { %8938 = vmatmul.mubr.f32.vlgmr.msra.gmra.mrb[8].mxu1 %v12413_v23 }
 0x252   : > { %v2623_v6 = vadd.f32 %v2622_v22, %v2621_v48  ;;  %9996 = vmatpush3.bf16.msra.mxu1 %v12213_v25  ;;  %8940 = vmatprep.mubr.f32.mxu1 %v12432_v58  ;;  %v2664_v54 = vrot.slane %v2663_v24, 1 }
 0x253   : > { %9998 = vmatprep.subr.bf16.mxu1 %v12223_v5 }
 0x254   : > { %v2625_v44 = vadd.f32 %v2624_v3, %v2623_v6  ;;  %v2665_v37 = vadd.f32 %v2664_v54, %v2663_v24 }
 0x255   : > { %8941 = vmatmul.mubr.f32.gmra.mrb[10].mxu1 %v12435_v13  ;;  %v14958_v13 = vand.u32 4294901760, %v12469_v27 }
 0x256   : > { %v2627_v56 = vadd.f32 %v2626_v55, %v2625_v44  ;;  %8943 = vmatprep.mubr.f32.mxu1 %v12438_v57  ;;  %10000 = vmatpush3.bf16.msra.mxu1 %v12223_v5  ;;  %v2666_v10 = vmul.f32 0.015625, %v2665_v37 }
 0x257   : > { %10002 = vmatprep.subr.bf16.mxu1 %v12269_v43 }
 0x258   : > { %v2628_v9 = vrot.slane %v2627_v56, 4  ;;  %v12619_v0 = vsub.f32 %v12513_v41, %v2666_v10  ;;  %v12622_v48 = vsub.f32 %v12503_v20, %v2666_v10  ;;  %v12625_v29 = vsub.f32 %v12525_v14, %v2666_v10 }
 0x259   : > { %8944 = vmatmul.mubr.f32.gmra.mrb[12].mxu1 %v12469_v27  ;;  %v12628_v22 = vsub.f32 %v12520_v2, %v2666_v10  ;;  %v12631_v6 = vsub.f32 %v12533_v32, %v2666_v10  ;;  %v12634_v3 = vsub.f32 %v12531_v33, %v2666_v10  ;;  %v12637_v24 = vsub.f32 %v12542_v38, %v2666_v10 }
 0x25a   : > { %v2629_v31 = vadd.f32 %v2628_v9, %v2627_v56  ;;  %8946 = vmatprep.mubr.f32.mxu1 %v12418_v21  ;;  %v12640_v41 = vsub.f32 %v12540_v30, %v2666_v10  ;;  %v2675_v20 = vmul.f32 %v12619_v0, %v12619_v0  ;;  %v2676_v2 = vmul.f32 %v12622_v48, %v12622_v48 }
 0x25b   : > { %v2677_v14 = vmul.f32 %v12625_v29, %v12625_v29  ;;  %v2678_v33 = vmul.f32 %v12628_v22, %v12628_v22  ;;  %v2679_v54 = vmul.f32 %v12631_v6, %v12631_v6  ;;  %v2681_v23 = vmul.f32 %v12637_v24, %v12637_v24 }
 0x25c   : > { %v2630_v15 = vrot.slane %v2629_v31, 2  ;;  %v2683_v30 = vsel %vm2573_vm5, %v2675_v20, 0.0  ;;  %v2684_v38 = vsel %vm2573_vm5, %v2676_v2, 0.0 }
 0x25d   : > { %8947 = vmatmul.mubr.f32.gmra.mrb[14].mxu1 %v12509_v59  ;;  %v2685_v55 = vadd.f32 %v2684_v38, %v2683_v30  ;;  %v2686_v56 = vsel %vm2573_vm5, %v2677_v14, 0.0  ;;  %v2688_v9 = vsel %vm2573_vm5, %v2678_v33, 0.0  ;;  %v2694_v14 = vsel %vm2573_vm5, %v2681_v23, 0.0 }
 0x25e   : > { %v2631_v32 = vadd.f32 %v2630_v15, %v2629_v31  ;;  %8957 = vmatprep.mubr.f32.mxu1 %v2884_v26  ;;  %v2680_v26 = vmul.f32 %v12634_v3, %v12634_v3  ;;  %v2682_v15 = vmul.f32 %v12640_v41, %v12640_v41  ;;  %v14960_v33 = vand.u32 4294901760, %v12509_v59 }
 0x25f   : > { %v2687_v35 = vadd.f32 %v2686_v56, %v2685_v55 }
 0x260   : > { %v2632_v44 = vrot.slane %v2631_v32, 1  ;;  %v2692_v20 = vsel %vm2573_vm5, %v2680_v26, 0.0 }
 0x261   : > { %8958 = vmatmul.mubr.f32.vlgmr.msra.gmra.mrb[8].mxu1 %v2894_v18  ;;  %v2689_v31 = vadd.f32 %v2688_v9, %v2687_v35  ;;  %v2690_v18 = vsel %vm2573_vm5, %v2679_v54, 0.0 }
 0x262   : > { %v2633_v37 = vadd.f32 %v2632_v44, %v2631_v32  ;;  %10004 = vmatpush3.bf16.msra.mxu1 %v12269_v43  ;;  %8960 = vmatprep.mubr.f32.mxu1 %v2904_v34  ;;  %v14957_v34 = vand.u32 4294901760, %v12438_v57  ;;  %v14959_v57 = vand.u32 4294901760, %v12418_v21 }
 0x263   : > { %10006 = vmatprep.subr.bf16.mxu1 %v12321_v52  ;;  %v2691_v58 = vadd.f32 %v2690_v18, %v2689_v31 }
 0x264   : > { %v2634_v10 = vmul.f32 0.015625, %v2633_v37 }
 0x265   : > { %8961 = vmatmul.mubr.f32.gmra.mrb[10].mxu1 %v2914_v40  ;;  %v2693_v2 = vadd.f32 %v2692_v20, %v2691_v58 }
 0x266   : > { %v2635_v43 = vadd.f32 1e-05, %v2634_v10  ;;  %8963 = vmatprep.mubr.f32.mxu1 %v14957_v34  ;;  %10008 = vmatpush3.bf16.msra.mxu1 %v12321_v52  ;;  %v2696_v52 = vsel %vm2573_vm5, %v2682_v15, 0.0 }
 0x267   : > { %10010 = vmatprep.subr.bf16.mxu1 %v12213_v25  ;;  %v2695_v40 = vadd.f32 %v2694_v14, %v2693_v2 }
 0x268   : > { %10832 = vrsqrt.f32 %v2635_v43 }
 0x269   : > { %8964 = vmatmul.mubr.f32.gmra.mrb[12].mxu1 %v14958_v13  ;;  %v2697_v32 = vadd.f32 %v2696_v52, %v2695_v40 }
 0x26a   : > { %8966 = vmatprep.mubr.f32.mxu1 %v14959_v57 }
 0x26b   : > { %v2698_v30 = vrot.slane %v2697_v32, 4 }
 0x26d   : > { %8967 = vmatmul.mubr.f32.gmra.mrb[14].mxu1 %v14960_v33  ;;  %v2699_v38 = vadd.f32 %v2698_v30, %v2697_v32 }
 0x26e   : > { %8977 = vmatprep.mubr.f32.mxu1 %v12400_v50 }
 0x26f   : > { %v2700_v55 = vrot.slane %v2699_v38, 2 }
 0x271   : > { %8978 = vmatmul.mubr.f32.vlgmr.msra.gmra.mrb[8].mxu1 %v12402_v46  ;;  %v2701_v56 = vadd.f32 %v2700_v55, %v2699_v38 }
 0x272   : > { %v10833_v44 = vpop.eup %10832  ;;  %10012 = vmatpush3.bf16.msra.mxu1 %v12213_v25  ;;  %8980 = vmatprep.mubr.f32.mxu1 %v12415_v1 }
 0x273   : > { %v2643_v21 = vmul.f32 %v10833_v44, %v12570_v49  ;;  %10014 = vmatprep.subr.bf16.mxu1 %v12223_v5  ;;  %v2637_v27 = vmul.f32 %v10833_v44, %v12551_v12  ;;  %v2638_v59 = vmul.f32 %v10833_v44, %v12554_v42  ;;  %v2639_v54 = vmul.f32 %v10833_v44, %v12557_v53 }
 0x274   : > { %v2640_v37 = vmul.f32 %v10833_v44, %v12560_v16  ;;  %v2641_v35 = vmul.f32 %v10833_v44, %v12564_v51  ;;  %v2642_v26 = vmul.f32 %v10833_v44, %v12567_v62  ;;  %v2702_v53 = vrot.slane %v2701_v56, 1 }
 0x275   : > { %v4440_v25 = vsel %vm2573_vm5, %v2643_v21, 0  ;;  %8981 = vmatmul.mubr.f32.gmra.mrb[10].mxu1 %v12422_v28  ;;  %v4422_v49 = vsel %vm2573_vm5, %v2637_v27, 0  ;;  %v4425_v9 = vsel %vm2573_vm5, %v2638_v59, 0  ;;  %v4428_v12 = vsel %vm2573_vm5, %v2639_v54, 0 }
 0x276   : > { %v12704_v42 = vand.u32 4294901760, %v4440_v25  ;;  %8983 = vmatprep.mubr.f32.mxu1 %v12424_v60  ;;  %v12707_v16 = vand.u32 4294901760, %v4422_v49  ;;  %10016 = vmatpush3.bf16.msra.mxu1 %v12223_v5  ;;  %v12710_v51 = vand.u32 4294901760, %v4425_v9  ;;  %v12712_v62 = vand.u32 4294901760, %v4428_v12 }
 0x277   : > { %v4431_v10 = vsel %vm2573_vm5, %v2640_v37, 0  ;;  %v4434_v31 = vsel %vm2573_vm5, %v2641_v35, 0  ;;  %10018 = vmatprep.subr.bf16.mxu1 %v12371_v61  ;;  %v4437_v23 = vsel %vm2573_vm5, %v2642_v26, 0  ;;  %v2703_v18 = vadd.f32 %v2702_v53, %v2701_v56 }
 0x278   : > { %9157 = vmatprep.mubr.f32.mxu0 %v12707_v16  ;;  %v12719_v43 = vand.u32 4294901760, %v4431_v10  ;;  %v12721_v58 = vand.u32 4294901760, %v4434_v31  ;;  %v12723_v5 = vand.u32 4294901760, %v4437_v23  ;;  %v2644_v34 = vmul.f32 %v10833_v44, %v12573_v11 }
 0x279   : > { %8984 = vmatmul.mubr.f32.gmra.mrb[12].mxu1 %v12440_v8  ;;  %9158 = vmatmul.mubr.f32.vlgmr.msra.gmra.mrb[16].mxu0 %v12710_v51  ;;  %v12729_v15 = vsub.f32 %v4422_v49, %v12707_v16  ;;  %v12732_v20 = vsub.f32 %v4425_v9, %v12710_v51  ;;  %v2704_v2 = vmul.f32 0.015625, %v2703_v18  ;;  %v12737_v14 = vsub.f32 %v4428_v12, %v12712_v62 }
 0x27a   : > { %8986 = vmatprep.mubr.f32.mxu1 %v12396_v36  ;;  %9160 = vmatprep.mubr.f32.mxu0 %v12712_v62  ;;  %v12740_v13 = vsub.f32 %v4431_v10, %v12719_v43  ;;  %v12743_v40 = vsub.f32 %v4434_v31, %v12721_v58  ;;  %v4443_v11 = vsel %vm2573_vm5, %v2644_v34, 0  ;;  %v12748_v57 = vsub.f32 %v4437_v23, %v12723_v5 }
 0x27b   : > { %10084 = vmatpush3.bf16.msra.mxu0 %v12364_v63  ;;  %v12751_v52 = vsub.f32 %v4440_v25, %v12704_v42  ;;  %v4516_v32 = vand.u32 4294901760, %v12729_v15  ;;  %v2705_v33 = vadd.f32 1e-05, %v2704_v2  ;;  %v12754_v30 = vand.u32 4294901760, %v4443_v11 }
 0x27c   : > { %10086 = vmatprep.subr.bf16.mxu0 %v12377_v39  ;;  %v4526_v38 = vand.u32 4294901760, %v12732_v20  ;;  %v4536_v44 = vand.u32 4294901760, %v12737_v14  ;;  %v4546_v55 = vand.u32 4294901760, %v12740_v13  ;;  %v14700_v21 = vand.u32 4294901760, %v12743_v40 }
 0x27d   : > { %8987 = vmatmul.mubr.f32.gmra.mrb[14].mxu1 %v12489_v4  ;;  %9161 = vmatmul.mubr.f32.gmra.mrb[18].mxu0 %v12719_v43  ;;  %v14699_v27 = vand.u32 4294901760, %v12748_v57  ;;  %v14696_v59 = vand.u32 4294901760, %v12751_v52  ;;  %10834 = vrsqrt.f32 %v2705_v33  ;;  %v12768_v54 = vsub.f32 %v4443_v11, %v12754_v30 }
 0x27e   : > { %8997 = vmatprep.mubr.f32.mxu1 %v12400_v50  ;;  %9163 = vmatprep.mubr.f32.mxu0 %v12721_v58  ;;  %v12773_v56 = vsub.f32 %v12729_v15, %v4516_v32  ;;  %v12778_v37 = vsub.f32 %v12732_v20, %v4526_v38  ;;  %v12784_v50 = vsub.f32 %v12737_v14, %v4536_v44 }
 0x27f   : > { %10088 = vmatpush3.bf16.msra.mxu0 %v12377_v39  ;;  %v12789_v35 = vsub.f32 %v12740_v13, %v4546_v55  ;;  %v12794_v26 = vsub.f32 %v12743_v40, %v14700_v21  ;;  %v12799_v25 = vsub.f32 %v12748_v57, %v14699_v27  ;;  %v14695_v49 = vand.u32 4294901760, %v12768_v54 }
 0x280   : > { %10090 = vmatprep.subr.bf16.mxu0 %v12371_v61  ;;  %v12806_v9 = vsub.f32 %v12751_v52, %v14696_v59 }
 0x281   : > { %8998 = vmatmul.mubr.f32.vlgmr.msra.gmra.mrb[8].mxu1 %v12402_v46  ;;  %9164 = vmatmul.mubr.f32.gmra.mrb[20].mxu0 %v12723_v5  ;;  %v12815_v12 = vsub.f32 %v12768_v54, %v14695_v49 }
 0x282   : > { %10020 = vmatpush3.bf16.msra.mxu1 %v12371_v61  ;;  %9000 = vmatprep.mubr.f32.mxu1 %v12415_v1 }
 0x283   : > { %9166 = vmatprep.mubr.f32.mxu0 %v12704_v42  ;;  %10022 = vmatprep.subr.bf16.mxu1 %v12373_v19 }
 0x285   : > { %9001 = vmatmul.mubr.f32.gmra.mrb[10].mxu1 %v12422_v28  ;;  %9167 = vmatmul.mubr.f32.gmra.mrb[22].mxu0 %v12754_v30 }
 0x286   : > { %9003 = vmatprep.mubr.f32.mxu1 %v12424_v60  ;;  %9177 = vmatprep.mubr.f32.mxu0 %v12729_v15 }
 0x287   : > { %10024 = vmatpush3.bf16.msra.mxu1 %v12373_v19  ;;  %v10835_v46 = vpop.eup %10834 }
 0x288   : > { %10026 = vmatprep.subr.bf16.mxu1 %v12346_v7  ;;  %v2713_v1 = vmul.f32 %v10835_v46, %v12637_v24  ;;  %v2707_v53 = vmul.f32 %v10835_v46, %v12619_v0  ;;  %v2708_v28 = vmul.f32 %v10835_v46, %v12622_v48  ;;  %v2709_v60 = vmul.f32 %v10835_v46, %v12625_v29 }
 0x289   : > { %9004 = vmatmul.mubr.f32.gmra.mrb[12].mxu1 %v12440_v8  ;;  %9178 = vmatmul.mubr.f32.vlgmr.msra.gmra.mrb[16].mxu0 %v12732_v20  ;;  %v2710_v10 = vmul.f32 %v10835_v46, %v12628_v22  ;;  %v2711_v31 = vmul.f32 %v10835_v46, %v12631_v6  ;;  %v2712_v0 = vmul.f32 %v10835_v46, %v12634_v3 }
 0x28a   : > { %9006 = vmatprep.mubr.f32.mxu1 %v12396_v36  ;;  %9180 = vmatprep.mubr.f32.mxu0 %v12737_v14  ;;  %v3622_v24 = vsel %vm2573_vm5, %v2713_v1, 0  ;;  %v3604_v8 = vsel %vm2573_vm5, %v2707_v53, 0  ;;  %v3607_v23 = vsel %vm2573_vm5, %v2708_v28, 0  ;;  %v3610_v29 = vsel %vm2573_vm5, %v2709_v60, 0 }
 0x28b   : > { %10092 = vmatpush3.bf16.msra.mxu0 %v12371_v61  ;;  %v12840_v48 = vand.u32 4294901760, %v3604_v8  ;;  %v12842_v36 = vand.u32 4294901760, %v3607_v23  ;;  %v12848_v22 = vand.u32 4294901760, %v3610_v29  ;;  %v3613_v6 = vsel %vm2573_vm5, %v2710_v10, 0 }
 0x28c   : > { %10094 = vmatprep.subr.bf16.mxu0 %v12373_v19  ;;  %v3616_v18 = vsel %vm2573_vm5, %v2711_v31, 0  ;;  %v3619_v3 = vsel %vm2573_vm5, %v2712_v0, 0  ;;  %v12853_v34 = vand.u32 4294901760, %v3622_v24  ;;  %v2714_v28 = vmul.f32 %v10835_v46, %v12640_v41 }
 0x28d   : > { %9007 = vmatmul.mubr.f32.gmra.mrb[14].mxu1 %v12489_v4  ;;  %9181 = vmatmul.mubr.f32.gmra.mrb[18].mxu0 %v12740_v13  ;;  %v12857_v2 = vsub.f32 %v3604_v8, %v12840_v48  ;;  %v12860_v11 = vsub.f32 %v3607_v23, %v12842_v36  ;;  %v12862_v4 = vand.u32 4294901760, %v3613_v6  ;;  %v12865_v33 = vsub.f32 %v3610_v29, %v12848_v22 }
 0x28e   : > { %9183 = vmatprep.mubr.f32.mxu0 %v12743_v40  ;;  %v12867_v1 = vand.u32 4294901760, %v3616_v18  ;;  %v12870_v53 = vand.u32 4294901760, %v3619_v3  ;;  %v3625_v41 = vsel %vm2573_vm5, %v2714_v28, 0  ;;  %v12889_v46 = vsub.f32 %v3622_v24, %v12853_v34 }
 0x28f   : > { %10096 = vmatpush3.bf16.msra.mxu0 %v12373_v19  ;;  %v14697_v60 = vand.u32 4294901760, %v12857_v2  ;;  %v14698_v10 = vand.u32 4294901760, %v12860_v11  ;;  %v12876_v31 = vsub.f32 %v3613_v6, %v12862_v4  ;;  %v14701_v8 = vand.u32 4294901760, %v12865_v33 }
 0x290   : > { %10098 = vmatprep.subr.bf16.mxu0 %v12481_v47  ;;  %v12882_v23 = vsub.f32 %v3616_v18, %v12867_v1  ;;  %v12885_v0 = vsub.f32 %v3619_v3, %v12870_v53  ;;  %v12903_v24 = vand.u32 4294901760, %v3625_v41  ;;  %v14964_v13 = vand.u32 4294901760, %v12768_v54 }
 0x291   : > { %9184 = vmatmul.mubr.f32.gmra.mrb[20].mxu0 %v12748_v57  ;;  %v3699_v29 = vsub.f32 %v12857_v2, %v14697_v60  ;;  %v3709_v6 = vsub.f32 %v12860_v11, %v14698_v10  ;;  %v3728_v18 = vand.u32 4294901760, %v12876_v31  ;;  %v3719_v3 = vsub.f32 %v12865_v33, %v14701_v8 }
 0x292   : > { %9186 = vmatprep.mubr.f32.mxu0 %v12751_v52  ;;  %v3738_v28 = vand.u32 4294901760, %v12882_v23  ;;  %v3748_v10 = vand.u32 4294901760, %v12885_v0  ;;  %v12911_v27 = vsub.f32 %v3625_v41, %v12903_v24 }
 0x293   : > { %v3700_v49 = vand.u32 4294901760, %v3699_v29  ;;  %v3710_v59 = vand.u32 4294901760, %v3709_v6  ;;  %v3729_v60 = vsub.f32 %v12876_v31, %v3728_v18  ;;  %v3720_v21 = vand.u32 4294901760, %v3719_v3 }
 0x294   : > { %v3739_v8 = vsub.f32 %v12882_v23, %v3738_v28  ;;  %v3758_v29 = vand.u32 4294901760, %v12889_v46  ;;  %v3768_v41 = vand.u32 4294901760, %v12911_v27 }
 0x295   : > { %9187 = vmatmul.mubr.f32.gmra.mrb[22].mxu0 %v12768_v54  ;;  %9017 = vmatprep.mubr.f32.mxu1 %v3700_v49  ;;  %v3730_v6 = vand.u32 4294901760, %v3729_v60  ;;  %v3749_v49 = vsub.f32 %v12885_v0, %v3748_v10 }
 0x296   : > { %9197 = vmatprep.mubr.f32.mxu0 %v4516_v32  ;;  %9018 = vmatmul.mubr.f32.vlgmr.msra.gmra.mrb[16].mxu1 %v3710_v59  ;;  %v3740_v15 = vand.u32 4294901760, %v3739_v8  ;;  %v3759_v32 = vsub.f32 %v12889_v46, %v3758_v29  ;;  %v3769_v20 = vsub.f32 %v12911_v27, %v3768_v41  ;;  %v13076_v59 = vld [vmem:[%s14596_s6 + $0x28] sm:$0xff] }
 0x297   : > { %10028 = vmatpush3.bf16.msra.mxu1 %v12346_v7  ;;  %9020 = vmatprep.mubr.f32.mxu1 %v3720_v21  ;;  %v3750_v7 = vand.u32 4294901760, %v3749_v49  ;;  %v14963_v21 = vand.u32 4294901760, %v12751_v52 }
 0x298   : > { %10030 = vmatprep.subr.bf16.mxu1 %v12358_v17  ;;  %v3760_v14 = vand.u32 4294901760, %v3759_v32  ;;  %v13216_v32 = vld [vmem:[%s14597_s7 + $0x20] sm:$0xff] }
 0x299   : > { %9198 = vmatmul.mubr.f32.vlgmr.msra.gmra.mrb[16].mxu0 %v4526_v38  ;;  %v14961_v38 = vand.u32 4294901760, %v12743_v40  ;;  %v13058_v40 = vld [vmem:[%s14596_s6 + $0x10] sm:$0xff] }
 0x29a   : > { %9200 = vmatprep.mubr.f32.mxu0 %v4536_v44  ;;  %10100 = vmatpush3.bf16.msra.mxu0 %v12481_v47  ;;  %v14962_v44 = vand.u32 4294901760, %v12748_v57 }
 0x29b   : > { %9021 = vmatmul.mubr.f32.gmra.mrb[18].mxu1 %v3730_v6  ;;  %10102 = vmatprep.subr.bf16.mxu0 %v12499_v45  ;;  %v13201_v6 = vld [vmem:[%s14596_s6 + $0x68] sm:$0xff] }
 0x29c   : > { %9023 = vmatprep.mubr.f32.mxu1 %v3740_v15  ;;  %10032 = vmatpush3.bf16.msra.mxu1 %v12358_v17  ;;  %v3770_v17 = vand.u32 4294901760, %v3769_v20  ;;  %v14714_v15 = vand.u32 4294901760, %v13201_v6 }
 0x29d   : > { %9201 = vmatmul.mubr.f32.gmra.mrb[18].mxu0 %v4546_v55  ;;  %10034 = vmatprep.subr.bf16.mxu1 %v12364_v63  ;;  %v5262_v55 = vand.u32 4294901760, %v13058_v40 }
 0x29e   : > { %9203 = vmatprep.mubr.f32.mxu0 %v14961_v38  ;;  %10104 = vmatpush3.bf16.msra.mxu0 %v12499_v45 }
 0x29f   : > { %9024 = vmatmul.mubr.f32.gmra.mrb[20].mxu1 %v3750_v7  ;;  %10106 = vmatprep.subr.bf16.mxu0 %v12371_v61  ;;  %v13221_v7 = vld [vmem:[%s14597_s7 + $0x28] sm:$0xff] }
 0x2a0   : > { %9026 = vmatprep.mubr.f32.mxu1 %v3760_v14  ;;  %v14713_v14 = vand.u32 4294901760, %v13216_v32  ;;  %v14708_v38 = vand.u32 4294901760, %v13221_v7 }
 0x2a1   : > { %9204 = vmatmul.mubr.f32.gmra.mrb[20].mxu0 %v14962_v44  ;;  %v13239_v44 = vld [vmem:[%s14596_s6 + $0x70] sm:$0xff] }
 0x2a2   : > { %9206 = vmatprep.mubr.f32.mxu0 %v14963_v21  ;;  %v13244_v21 = vld [vmem:[%s14596_s6 + $0x78] sm:$0xff] }
 0x2a3   : > { %9027 = vmatmul.mubr.f32.gmra.mrb[22].mxu1 %v3770_v17 }
 0x2a4   : > { %9037 = vmatprep.mubr.f32.mxu1 %v12840_v48 }
 0x2a5   : > { %9207 = vmatmul.mubr.f32.gmra.mrb[22].mxu0 %v14964_v13 }
 0x2a6   : > { %9217 = vmatprep.mubr.f32.mxu0 %v12707_v16 }
 0x2a7   : > { %9038 = vmatmul.mubr.f32.vlgmr.msra.gmra.mrb[16].mxu1 %v12842_v36 }
 0x2a8   : > { %10036 = vmatpush3.bf16.msra.mxu1 %v12364_v63  ;;  %9040 = vmatprep.mubr.f32.mxu1 %v12848_v22  ;;  %v14965_v63 = vand.u32 4294901760, %v12857_v2 }
 0x2a9   : > { %10038 = vmatprep.subr.bf16.mxu1 %v12377_v39  ;;  %9218 = vmatmul.mubr.f32.vlgmr.msra.gmra.mrb[16].mxu0 %v12710_v51 }
 0x2aa   : > { %9220 = vmatprep.mubr.f32.mxu0 %v12712_v62  ;;  %10108 = vmatpush3.bf16.msra.mxu0 %v12371_v61 }
 0x2ab   : > { %9041 = vmatmul.mubr.f32.gmra.mrb[18].mxu1 %v12862_v4  ;;  %10110 = vmatprep.subr.bf16.mxu0 %v12373_v19 }
 0x2ac   : > { %9043 = vmatprep.mubr.f32.mxu1 %v12867_v1  ;;  %10040 = vmatpush3.bf16.msra.mxu1 %v12377_v39  ;;  %v14966_v39 = vand.u32 4294901760, %v12860_v11 }
 0x2ad   : > { %9221 = vmatmul.mubr.f32.gmra.mrb[18].mxu0 %v12719_v43  ;;  %10042 = vmatprep.subr.bf16.mxu1 %v12371_v61 }
 0x2ae   : > { %9223 = vmatprep.mubr.f32.mxu0 %v12721_v58  ;;  %10112 = vmatpush3.bf16.msra.mxu0 %v12373_v19 }
 0x2af   : > { %9044 = vmatmul.mubr.f32.gmra.mrb[20].mxu1 %v12870_v53 }
 0x2b0   : > { %9046 = vmatprep.mubr.f32.mxu1 %v12853_v34 }
 0x2b1   : > { %9224 = vmatmul.mubr.f32.gmra.mrb[20].mxu0 %v12723_v5 }
 0x2b2   : > { %9226 = vmatprep.mubr.f32.mxu0 %v12704_v42 }
 0x2b3   : > { %9047 = vmatmul.mubr.f32.gmra.mrb[22].mxu1 %v12903_v24 }
 0x2b4   : > { %9057 = vmatprep.mubr.f32.mxu1 %v12857_v2 }
 0x2b5   : > { %9227 = vmatmul.mubr.f32.gmra.mrb[22].mxu0 %v12754_v30 }
 0x2b6   : > { %9237 = vmatprep.mubr.f32.mxu0 %v12707_v16  ;;  %v14967_v16 = vand.u32 4294901760, %v12865_v33 }
 0x2b7   : > { %9058 = vmatmul.mubr.f32.vlgmr.msra.gmra.mrb[16].mxu1 %v12860_v11 }
 0x2b8   : > { %10044 = vmatpush3.bf16.msra.mxu1 %v12371_v61  ;;  %9060 = vmatprep.mubr.f32.mxu1 %v12865_v33  ;;  %v13146_v33 = vld [vmem:[%s14597_s7] sm:$0xff] }
 0x2b9   : > { %10046 = vmatprep.subr.bf16.mxu1 %v12373_v19  ;;  %9238 = vmatmul.mubr.f32.vlgmr.msra.gmra.mrb[16].mxu0 %v12710_v51  ;;  %v4558_v51 = vand.u32 4294901760, %v12794_v26  ;;  %v13094_v26 = vld [vmem:[%s14596_s6 + $0x30] sm:$0xff] }
 0x2ba   : > { %9240 = vmatprep.mubr.f32.mxu0 %v12712_v62  ;;  %v4578_v62 = vand.u32 4294901760, %v12806_v9 }
 0x2bb   : > { %9061 = vmatmul.mubr.f32.gmra.mrb[18].mxu1 %v12876_v31  ;;  %v13163_v31 = vld [vmem:[%s14596_s6 + $0x58] sm:$0xff] }
 0x2bc   : > { %9063 = vmatprep.mubr.f32.mxu1 %v12882_v23  ;;  %10048 = vmatpush3.bf16.msra.mxu1 %v12373_v19 }
 0x2bd   : > { %9241 = vmatmul.mubr.f32.gmra.mrb[18].mxu0 %v12719_v43  ;;  %10050 = vmatprep.subr.bf16.mxu1 %v12481_v47  ;;  %v4588_v43 = vand.u32 4294901760, %v12815_v12  ;;  %v5274_v12 = vand.u32 4294901760, %v13094_v26 }
 0x2be   : > { %9243 = vmatprep.mubr.f32.mxu0 %v12721_v58  ;;  %v13048_v58 = vld [vmem:[%s14596_s6] sm:$0xff] }
 0x2bf   : > { %9064 = vmatmul.mubr.f32.gmra.mrb[20].mxu1 %v12885_v0  ;;  %v5256_v57 = vand.u32 4294901760, %v13048_v58  ;;  %v14726_v0 = vand.u32 4294901760, %v13163_v31 }
 0x2c0   : > { %9066 = vmatprep.mubr.f32.mxu1 %v12889_v46  ;;  %v13176_v46 = vld [vmem:[%s14597_s7 + $0x10] sm:$0xff] }
 0x2c1   : > { %9244 = vmatmul.mubr.f32.gmra.mrb[20].mxu0 %v12723_v5  ;;  %v13053_v5 = vld [vmem:[%s14596_s6 + $0x8] sm:$0xff]  ;;  %v13233_v17 = vsub.f32 %v13048_v58, %v5256_v57 }
 0x2c2   : > { %9246 = vmatprep.mubr.f32.mxu0 %v12704_v42  ;;  %v4548_v42 = vand.u32 4294901760, %v12789_v35  ;;  %v5259_v52 = vand.u32 4294901760, %v13053_v5 }
 0x2c3   : > { %9067 = vmatmul.mubr.f32.gmra.mrb[22].mxu1 %v12911_v27  ;;  %v13071_v27 = vld [vmem:[%s14596_s6 + $0x20] sm:$0xff]  ;;  %14977 = vst [vmem:[#allocation5_spill] sm:$0xff] %v13233_v17 }
 0x2c4   : > { %9077 = vmatprep.mubr.f32.mxu1 %v14965_v63  ;;  %v13249_v13 = vsub.f32 %v13053_v5, %v5259_v52  ;;  %v13256_v63 = vpack.c.bf16 %v14708_v38, %v14713_v14  ;;  %v13292_v5 = vsub.f32 %v13058_v40, %v5262_v55  ;;  %v13310_v40 = vld [vmem:[%s14597_s7 + $0x40] sm:$0xff]  ;;  %v13375_v14 = vsub.f32 %v13094_v26, %v5274_v12 }
 0x2c5   : > { %9247 = vmatmul.mubr.f32.gmra.mrb[22].mxu0 %v12754_v30  ;;  %v13065_v30 = vld [vmem:[%s14596_s6 + $0x18] sm:$0xff]  ;;  %v13393_v26 = vld [vmem:[%s14597_s7 + $0x60] sm:$0xff] }
 0x2c6   : > { %v5265_v54 = vand.u32 4294901760, %v13065_v30  ;;  %14978 = vst [vmem:[#allocation6_spill] sm:$0xff] %v13249_v13  ;;  %14979 = vst [vmem:[#allocation44_spill] sm:$0xff] %v13256_v63 }
 0x2c7   : > { %9078 = vmatmul.mubr.f32.vlgmr.msra.gmra.mrb[16].mxu1 %v14966_v39  ;;  %v14707_v39 = vand.u32 4294901760, %v13239_v44  ;;  %14981 = vst [vmem:[#allocation7_spill] sm:$0xff] %v13292_v5  ;;  %14987 = vst [vmem:[#allocation14_spill] sm:$0xff] %v13375_v14 }
 0x2c8   : > { %10052 = vmatpush3.bf16.msra.mxu1 %v12481_v47  ;;  %9080 = vmatprep.mubr.f32.mxu1 %v14967_v16  ;;  %v4518_v47 = vand.u32 4294901760, %v12773_v56  ;;  %v13081_v56 = vpack.c.bf16 %v5259_v52, %v5256_v57  ;;  %v13089_v35 = vpack.c.bf16 %v5265_v54, %v5262_v55  ;;  %v14706_v16 = vand.u32 4294901760, %v13244_v21 }
 0x2c9   : > { %10054 = vmatprep.subr.bf16.mxu1 %v12499_v45  ;;  %v13297_v57 = vsub.f32 %v13065_v30, %v5265_v54  ;;  %v13315_v30 = vld [vmem:[%s14597_s7 + $0x48] sm:$0xff]  ;;  %v14710_v55 = vand.u32 4294901760, %v13292_v5 }
 0x2ca   : > { %14968 = vst [vmem:[#allocation29_spill] sm:$0xff] %v13081_v56  ;;  %14969 = vst [vmem:[#allocation2_spill] sm:$0xff] %v13089_v35 }
 0x2cb   : > { %9081 = vmatmul.mubr.f32.gmra.mrb[18].mxu1 %v3728_v18  ;;  %v13181_v18 = vld [vmem:[%s14597_s7 + $0x18] sm:$0xff]  ;;  %14982 = vst [vmem:[#allocation8_spill] sm:$0xff] %v13297_v57  ;;  %v14709_v54 = vand.u32 4294901760, %v13297_v57 }
 0x2cc   : > { %9083 = vmatprep.mubr.f32.mxu1 %v3738_v28  ;;  %10056 = vmatpush3.bf16.msra.mxu1 %v12499_v45  ;;  %v4538_v45 = vand.u32 4294901760, %v12784_v50  ;;  %v5271_v50 = vand.u32 4294901760, %v13076_v59  ;;  %v14723_v28 = vand.u32 4294901760, %v13176_v46 }
 0x2cd   : > { %10058 = vmatprep.subr.bf16.mxu1 %v12371_v61  ;;  %v5441_v38 = vsub.f32 %v13297_v57, %v14709_v54  ;;  %v13358_v54 = vld [vmem:[%s14597_s7 + $0x58] sm:$0xff] }
 0x2cf   : > { %9084 = vmatmul.mubr.f32.gmra.mrb[20].mxu1 %v3748_v10  ;;  %v13158_v10 = vld [vmem:[%s14596_s6 + $0x50] sm:$0xff] }
 0x2d0   : > { %9086 = vmatprep.mubr.f32.mxu1 %v3758_v29  ;;  %v14727_v23 = vand.u32 4294901760, %v13158_v10  ;;  %v13196_v29 = vld [vmem:[%s14596_s6 + $0x60] sm:$0xff] }
 0x2d2   : > { %v13188_v3 = vpack.c.bf16 %v14726_v0, %v14727_v23 }
 0x2d3   : > { %9087 = vmatmul.mubr.f32.gmra.mrb[22].mxu1 %v3768_v41  ;;  %v14717_v41 = vand.u32 4294901760, %v13196_v29 }
 0x2d4   : > { %9097 = vmatprep.mubr.f32.mxu1 %v12840_v48  ;;  %14974 = vst [vmem:[#allocation39_spill] sm:$0xff] %v13188_v3 }
 0x2d5   : > { %v13228_v20 = vpack.c.bf16 %v14714_v15, %v14717_v41 }
 0x2d7   : > { %9098 = vmatmul.mubr.f32.vlgmr.msra.gmra.mrb[16].mxu1 %v12842_v36  ;;  %14976 = vst [vmem:[#allocation38_spill] sm:$0xff] %v13228_v20 }
 0x2d8   : > { %10060 = vmatpush3.bf16.msra.mxu1 %v12371_v61  ;;  %9100 = vmatprep.mubr.f32.mxu1 %v12848_v22 }
 0x2d9   : > { %10062 = vmatprep.subr.bf16.mxu1 %v12373_v19 }
 0x2db   : > { %9101 = vmatmul.mubr.f32.gmra.mrb[18].mxu1 %v12862_v4 }
 0x2dc   : > { %9103 = vmatprep.mubr.f32.mxu1 %v12867_v1  ;;  %10064 = vmatpush3.bf16.msra.mxu1 %v12373_v19 }
 0x2dd   : > { %10066 = vmatprep.subr.bf16.mxu1 %v12371_v61 }
 0x2df   : > { %9104 = vmatmul.mubr.f32.gmra.mrb[20].mxu1 %v12870_v53 }
 0x2e0   : > { %9106 = vmatprep.mubr.f32.mxu1 %v12853_v34 }
 0x2e3   : > { %9107 = vmatmul.mubr.f32.gmra.mrb[22].mxu1 %v12903_v24 }
 0x2e4   : > { %9117 = vmatprep.mubr.f32.mxu1 %v12840_v48 }
 0x2e7   : > { %9118 = vmatmul.mubr.f32.vlgmr.msra.gmra.mrb[16].mxu1 %v12842_v36  ;;  %v13115_v36 = vld [vmem:[%s14596_s6 + $0x40] sm:$0xff] }
 0x2e8   : > { %10068 = vmatpush3.bf16.msra.mxu1 %v12371_v61  ;;  %9120 = vmatprep.mubr.f32.mxu1 %v12848_v22  ;;  %v4528_v61 = vand.u32 4294901760, %v12778_v37  ;;  %v5268_v37 = vand.u32 4294901760, %v13071_v27  ;;  %v13120_v22 = vld [vmem:[%s14596_s6 + $0x48] sm:$0xff]  ;;  %v5280_v2 = vand.u32 4294901760, %v13115_v36 }
 0x2e9   : > { %10070 = vmatprep.subr.bf16.mxu1 %v12373_v19  ;;  %v5283_v11 = vand.u32 4294901760, %v13120_v22 }
 0x2ea   : > { %v13108_v9 = vpack.c.bf16 %v5271_v50, %v5268_v37 }
 0x2eb   : > { %9121 = vmatmul.mubr.f32.gmra.mrb[18].mxu1 %v12862_v4  ;;  %v13138_v4 = vpack.c.bf16 %v5283_v11, %v5280_v2 }
 0x2ec   : > { %9123 = vmatprep.mubr.f32.mxu1 %v12867_v1  ;;  %10072 = vmatpush3.bf16.msra.mxu1 %v12373_v19  ;;  %v4568_v19 = vand.u32 4294901760, %v12799_v25  ;;  %v13099_v25 = vld [vmem:[%s14596_s6 + $0x38] sm:$0xff]  ;;  %14970 = vst [vmem:[#allocation31_spill] sm:$0xff] %v13108_v9  ;;  %v13151_v1 = vld [vmem:[%s14597_s7 + $0x8] sm:$0xff] }
 0x2ed   : > { %10114 = vmatprep.subr.bf16.mxu1 %v13081_v56  ;;  %v5277_v48 = vand.u32 4294901760, %v13099_v25  ;;  %14972 = vst [vmem:[#allocation3_spill] sm:$0xff] %v13138_v4  ;;  %v6217_v60 = vand.u32 4294901760, %v13151_v1 }
 0x2ef   : > { %9124 = vmatmul.mubr.f32.gmra.mrb[20].mxu1 %v12870_v53  ;;  %v6214_v53 = vand.u32 4294901760, %v13146_v33  ;;  %v13380_v15 = vsub.f32 %v13099_v25, %v5277_v48  ;;  %v13398_v25 = vld [vmem:[%s14597_s7 + $0x68] sm:$0xff] }
 0x2f0   : > { %9126 = vmatprep.mubr.f32.mxu1 %v12853_v34  ;;  %v13128_v34 = vpack.c.bf16 %v5277_v48, %v5274_v12  ;;  %v14721_v12 = vand.u32 4294901760, %v13375_v14 }
 0x2f1   : > { %v13169_v8 = vpack.c.bf16 %v6217_v60, %v6214_v53  ;;  %14988 = vst [vmem:[#allocation15_spill] sm:$0xff] %v13380_v15  ;;  %v14722_v48 = vand.u32 4294901760, %v13380_v15 }
 0x2f2   : > { %14971 = vst [vmem:[#allocation33_spill] sm:$0xff] %v13128_v34 }
 0x2f3   : > { %9127 = vmatmul.mubr.f32.gmra.mrb[22].mxu1 %v12903_v24  ;;  %14973 = vst [vmem:[#allocation35_spill] sm:$0xff] %v13169_v8  ;;  %10306 = vmatprep.subr.bf16.mxu0 %v13169_v8  ;;  %v14720_v24 = vand.u32 4294901760, %v13181_v18 }
 0x2f4   : > { %9137 = vmatprep.mubr.f32.mxu1 %v4518_v47  ;;  %10308 = vmatpush3.bf16.msra.mxu0 %v13169_v8  ;;  %v14702_v47 = vand.u32 4294901760, %v13233_v17 }
 0x2f5   : > { %v13208_v49 = vpack.c.bf16 %v14720_v24, %v14723_v28  ;;  %v5462_v24 = vsub.f32 %v13375_v14, %v14721_v12  ;;  %v13436_v12 = vsub.f32 %v13146_v33, %v6214_v53 }
 0x2f7   : > { %9138 = vmatmul.mubr.f32.vlgmr.msra.gmra.mrb[24].mxu1 %v4528_v61  ;;  %14975 = vst [vmem:[#allocation4_spill] sm:$0xff] %v13208_v49  ;;  %10310 = vmatprep.subr.bf16.mxu0 %v13208_v49  ;;  %v13265_v61 = vld [vmem:[%s14597_s7 + $0x30] sm:$0xff]  ;;  %14993 = vst [vmem:[#allocation20_spill] sm:$0xff] %v13436_v12 }
 0x2f8   : > { %9140 = vmatprep.mubr.f32.mxu1 %v4538_v45  ;;  %10116 = vmatpush3.bf16.msra.mxu1 %v13081_v56  ;;  %v13270_v45 = vld [vmem:[%s14597_s7 + $0x38] sm:$0xff] }
 0x2f9   : > { %10118 = vmatprep.subr.bf16.mxu1 %v13089_v35  ;;  %10312 = vmatpush3.bf16.msra.mxu0 %v13208_v49 }
 0x2fa   : > { %10314 = vmatprep.subr.bf16.mxu0 %v13256_v63 }
 0x2fb   : > { %9141 = vmatmul.mubr.f32.gmra.mrb[26].mxu1 %v4548_v42  ;;  %v14703_v42 = vand.u32 4294901760, %v13249_v13 }
 0x2fc   : > { %9143 = vmatprep.mubr.f32.mxu1 %v4558_v51  ;;  %10120 = vmatpush3.bf16.msra.mxu1 %v13089_v35  ;;  %v13278_v51 = vpack.c.bf16 %v14706_v16, %v14707_v39  ;;  %v5434_v39 = vsub.f32 %v13292_v5, %v14710_v55  ;;  %v15022_v35 = vand.u32 4294901760, %v13244_v21 }
 0x2fd   : > { %10122 = vmatprep.subr.bf16.mxu1 %v13108_v9  ;;  %10316 = vmatpush3.bf16.msra.mxu0 %v13256_v63  ;;  %v5427_v58 = vsub.f32 %v13249_v13, %v14703_v42 }
 0x2fe   : > { %14980 = vst [vmem:[#allocation9_spill] sm:$0xff] %v13278_v51 }
 0x2ff   : > { %9144 = vmatmul.mubr.f32.gmra.mrb[28].mxu1 %v4568_v19  ;;  %v14705_v19 = vand.u32 4294901760, %v13265_v61  ;;  %v5428_v42 = vand.u32 4294901760, %v5427_v58  ;;  %v14711_v58 = vand.u32 4294901760, %v13315_v30 }
 0x300   : > { %9146 = vmatprep.mubr.f32.mxu1 %v4578_v62  ;;  %10124 = vmatpush3.bf16.msra.mxu1 %v13108_v9  ;;  %v14704_v62 = vand.u32 4294901760, %v13270_v45 }
 0x301   : > { %10126 = vmatprep.subr.bf16.mxu1 %v13128_v34 }
 0x302   : > { %v13304_v52 = vpack.c.bf16 %v14704_v62, %v14705_v19  ;;  %v13325_v62 = vsub.f32 %v13071_v27, %v5268_v37  ;;  %v13330_v19 = vsub.f32 %v13076_v59, %v5271_v50  ;;  %v5435_v50 = vand.u32 4294901760, %v5434_v39 }
 0x303   : > { %9147 = vmatmul.mubr.f32.gmra.mrb[30].mxu1 %v4588_v43  ;;  %v5420_v43 = vsub.f32 %v13233_v17, %v14702_v47 }
 0x304   : > { %10128 = vmatpush3.bf16.msra.mxu1 %v13128_v34  ;;  %14983 = vst [vmem:[#allocation10_spill] sm:$0xff] %v13304_v52  ;;  %10318 = vmatprep.subr.bf16.mxu0 %v13304_v52  ;;  %14984 = vst [vmem:[#allocation11_spill] sm:$0xff] %v13325_v62  ;;  %v14715_v59 = vand.u32 4294901760, %v13325_v62  ;;  %v14716_v37 = vand.u32 4294901760, %v13330_v19 }
 0x305   : > { %10130 = vmatprep.subr.bf16.mxu1 %v13138_v4  ;;  %v5421_v47 = vand.u32 4294901760, %v5420_v43  ;;  %v14712_v43 = vand.u32 4294901760, %v13310_v40  ;;  %14985 = vst [vmem:[#allocation12_spill] sm:$0xff] %v13330_v19  ;;  %10320 = vmatpush3.bf16.msra.mxu0 %v13304_v52 }
 0x306   : > { %v5455_v39 = vsub.f32 %v13330_v19, %v14716_v37 }
 0x307   : > { %v13333_v16 = vpack.c.bf16 %v5428_v42, %v5421_v47  ;;  %v13345_v27 = vpack.c.bf16 %v14711_v58, %v14712_v43  ;;  %v5442_v47 = vand.u32 4294901760, %v5441_v38  ;;  %v13353_v42 = vld [vmem:[%s14597_s7 + $0x50] sm:$0xff]  ;;  %v14718_v58 = vand.u32 4294901760, %v13358_v54 }
 0x308   : > { %10132 = vmatpush3.bf16.msra.mxu1 %v13138_v4  ;;  %v14719_v55 = vand.u32 4294901760, %v13353_v42  ;;  %v5448_v38 = vsub.f32 %v13325_v62, %v14715_v59  ;;  %v5456_v41 = vand.u32 4294901760, %v5455_v39  ;;  %v14725_v39 = vand.u32 4294901760, %v13393_v26 }
 0x309   : > { %10134 = vmatprep.subr.bf16.mxu1 %v13188_v3  ;;  %14986 = vst [vmem:[#allocation13_spill] sm:$0xff] %v13345_v27  ;;  %10322 = vmatprep.subr.bf16.mxu0 %v13345_v27  ;;  %v13370_v43 = vpack.c.bf16 %v5442_v47, %v5435_v50 }
 0x30a   : > { %10324 = vmatpush3.bf16.msra.mxu0 %v13345_v27  ;;  %v13386_v59 = vpack.c.bf16 %v14718_v58, %v14719_v55  ;;  %v5449_v37 = vand.u32 4294901760, %v5448_v38  ;;  %v14724_v58 = vand.u32 4294901760, %v13398_v25  ;;  %v13412_v55 = vsub.f32 %v13115_v36, %v5280_v2 }
 0x30c   : > { %10136 = vmatpush3.bf16.msra.mxu1 %v13188_v3  ;;  %14989 = vst [vmem:[#allocation16_spill] sm:$0xff] %v13386_v59  ;;  %10326 = vmatprep.subr.bf16.mxu0 %v13386_v59  ;;  %v13405_v38 = vpack.c.bf16 %v5456_v41, %v5449_v37  ;;  %14990 = vst [vmem:[#allocation17_spill] sm:$0xff] %v13412_v55  ;;  %v5469_v41 = vsub.f32 %v13380_v15, %v14722_v48  ;;  %v14732_v2 = vand.u32 4294901760, %v13412_v55 }
 0x30d   : > { %10138 = vmatprep.subr.bf16.mxu1 %v13228_v20  ;;  %v13424_v37 = vsub.f32 %v13120_v22, %v5283_v11  ;;  %v13430_v36 = vpack.c.bf16 %v14724_v58, %v14725_v39  ;;  %v13441_v48 = vsub.f32 %v13151_v1, %v6217_v60  ;;  %v5463_v11 = vand.u32 4294901760, %v5462_v24  ;;  %v13448_v58 = vld [vmem:[%s14597_s7 + $0x70] sm:$0xff]  ;;  %v13453_v39 = vld [vmem:[%s14597_s7 + $0x78] sm:$0xff] }
 0x30e   : > { %10328 = vmatpush3.bf16.msra.mxu0 %v13386_v59  ;;  %v5470_v28 = vand.u32 4294901760, %v5469_v41  ;;  %v5476_v24 = vsub.f32 %v13412_v55, %v14732_v2  ;;  %v14995_v1 = vand.u32 4294901760, %v13158_v10  ;;  %v14997_v27 = vand.u32 4294901760, %v13448_v58 }
 0x30f   : > { %14991 = vst [vmem:[#allocation18_spill] sm:$0xff] %v13424_v37  ;;  %14992 = vst [vmem:[#allocation19_spill] sm:$0xff] %v13430_v36  ;;  %v14735_v33 = vand.u32 4294901760, %v13424_v37  ;;  %10330 = vmatprep.subr.bf16.mxu0 %v13430_v36  ;;  %v14998_v2 = vand.u32 4294901760, %v13453_v39 }
 0x310   : > { %10140 = vmatpush3.bf16.msra.mxu1 %v13228_v20  ;;  %14994 = vst [vmem:[#allocation21_spill] sm:$0xff] %v13441_v48  ;;  %v13466_v0 = vpack.c.bf16 %v5470_v28, %v5463_v11  ;;  %v13475_v60 = vsub.f32 %v13158_v10, %v14995_v1  ;;  %v15000_v28 = vand.u32 4294901760, %v13436_v12  ;;  %v15003_v1 = vand.u32 4294901760, %v13441_v48 }
 0x311   : > { %10142 = vmatprep.subr.bf16.mxu1 %v13278_v51  ;;  %v5483_v23 = vsub.f32 %v13424_v37, %v14735_v33  ;;  %v13481_v41 = vpack.c.bf16 %v14998_v2, %v14997_v27  ;;  %v15001_v33 = vand.u32 4294901760, %v13163_v31  ;;  %v15004_v2 = vand.u32 4294901760, %v13176_v46 }
 0x312   : > { %10332 = vmatpush3.bf16.msra.mxu0 %v13430_v36  ;;  %14996 = vst [vmem:[#allocation22_spill] sm:$0xff] %v13475_v60  ;;  %v5477_v36 = vand.u32 4294901760, %v5476_v24  ;;  %v6378_v11 = vsub.f32 %v13436_v12, %v15000_v28  ;;  %v15010_v20 = vand.u32 4294901760, %v13475_v60 }
 0x313   : > { %14999 = vst [vmem:[#allocation23_spill] sm:$0xff] %v13481_v41  ;;  %v13489_v59 = vsub.f32 %v13163_v31, %v15001_v33  ;;  %v5484_v10 = vand.u32 4294901760, %v5483_v23  ;;  %v13500_v24 = vsub.f32 %v13176_v46, %v15004_v2  ;;  %10334 = vmatprep.subr.bf16.mxu0 %v13481_v41  ;;  %v15006_v23 = vand.u32 4294901760, %v13181_v18 }
 0x314   : > { %10144 = vmatpush3.bf16.msra.mxu1 %v13278_v51  ;;  %v6385_v51 = vsub.f32 %v13441_v48, %v15003_v1  ;;  %v6379_v31 = vand.u32 4294901760, %v6378_v11  ;;  %v15008_v1 = vand.u32 4294901760, %v13196_v29  ;;  %v5490_v11 = vsub.f32 %v13475_v60, %v15010_v20 }
 0x315   : > { %10146 = vmatprep.subr.bf16.mxu1 %v13333_v16  ;;  %15002 = vst [vmem:[#allocation47_spill] sm:$0xff] %v13489_v59  ;;  %15005 = vst [vmem:[#allocation48_spill] sm:$0xff] %v13500_v24  ;;  %v13509_v63 = vsub.f32 %v13181_v18, %v15006_v23  ;;  %v13517_v46 = vpack.c.bf16 %v5484_v10, %v5477_v36  ;;  %v14750_v33 = vand.u32 4294901760, %v13500_v24  ;;  %v15011_v49 = vand.u32 4294901760, %v13489_v59 }
 0x316   : > { %v13514_v27 = vsub.f32 %v13196_v29, %v15008_v1  ;;  %10336 = vmatpush3.bf16.msra.mxu0 %v13481_v41  ;;  %v6386_v2 = vand.u32 4294901760, %v6385_v51  ;;  %v15012_v1 = vand.u32 4294901760, %v13201_v6  ;;  %v5491_v20 = vand.u32 4294901760, %v5490_v11 }
 0x317   : > { %15007 = vst [vmem:[#allocation49_spill] sm:$0xff] %v13509_v63  ;;  %v5497_v18 = vsub.f32 %v13489_v59, %v15011_v49  ;;  %v6392_v41 = vsub.f32 %v13500_v24, %v14750_v33  ;;  %v15014_v49 = vand.u32 4294901760, %v13216_v32 }
 0x318   : > { %15009 = vst [vmem:[#allocation50_spill] sm:$0xff] %v13514_v27  ;;  %v13531_v36 = vsub.f32 %v13201_v6, %v15012_v1  ;;  %v13535_v10 = vpack.c.bf16 %v6386_v2, %v6379_v31  ;;  %v15016_v6 = vand.u32 4294901760, %v13509_v63  ;;  %v15017_v31 = vand.u32 4294901760, %v13514_v27 }
 0x319   : > { %v13543_v23 = vsub.f32 %v13216_v32, %v15014_v49  ;;  %v5498_v3 = vand.u32 4294901760, %v5497_v18  ;;  %v6393_v33 = vand.u32 4294901760, %v6392_v41  ;;  %v15018_v32 = vand.u32 4294901760, %v13221_v7 }
 0x31a   : > { %15013 = vst [vmem:[#allocation51_spill] sm:$0xff] %v13531_v36  ;;  %v6399_v1 = vsub.f32 %v13509_v63, %v15016_v6  ;;  %v5504_v2 = vsub.f32 %v13514_v27, %v15017_v31  ;;  %v14762_v11 = vand.u32 4294901760, %v13531_v36  ;;  %10338 = vmatprep.subr.bf16.mxu0 %v13535_v10  ;;  %v15020_v18 = vand.u32 4294901760, %v13239_v44 }
 0x31b   : > { %15015 = vst [vmem:[#allocation52_spill] sm:$0xff] %v13543_v23  ;;  %v14761_v8 = vand.u32 4294901760, %v13543_v23  ;;  %v13559_v49 = vsub.f32 %v13221_v7, %v15018_v32  ;;  %v13566_v4 = vpack.c.bf16 %v5498_v3, %v5491_v20 }
 0x31c   : > { %v13564_v6 = vsub.f32 %v13239_v44, %v15020_v18  ;;  %v6400_v31 = vand.u32 4294901760, %v6399_v1  ;;  %v5505_v34 = vand.u32 4294901760, %v5504_v2  ;;  %v5511_v41 = vsub.f32 %v13531_v36, %v14762_v11 }
 0x31d   : > { %15019 = vst [vmem:[#allocation53_spill] sm:$0xff] %v13559_v49  ;;  %v6406_v9 = vsub.f32 %v13543_v23, %v14761_v8  ;;  %v14763_v7 = vand.u32 4294901760, %v13559_v49  ;;  %v13579_v44 = vsub.f32 %v13244_v21, %v15022_v35  ;;  %v15024_v1 = vand.u32 4294901760, %v13265_v61 }
 0x31e   : > { %15021 = vst [vmem:[#allocation54_spill] sm:$0xff] %v13564_v6  ;;  %v13581_v3 = vpack.c.bf16 %v6400_v31, %v6393_v33  ;;  %v5512_v20 = vand.u32 4294901760, %v5511_v41  ;;  %v15026_v18 = vand.u32 4294901760, %v13270_v45  ;;  %v15028_v35 = vand.u32 4294901760, %v13564_v6 }
 0x31f   : > { %15023 = vst [vmem:[#allocation55_spill] sm:$0xff] %v13579_v44  ;;  %v13586_v2 = vsub.f32 %v13265_v61, %v15024_v1  ;;  %v6407_v11 = vand.u32 4294901760, %v6406_v9  ;;  %v6413_v32 = vsub.f32 %v13559_v49, %v14763_v7  ;;  %v14764_v33 = vand.u32 4294901760, %v13579_v44 }
 0x320   : > { %v13591_v8 = vsub.f32 %v13270_v45, %v15026_v18  ;;  %v5518_v21 = vsub.f32 %v13564_v6, %v15028_v35  ;;  %v13600_v31 = vpack.c.bf16 %v5512_v20, %v5505_v34  ;;  %v15030_v45 = vand.u32 4294901760, %v13310_v40 }
 0x321   : > { %15025 = vst [vmem:[#allocation56_spill] sm:$0xff] %v13586_v2  ;;  %v14767_v61 = vand.u32 4294901760, %v13586_v2  ;;  %v6414_v1 = vand.u32 4294901760, %v6413_v32  ;;  %v5525_v7 = vsub.f32 %v13579_v44, %v14764_v33  ;;  %v15032_v35 = vand.u32 4294901760, %v13315_v30 }
 0x322   : > { %15027 = vst [vmem:[#allocation57_spill] sm:$0xff] %v13591_v8  ;;  %15029 = vst [vmem:[#allocation58_spill] sm:$0xff] %v13600_v31  ;;  %v14769_v41 = vand.u32 4294901760, %v13591_v8  ;;  %v13607_v9 = vsub.f32 %v13310_v40, %v15030_v45  ;;  %v5519_v18 = vand.u32 4294901760, %v5518_v21  ;;  %v13625_v32 = vpack.c.bf16 %v13249_v13, %v13233_v17 }
 0x323   : > { %v13615_v34 = vsub.f32 %v13315_v30, %v15032_v35  ;;  %v6420_v20 = vsub.f32 %v13586_v2, %v14767_v61  ;;  %v13628_v45 = vpack.c.bf16 %v6414_v1, %v6407_v11  ;;  %v5526_v33 = vand.u32 4294901760, %v5525_v7 }
 0x324   : > { %15031 = vst [vmem:[#allocation59_spill] sm:$0xff] %v13607_v9  ;;  %v6427_v40 = vsub.f32 %v13591_v8, %v14769_v41  ;;  %v14771_v21 = vand.u32 4294901760, %v13607_v9  ;;  %v15034_v31 = vand.u32 4294901760, %v13353_v42  ;;  %v15036_v7 = vand.u32 4294901760, %v13358_v54 }
 0x325   : > { %15033 = vst [vmem:[#allocation60_spill] sm:$0xff] %v13615_v34  ;;  %v14772_v30 = vand.u32 4294901760, %v13615_v34  ;;  %v6421_v35 = vand.u32 4294901760, %v6420_v20  ;;  %v13639_v13 = vpack.c.bf16 %v5526_v33, %v5519_v18 }
 0x326   : > { %v6428_v56 = vand.u32 4294901760, %v6427_v40  ;;  %v6434_v61 = vsub.f32 %v13607_v9, %v14771_v21  ;;  %v13637_v41 = vsub.f32 %v13353_v42, %v15034_v31  ;;  %v13647_v1 = vsub.f32 %v13358_v54, %v15036_v7 }
 0x327   : > { %v6441_v11 = vsub.f32 %v13615_v34, %v14772_v30  ;;  %v13653_v21 = vpack.c.bf16 %v13297_v57, %v13292_v5  ;;  %v15038_v30 = vand.u32 4294901760, %v13393_v26 }
 0x328   : > { %15035 = vst [vmem:[#allocation61_spill] sm:$0xff] %v13637_v41  ;;  %15037 = vst [vmem:[#allocation62_spill] sm:$0xff] %v13647_v1  ;;  %v13649_v20 = vpack.c.bf16 %v6428_v56, %v6421_v35  ;;  %v6435_v40 = vand.u32 4294901760, %v6434_v61  ;;  %v14773_v42 = vand.u32 4294901760, %v13637_v41  ;;  %v14775_v31 = vand.u32 4294901760, %v13647_v1 }
 0x329   : > { %v6442_v33 = vand.u32 4294901760, %v6441_v11  ;;  %v13663_v54 = vsub.f32 %v13393_v26, %v15038_v30  ;;  %v15040_v56 = vand.u32 4294901760, %v13398_v25 }
 0x32a   : > { %v6448_v18 = vsub.f32 %v13637_v41, %v14773_v42  ;;  %v6455_v11 = vsub.f32 %v13647_v1, %v14775_v31  ;;  %v13677_v42 = vpack.c.bf16 %v13330_v19, %v13325_v62 }
 0x32b   : > { %15039 = vst [vmem:[#allocation63_spill] sm:$0xff] %v13663_v54  ;;  %v13668_v61 = vsub.f32 %v13398_v25, %v15040_v56  ;;  %v13670_v35 = vpack.c.bf16 %v6442_v33, %v6435_v40  ;;  %v14778_v57 = vand.u32 4294901760, %v13663_v54  ;;  %v15042_v33 = vand.u32 4294901760, %v13448_v58 }
 0x32c   : > { %v6449_v7 = vand.u32 4294901760, %v6448_v18  ;;  %v6456_v30 = vand.u32 4294901760, %v6455_v11  ;;  %v15044_v56 = vand.u32 4294901760, %v13453_v39 }
 0x32d   : > { %15041 = vst [vmem:[#allocation64_spill] sm:$0xff] %v13668_v61  ;;  %v14779_v26 = vand.u32 4294901760, %v13668_v61  ;;  %v6462_v25 = vsub.f32 %v13663_v54, %v14778_v57  ;;  %v13690_v18 = vsub.f32 %v13448_v58, %v15042_v33  ;;  %v13701_v57 = vpack.c.bf16 %v13380_v15, %v13375_v14 }
 0x32e   : > { %v13695_v31 = vsub.f32 %v13453_v39, %v15044_v56  ;;  %v13697_v19 = vpack.c.bf16 %v6456_v30, %v6449_v7  ;;  %v13715_v7 = vpack.c.bf16 %v13424_v37, %v13412_v55  ;;  %v13725_v33 = vpack.c.bf16 %v13489_v59, %v13475_v60 }
 0x32f   : > { %v6469_v40 = vsub.f32 %v13668_v61, %v14779_v26  ;;  %15043 = vst [vmem:[#allocation65_spill] sm:$0xff] %v13690_v18  ;;  %v6463_v11 = vand.u32 4294901760, %v6462_v25  ;;  %v14783_v26 = vand.u32 4294901760, %v13690_v18  ;;  %v13729_v56 = vpack.c.bf16 %v13509_v63, %v13500_v24 }
 0x330   : > { %15045 = vst [vmem:[#allocation66_spill] sm:$0xff] %v13695_v31  ;;  %v14782_v5 = vand.u32 4294901760, %v13695_v31 }
 0x331   : > { %v6470_v62 = vand.u32 4294901760, %v6469_v40  ;;  %v6476_v58 = vsub.f32 %v13690_v18, %v14783_v26  ;;  %v13719_v40 = vpack.c.bf16 %v13441_v48, %v13436_v12 }
 0x332   : > { %v6483_v39 = vsub.f32 %v13695_v31, %v14782_v5 }
 0x333   : > { %v13705_v17 = vpack.c.bf16 %v6470_v62, %v6463_v11  ;;  %v6477_v30 = vand.u32 4294901760, %v6476_v58  ;;  %v13733_v11 = vpack.c.bf16 %v13531_v36, %v13514_v27  ;;  %v13737_v58 = vpack.c.bf16 %v13559_v49, %v13543_v23 }
 0x334   : > { %v6484_v25 = vand.u32 4294901760, %v6483_v39  ;;  %v13741_v39 = vpack.c.bf16 %v13579_v44, %v13564_v6  ;;  %v13755_v36 = vpack.c.bf16 %v13647_v1, %v13637_v41  ;;  %v13763_v44 = vpack.c.bf16 %v13668_v61, %v13663_v54 }
 0x335   : > { %15046 = vst [vmem:[#allocation67_spill] sm:$0xff] %v13733_v11  ;;  %15047 = vst [vmem:[#allocation68_spill] sm:$0xff] %v13737_v58 }
 0x336   : > { %v13721_v62 = vpack.c.bf16 %v6484_v25, %v6477_v30  ;;  %15048 = vst [vmem:[#allocation69_spill] sm:$0xff] %v13741_v39  ;;  %v13745_v30 = vpack.c.bf16 %v13591_v8, %v13586_v2  ;;  %v13749_v25 = vpack.c.bf16 %v13615_v34, %v13607_v9  ;;  %15051 = vst [vmem:[#allocation72_spill] sm:$0xff] %v13755_v36 }
 0x337   : > { %15052 = vst [vmem:[#allocation73_spill] sm:$0xff] %v13763_v44  ;;  %v13771_v34 = vpack.c.bf16 %v13695_v31, %v13690_v18 }
 0x338   : > { %15049 = vst [vmem:[#allocation70_spill] sm:$0xff] %v13745_v30  ;;  %15050 = vst [vmem:[#allocation71_spill] sm:$0xff] %v13749_v25 }
 0x339   : > { %15053 = vst [vmem:[#allocation74_spill] sm:$0xff] %v13771_v34 }
 0x354   : > { %v13388_v50 = vpop.f32.mrb[8].mxu1 }
 0x355   : > { %v13402_v47 = vpop.f32.mrb[9].mxu1 }
 0x358   : > { %v13443_v22 = vpop.f32.mrb[10].mxu1 }
 0x359   : > { %v13456_v53 = vpop.f32.mrb[11].mxu1 }
 0x35c   : > { %v13491_v52 = vpop.f32.mrb[12].mxu1 }
 0x35d   : > { %v13502_v28 = vpop.f32.mrb[13].mxu1 }
 0x360   : > { %v13533_v51 = vpop.f32.mrb[14].mxu1 }
 0x361   : > { %v13545_v29 = vpop.f32.mrb[15].mxu1 }
 0x38c   : > { %v9239_v5 = vpop.f32.mrb[16].mxu0 }
 0x38d   : > { %v13751_v26 = vpop.f32.mrb[17].mxu0 }
 0x390   : > { %v13757_v49 = vpop.f32.mrb[18].mxu0 }
 0x391   : > { %v13759_v23 = vpop.f32.mrb[19].mxu0 }
 0x394   : > { %v13765_v8 = vpop.f32.mrb[20].mxu0 }
 0x395   : > { %v13767_v2 = vpop.f32.mrb[21].mxu0 }
 0x398   : > { %v13773_v9 = vpop.f32.mrb[22].mxu0 }
 0x399   : > { %v13775_v1 = vpop.f32.mrb[23].mxu0 }
 0x3ba   : > { %v9119_v41 = vpop.f32.mrb[16].mxu1 }
 0x3bb   : > { %v4414_v6 = vmul.f32 %v9119_v41, %v13388_v50  ;;  %v4367_v27 = vpop.f32.mrb[17].mxu1 }
 0x3bc   : > { %v4413_v63 = vmul.f32 %v4367_v27, %v13402_v47 }
 0x3bd   : > { %v13779_v61 = vand.u32 4294901760, %v4414_v6 }
 0x3be   : > { %v13781_v54 = vand.u32 4294901760, %v4413_v63  ;;  %v9122_v24 = vpop.f32.mrb[18].mxu1 }
 0x3bf   : > { %v13784_v59 = vsub.f32 %v4414_v6, %v13779_v61  ;;  %v4416_v31 = vmul.f32 %v9122_v24, %v13443_v22  ;;  %v4379_v18 = vpop.f32.mrb[19].mxu1 }
 0x3c0   : > { %v13788_v60 = vsub.f32 %v4413_v63, %v13781_v54  ;;  %v4415_v48 = vmul.f32 %v4379_v18, %v13456_v53 }
 0x3c1   : > { %15054 = vst [vmem:[#allocation75_spill] sm:$0xff] %v13784_v59  ;;  %v14813_v41 = vand.u32 4294901760, %v13784_v59  ;;  %v13792_v12 = vand.u32 4294901760, %v4416_v31 }
 0x3c2   : > { %v13794_v27 = vand.u32 4294901760, %v4415_v48  ;;  %v9125_v37 = vpop.f32.mrb[20].mxu1  ;;  %v14818_v55 = vand.u32 4294901760, %v13788_v60 }
 0x3c3   : > { %v5349_v6 = vsub.f32 %v13784_v59, %v14813_v41  ;;  %v13801_v24 = vsub.f32 %v4416_v31, %v13792_v12  ;;  %v4418_v63 = vmul.f32 %v9125_v37, %v13491_v52  ;;  %v4391_v15 = vpop.f32.mrb[21].mxu1 }
 0x3c4   : > { %v13805_v18 = vsub.f32 %v4415_v48, %v13794_v27  ;;  %v4417_v14 = vmul.f32 %v4391_v15, %v13502_v28  ;;  %v5339_v34 = vsub.f32 %v13788_v60, %v14818_v55 }
 0x3c5   : > { %15055 = vst [vmem:[#allocation76_spill] sm:$0xff] %v13801_v24  ;;  %v13811_v44 = vand.u32 4294901760, %v4418_v63  ;;  %v14821_v36 = vand.u32 4294901760, %v13801_v24  ;;  %v5350_v59 = vand.u32 4294901760, %v5349_v6 }
 0x3c6   : > { %15056 = vst [vmem:[#allocation77_spill] sm:$0xff] %v13805_v18  ;;  %v13814_v41 = vand.u32 4294901760, %v4417_v14  ;;  %v9128_v31 = vpop.f32.mrb[22].mxu1  ;;  %v5340_v25 = vand.u32 4294901760, %v5339_v34  ;;  %v14825_v37 = vand.u32 4294901760, %v13805_v18 }
 0x3c7   : > { %v13818_v48 = vsub.f32 %v4418_v63, %v13811_v44  ;;  %v4420_v15 = vmul.f32 %v9128_v31, %v13533_v51  ;;  %v4403_v30 = vpop.f32.mrb[23].mxu1  ;;  %v5369_v55 = vsub.f32 %v13801_v24, %v14821_v36 }
 0x3c8   : > { %v13825_v39 = vsub.f32 %v4417_v14, %v13814_v41  ;;  %v4419_v58 = vmul.f32 %v4403_v30, %v13545_v29  ;;  %9281 = vmatprep.mubr.f32.mxu1 %v5340_v25  ;;  %v5359_v34 = vsub.f32 %v13805_v18, %v14825_v37 }
 0x3c9   : > { %15057 = vst [vmem:[#allocation78_spill] sm:$0xff] %v13818_v48  ;;  %v13831_v6 = vand.u32 4294901760, %v4420_v15  ;;  %9282 = vmatmul.mubr.f32.vlgmr.msra.gmra.mrb[32].mxu1 %v5350_v59  ;;  %v14828_v63 = vand.u32 4294901760, %v13818_v48  ;;  %v5370_v37 = vand.u32 4294901760, %v5369_v55 }
 0x3ca   : > { %v13834_v31 = vand.u32 4294901760, %v4419_v58  ;;  %10148 = vmatpush3.bf16.msra.mxu1 %v13333_v16  ;;  %v9139_v36 = vpop.f32.mrb[24].mxu1  ;;  %v5360_v24 = vand.u32 4294901760, %v5359_v34  ;;  %v5378_v14 = vand.u32 4294901760, %v13825_v39 }
 0x3cb   : > { %v13839_v30 = vsub.f32 %v4420_v15, %v13831_v6  ;;  %v10497_v25 = vadd.f32 %v9239_v5, %v9139_v36  ;;  %v4520_v11 = vpop.f32.mrb[25].mxu1  ;;  %10150 = vmatprep.subr.bf16.mxu1 %v13370_v43  ;;  %v5389_v59 = vsub.f32 %v13818_v48, %v14828_v63 }
 0x3cc   : > { %v13846_v18 = vsub.f32 %v4419_v58, %v13834_v31  ;;  %v10498_v16 = vadd.f32 %v13751_v26, %v4520_v11  ;;  %9284 = vmatprep.mubr.f32.mxu1 %v5360_v24  ;;  %v5379_v15 = vsub.f32 %v13825_v39, %v5378_v14 }
 0x3cd   : > { %v5232_v5 = vmul.f32 %v10497_v25, %v13388_v50  ;;  %9285 = vmatmul.mubr.f32.gmra.mrb[34].mxu1 %v5370_v37  ;;  %v5408_v36 = vand.u32 4294901760, %v13839_v30  ;;  %v5390_v24 = vand.u32 4294901760, %v5389_v59 }
 0x3ce   : > { %v5231_v55 = vmul.f32 %v10498_v16, %v13402_v47  ;;  %10152 = vmatpush3.bf16.msra.mxu1 %v13370_v43  ;;  %v9142_v34 = vpop.f32.mrb[26].mxu1  ;;  %v5380_v63 = vand.u32 4294901760, %v5379_v15  ;;  %v5398_v58 = vand.u32 4294901760, %v13846_v18 }
 0x3cf   : > { %v13857_v48 = vand.u32 4294901760, %v5232_v5  ;;  %v10499_v26 = vadd.f32 %v13757_v49, %v9142_v34  ;;  %v4540_v11 = vpop.f32.mrb[27].mxu1  ;;  %10154 = vmatprep.subr.bf16.mxu1 %v13405_v38  ;;  %v5409_v50 = vsub.f32 %v13839_v30, %v5408_v36 }
 0x3d0   : > { %v13864_v37 = vand.u32 4294901760, %v5231_v55  ;;  %v10500_v43 = vadd.f32 %v13759_v23, %v4540_v11  ;;  %9287 = vmatprep.mubr.f32.mxu1 %v5380_v63  ;;  %v5399_v47 = vsub.f32 %v13846_v18, %v5398_v58 }
 0x3d1   : > { %v13871_v25 = vsub.f32 %v5232_v5, %v13857_v48  ;;  %v5234_v49 = vmul.f32 %v10499_v26, %v13443_v22  ;;  %9288 = vmatmul.mubr.f32.gmra.mrb[36].mxu1 %v5390_v24  ;;  %v5410_v22 = vand.u32 4294901760, %v5409_v50 }
 0x3d2   : > { %v13875_v59 = vsub.f32 %v5231_v55, %v13864_v37  ;;  %v5233_v16 = vmul.f32 %v10500_v43, %v13456_v53  ;;  %10156 = vmatpush3.bf16.msra.mxu1 %v13405_v38  ;;  %v9145_v15 = vpop.f32.mrb[28].mxu1  ;;  %v5400_v23 = vand.u32 4294901760, %v5399_v47 }
 0x3d3   : > { %v14831_v63 = vand.u32 4294901760, %v13871_v25  ;;  %v13880_v34 = vand.u32 4294901760, %v5234_v49  ;;  %v10501_v11 = vadd.f32 %v13765_v8, %v9145_v15  ;;  %v4560_v5 = vpop.f32.mrb[29].mxu1  ;;  %10158 = vmatprep.subr.bf16.mxu1 %v13466_v0 }
 0x3d4   : > { %v13884_v26 = vand.u32 4294901760, %v5233_v16  ;;  %v10502_v55 = vadd.f32 %v13767_v2, %v4560_v5  ;;  %9290 = vmatprep.mubr.f32.mxu1 %v5400_v23  ;;  %v6296_v53 = vand.u32 4294901760, %v13875_v59 }
 0x3d5   : > { %v6307_v38 = vsub.f32 %v13871_v25, %v14831_v63  ;;  %v13892_v24 = vsub.f32 %v5234_v49, %v13880_v34  ;;  %v5236_v8 = vmul.f32 %v10501_v11, %v13491_v52  ;;  %9291 = vmatmul.mubr.f32.gmra.mrb[38].mxu1 %v5410_v22 }
 0x3d6   : > { %v13896_v43 = vsub.f32 %v5233_v16, %v13884_v26  ;;  %v5235_v50 = vmul.f32 %v10502_v55, %v13502_v28  ;;  %10160 = vmatpush3.bf16.msra.mxu1 %v13466_v0  ;;  %v9148_v2 = vpop.f32.mrb[30].mxu1  ;;  %9325 = vmatprep.mubr.f32.mxu1 %v13781_v54  ;;  %v6297_v47 = vsub.f32 %v13875_v59, %v6296_v53 }
 0x3d7   : > { %v13904_v15 = vand.u32 4294901760, %v5236_v8  ;;  %v10503_v49 = vadd.f32 %v13773_v9, %v9148_v2  ;;  %v4580_v52 = vpop.f32.mrb[31].mxu1  ;;  %10162 = vmatprep.subr.bf16.mxu1 %v13517_v46  ;;  %v6326_v16 = vand.u32 4294901760, %v13892_v24  ;;  %v6308_v5 = vand.u32 4294901760, %v6307_v38 }
 0x3d8   : > { %v13909_v23 = vand.u32 4294901760, %v5235_v50  ;;  %v10504_v0 = vadd.f32 %v13775_v1, %v4580_v52  ;;  %v6298_v28 = vand.u32 4294901760, %v6297_v47  ;;  %v6316_v11 = vand.u32 4294901760, %v13896_v43 }
 0x3d9   : > { %v13914_v22 = vsub.f32 %v5236_v8, %v13904_v15  ;;  %v5238_v55 = vmul.f32 %v10503_v49, %v13533_v51  ;;  %v6327_v9 = vsub.f32 %v13892_v24, %v6326_v16 }
 0x3da   : > { %v13921_v2 = vsub.f32 %v5235_v50, %v13909_v23  ;;  %v5237_v63 = vmul.f32 %v10504_v0, %v13545_v29  ;;  %10164 = vmatpush3.bf16.msra.mxu1 %v13517_v46  ;;  %9545 = vmatprep.mubr.f32.mxu0 %v6298_v28  ;;  %v6317_v1 = vsub.f32 %v13896_v43, %v6316_v11  ;;  %v15058_v0 = vld [vmem:[#allocation58_spill] sm:$0xff] }
 0x3db   : > { %v13928_v38 = vand.u32 4294901760, %v5238_v55  ;;  %9546 = vmatmul.mubr.f32.vlgmr.msra.gmra.mrb[24].mxu0 %v6308_v5  ;;  %10166 = vmatprep.subr.bf16.mxu1 %v13566_v4  ;;  %v6346_v51 = vand.u32 4294901760, %v13914_v22  ;;  %v6328_v47 = vand.u32 4294901760, %v6327_v9 }
 0x3dc   : > { %v13932_v8 = vand.u32 4294901760, %v5237_v63  ;;  %10340 = vmatpush3.bf16.msra.mxu0 %v13535_v10  ;;  %v6318_v50 = vand.u32 4294901760, %v6317_v1  ;;  %v6336_v29 = vand.u32 4294901760, %v13921_v2 }
 0x3dd   : > { %v13937_v46 = vsub.f32 %v5238_v55, %v13928_v38  ;;  %10342 = vmatprep.subr.bf16.mxu0 %v13581_v3  ;;  %v6347_v49 = vsub.f32 %v13914_v22, %v6346_v51 }
 0x3de   : > { %v13944_v52 = vsub.f32 %v5237_v63, %v13932_v8  ;;  %10168 = vmatpush3.bf16.msra.mxu1 %v13566_v4  ;;  %9548 = vmatprep.mubr.f32.mxu0 %v6318_v50  ;;  %v6337_v10 = vsub.f32 %v13921_v2, %v6336_v29  ;;  %v15074_v50 = vld [vmem:[#allocation74_spill] sm:$0xff] }
 0x3df   : > { %9549 = vmatmul.mubr.f32.gmra.mrb[26].mxu0 %v6328_v47  ;;  %10170 = vmatprep.subr.bf16.mxu1 %v15058_v0  ;;  %v6366_v28 = vand.u32 4294901760, %v13937_v46  ;;  %v6348_v63 = vand.u32 4294901760, %v6347_v49  ;;  %v15075_v47 = vand.u32 4294901760, %v13788_v60  ;;  %v15076_v49 = vld [vmem:[#allocation3_spill] sm:$0xff] }
 0x3e0   : > { %10344 = vmatpush3.bf16.msra.mxu0 %v13581_v3  ;;  %v6338_v5 = vand.u32 4294901760, %v6337_v10  ;;  %v6356_v55 = vand.u32 4294901760, %v13944_v52  ;;  %v15077_v10 = vld [vmem:[#allocation35_spill] sm:$0xff] }
 0x3e1   : > { %10346 = vmatprep.subr.bf16.mxu0 %v13628_v45  ;;  %v6367_v4 = vsub.f32 %v13937_v46, %v6366_v28 }
 0x3e2   : > { %10172 = vmatpush3.bf16.msra.mxu1 %v15058_v0  ;;  %9551 = vmatprep.mubr.f32.mxu0 %v6338_v5  ;;  %v6357_v9 = vsub.f32 %v13944_v52, %v6356_v55  ;;  %v15078_v0 = vld [vmem:[#allocation39_spill] sm:$0xff]  ;;  %v15079_v5 = vld [vmem:[#allocation4_spill] sm:$0xff] }
 0x3e3   : > { %9552 = vmatmul.mubr.f32.gmra.mrb[28].mxu0 %v6348_v63  ;;  %10174 = vmatprep.subr.bf16.mxu1 %v13639_v13  ;;  %v6368_v1 = vand.u32 4294901760, %v6367_v4  ;;  %v15081_v63 = vld [vmem:[#allocation44_spill] sm:$0xff]  ;;  %v15082_v4 = vld [vmem:[#allocation9_spill] sm:$0xff] }
 0x3e4   : > { %10348 = vmatpush3.bf16.msra.mxu0 %v13628_v45  ;;  %v6358_v3 = vand.u32 4294901760, %v6357_v9  ;;  %v15065_v45 = vld [vmem:[#allocation71_spill] sm:$0xff]  ;;  %v15083_v9 = vld [vmem:[#allocation5_spill] sm:$0xff] }
 0x3e5   : > { %10350 = vmatprep.subr.bf16.mxu0 %v13649_v20 }
 0x3e6   : > { %10176 = vmatpush3.bf16.msra.mxu1 %v13639_v13  ;;  %9554 = vmatprep.mubr.f32.mxu0 %v6358_v3  ;;  %v15060_v13 = vld [vmem:[#allocation68_spill] sm:$0xff]  ;;  %v15084_v3 = vand.u32 4294901760, %v15083_v9  ;;  %v15093_v9 = vld [vmem:[#allocation13_spill] sm:$0xff] }
 0x3e7   : > { %9555 = vmatmul.mubr.f32.gmra.mrb[30].mxu0 %v6368_v1  ;;  %10178 = vmatprep.subr.bf16.mxu1 %v13625_v32  ;;  %v15085_v1 = vld [vmem:[#allocation6_spill] sm:$0xff] }
 0x3e8   : > { %10352 = vmatpush3.bf16.msra.mxu0 %v13649_v20  ;;  %9589 = vmatprep.mubr.f32.mxu0 %v13864_v37  ;;  %v15066_v20 = vld [vmem:[#allocation77_spill] sm:$0xff] }
 0x3e9   : > { %9326 = vmatmul.mubr.f32.vlgmr.msra.gmra.mrb[32].mxu1 %v13779_v61  ;;  %10354 = vmatprep.subr.bf16.mxu0 %v13670_v35 }
 0x3ea   : > { %9328 = vmatprep.mubr.f32.mxu1 %v13794_v27  ;;  %10180 = vmatpush3.bf16.msra.mxu1 %v13625_v32  ;;  %v15063_v32 = vld [vmem:[#allocation29_spill] sm:$0xff] }
 0x3eb   : > { %10182 = vmatprep.subr.bf16.mxu1 %v13653_v21 }
 0x3ec   : > { %10356 = vmatpush3.bf16.msra.mxu0 %v13670_v35  ;;  %v15068_v35 = vld [vmem:[#allocation76_spill] sm:$0xff] }
 0x3ed   : > { %9329 = vmatmul.mubr.f32.gmra.mrb[34].mxu1 %v13792_v12  ;;  %10358 = vmatprep.subr.bf16.mxu0 %v13697_v19 }
 0x3ee   : > { %9331 = vmatprep.mubr.f32.mxu1 %v13814_v41  ;;  %10184 = vmatpush3.bf16.msra.mxu1 %v13653_v21  ;;  %v15064_v21 = vld [vmem:[#allocation75_spill] sm:$0xff] }
 0x3ef   : > { %10186 = vmatprep.subr.bf16.mxu1 %v13677_v42 }
 0x3f0   : > { %10360 = vmatpush3.bf16.msra.mxu0 %v13697_v19  ;;  %v15061_v19 = vld [vmem:[#allocation69_spill] sm:$0xff] }
 0x3f1   : > { %9332 = vmatmul.mubr.f32.gmra.mrb[36].mxu1 %v13811_v44  ;;  %10362 = vmatprep.subr.bf16.mxu0 %v13705_v17 }
 0x3f2   : > { %9334 = vmatprep.mubr.f32.mxu1 %v13834_v31  ;;  %10188 = vmatpush3.bf16.msra.mxu1 %v13677_v42  ;;  %v15067_v42 = vld [vmem:[#allocation2_spill] sm:$0xff] }
 0x3f3   : > { %10190 = vmatprep.subr.bf16.mxu1 %v13701_v57 }
 0x3f4   : > { %10364 = vmatpush3.bf16.msra.mxu0 %v13705_v17  ;;  %v15059_v17 = vld [vmem:[#allocation67_spill] sm:$0xff] }
 0x3f5   : > { %9335 = vmatmul.mubr.f32.gmra.mrb[38].mxu1 %v13831_v6  ;;  %10366 = vmatprep.subr.bf16.mxu0 %v13721_v62 }
 0x3f6   : > { %10192 = vmatpush3.bf16.msra.mxu1 %v13701_v57  ;;  %9369 = vmatprep.mubr.f32.mxu1 %v13788_v60  ;;  %v15062_v57 = vld [vmem:[#allocation70_spill] sm:$0xff] }
 0x3f7   : > { %10194 = vmatprep.subr.bf16.mxu1 %v13715_v7  ;;  %v15080_v60 = vld [vmem:[#allocation38_spill] sm:$0xff] }
 0x3f8   : > { %10368 = vmatpush3.bf16.msra.mxu0 %v13721_v62  ;;  %v15071_v62 = vld [vmem:[#allocation78_spill] sm:$0xff] }
 0x3f9   : > { %10370 = vmatprep.subr.bf16.mxu0 %v13719_v40 }
 0x3fa   : > { %10196 = vmatpush3.bf16.msra.mxu1 %v13715_v7  ;;  %v15069_v7 = vld [vmem:[#allocation72_spill] sm:$0xff] }
 0x3fb   : > { %9590 = vmatmul.mubr.f32.vlgmr.msra.gmra.mrb[24].mxu0 %v13857_v48  ;;  %10198 = vmatprep.subr.bf16.mxu1 %v13725_v33 }
 0x3fc   : > { %9592 = vmatprep.mubr.f32.mxu0 %v13884_v26  ;;  %10372 = vmatpush3.bf16.msra.mxu0 %v13719_v40  ;;  %v15070_v40 = vld [vmem:[#allocation31_spill] sm:$0xff] }
 0x3fd   : > { %10374 = vmatprep.subr.bf16.mxu0 %v13729_v56 }
 0x3fe   : > { %10200 = vmatpush3.bf16.msra.mxu1 %v13725_v33  ;;  %v15072_v33 = vld [vmem:[#allocation73_spill] sm:$0xff] }
 0x3ff   : > { %9593 = vmatmul.mubr.f32.gmra.mrb[26].mxu0 %v13880_v34  ;;  %10202 = vmatprep.subr.bf16.mxu1 %v15059_v17 }
 0x400   : > { %9595 = vmatprep.mubr.f32.mxu0 %v13909_v23  ;;  %10376 = vmatpush3.bf16.msra.mxu0 %v13729_v56  ;;  %v15073_v56 = vld [vmem:[#allocation33_spill] sm:$0xff] }
 0x401   : > { %10378 = vmatprep.subr.bf16.mxu0 %v15060_v13 }
 0x402   : > { %10204 = vmatpush3.bf16.msra.mxu1 %v15059_v17  ;;  %v15086_v17 = vand.u32 4294901760, %v15085_v1  ;;  %v15095_v1 = vld [vmem:[#allocation11_spill] sm:$0xff] }
 0x403   : > { %9596 = vmatmul.mubr.f32.gmra.mrb[28].mxu0 %v13904_v15  ;;  %10206 = vmatprep.subr.bf16.mxu1 %v15061_v19 }
 0x404   : > { %9598 = vmatprep.mubr.f32.mxu0 %v13932_v8  ;;  %10380 = vmatpush3.bf16.msra.mxu0 %v15060_v13  ;;  %v10241_v13 = vpack.c.bf16 %v15086_v17, %v15084_v3  ;;  %v15094_v3 = vand.u32 4294901760, %v15066_v20  ;;  %v15096_v17 = vand.u32 4294901760, %v15095_v1  ;;  %v15106_v1 = vld [vmem:[#allocation19_spill] sm:$0xff] }
 0x405   : > { %10382 = vmatprep.subr.bf16.mxu0 %v15062_v57 }
 0x406   : > { %10208 = vmatpush3.bf16.msra.mxu1 %v15061_v19  ;;  %v15087_v19 = vld [vmem:[#allocation10_spill] sm:$0xff] }
 0x407   : > { %9599 = vmatmul.mubr.f32.gmra.mrb[30].mxu0 %v13928_v38  ;;  %10210 = vmatprep.subr.bf16.mxu1 %v15063_v32 }
 0x408   : > { %10384 = vmatpush3.bf16.msra.mxu0 %v15062_v57  ;;  %9633 = vmatprep.mubr.f32.mxu0 %v13875_v59  ;;  %v15088_v57 = vld [vmem:[#allocation7_spill] sm:$0xff]  ;;  %v15099_v59 = vand.u32 4294901760, %v15068_v35 }
 0x409   : > { %9370 = vmatmul.mubr.f32.vlgmr.msra.gmra.mrb[32].mxu1 %v15064_v21  ;;  %10386 = vmatprep.subr.bf16.mxu0 %v15065_v45 }
 0x40a   : > { %9372 = vmatprep.mubr.f32.mxu1 %v15066_v20  ;;  %10212 = vmatpush3.bf16.msra.mxu1 %v15063_v32 }
 0x40b   : > { %10214 = vmatprep.subr.bf16.mxu1 %v15067_v42 }
 0x40c   : > { %10388 = vmatpush3.bf16.msra.mxu0 %v15065_v45  ;;  %v15089_v45 = vand.u32 4294901760, %v15088_v57  ;;  %v15097_v57 = vld [vmem:[#allocation12_spill] sm:$0xff] }
 0x40d   : > { %9373 = vmatmul.mubr.f32.gmra.mrb[34].mxu1 %v15068_v35  ;;  %10390 = vmatprep.subr.bf16.mxu0 %v15069_v7  ;;  %v15109_v35 = vld [vmem:[#allocation18_spill] sm:$0xff] }
 0x40e   : > { %9375 = vmatprep.mubr.f32.mxu1 %v13825_v39  ;;  %10216 = vmatpush3.bf16.msra.mxu1 %v15067_v42  ;;  %v15107_v39 = vld [vmem:[#allocation17_spill] sm:$0xff] }
 0x40f   : > { %10218 = vmatprep.subr.bf16.mxu1 %v15070_v40 }
 0x410   : > { %10392 = vmatpush3.bf16.msra.mxu0 %v15069_v7  ;;  %v15090_v7 = vld [vmem:[#allocation8_spill] sm:$0xff] }
 0x411   : > { %9376 = vmatmul.mubr.f32.gmra.mrb[36].mxu1 %v15071_v62  ;;  %10394 = vmatprep.subr.bf16.mxu0 %v15072_v33 }
 0x412   : > { %9378 = vmatprep.mubr.f32.mxu1 %v13846_v18  ;;  %10220 = vmatpush3.bf16.msra.mxu1 %v15070_v40 }
 0x413   : > { %10222 = vmatprep.subr.bf16.mxu1 %v15073_v56 }
 0x414   : > { %10396 = vmatpush3.bf16.msra.mxu0 %v15072_v33  ;;  %v15091_v33 = vand.u32 4294901760, %v15090_v7  ;;  %v15098_v7 = vand.u32 4294901760, %v15097_v57  ;;  %v15111_v57 = vld [vmem:[#allocation23_spill] sm:$0xff] }
 0x415   : > { %9379 = vmatmul.mubr.f32.gmra.mrb[38].mxu1 %v13839_v30  ;;  %10398 = vmatprep.subr.bf16.mxu0 %v15074_v50  ;;  %v15120_v30 = vld [vmem:[#allocation48_spill] sm:$0xff] }
 0x416   : > { %10224 = vmatpush3.bf16.msra.mxu1 %v15073_v56  ;;  %9413 = vmatprep.mubr.f32.mxu1 %v15075_v47  ;;  %v15092_v47 = vand.u32 4294901760, %v15064_v21  ;;  %v15101_v21 = vld [vmem:[#allocation14_spill] sm:$0xff] }
 0x417   : > { %10226 = vmatprep.subr.bf16.mxu1 %v15076_v49  ;;  %v15102_v20 = vand.u32 4294901760, %v15101_v21 }
 0x418   : > { %10400 = vmatpush3.bf16.msra.mxu0 %v15074_v50  ;;  %v10245_v50 = vpack.c.bf16 %v15091_v33, %v15089_v45  ;;  %v10249_v45 = vpack.c.bf16 %v15098_v7, %v15096_v17 }
 0x419   : > { %10402 = vmatprep.subr.bf16.mxu0 %v15077_v10 }
 0x41a   : > { %10228 = vmatpush3.bf16.msra.mxu1 %v15076_v49 }
 0x41b   : > { %9634 = vmatmul.mubr.f32.vlgmr.msra.gmra.mrb[24].mxu0 %v13871_v25  ;;  %10230 = vmatprep.subr.bf16.mxu1 %v15078_v0 }
 0x41c   : > { %9636 = vmatprep.mubr.f32.mxu0 %v13896_v43  ;;  %10404 = vmatpush3.bf16.msra.mxu0 %v15077_v10  ;;  %v15137_v43 = vld [vmem:[#allocation56_spill] sm:$0xff] }
 0x41d   : > { %10406 = vmatprep.subr.bf16.mxu0 %v15079_v5 }
 0x41e   : > { %10232 = vmatpush3.bf16.msra.mxu1 %v15078_v0 }
 0x41f   : > { %9637 = vmatmul.mubr.f32.gmra.mrb[26].mxu0 %v13892_v24  ;;  %10234 = vmatprep.subr.bf16.mxu1 %v15080_v60  ;;  %v15141_v24 = vld [vmem:[#allocation59_spill] sm:$0xff] }
 0x420   : > { %9639 = vmatprep.mubr.f32.mxu0 %v13921_v2  ;;  %10408 = vmatpush3.bf16.msra.mxu0 %v15079_v5  ;;  %v15143_v2 = vld [vmem:[#allocation60_spill] sm:$0xff] }
 0x421   : > { %10410 = vmatprep.subr.bf16.mxu0 %v15081_v63 }
 0x422   : > { %10236 = vmatpush3.bf16.msra.mxu1 %v15080_v60 }
 0x423   : > { %9640 = vmatmul.mubr.f32.gmra.mrb[28].mxu0 %v13914_v22  ;;  %10238 = vmatprep.subr.bf16.mxu1 %v15082_v4  ;;  %v15145_v22 = vld [vmem:[#allocation61_spill] sm:$0xff] }
 0x424   : > { %9642 = vmatprep.mubr.f32.mxu0 %v13944_v52  ;;  %10412 = vmatpush3.bf16.msra.mxu0 %v15081_v63  ;;  %v15147_v52 = vld [vmem:[#allocation62_spill] sm:$0xff] }
 0x425   : > { %10414 = vmatprep.subr.bf16.mxu0 %v15087_v19 }
 0x426   : > { %10240 = vmatpush3.bf16.msra.mxu1 %v15082_v4 }
 0x427   : > { %9643 = vmatmul.mubr.f32.gmra.mrb[30].mxu0 %v13937_v46  ;;  %10242 = vmatprep.subr.bf16.mxu1 %v10241_v13  ;;  %v15149_v46 = vld [vmem:[#allocation63_spill] sm:$0xff] }
 0x428   : > { %10416 = vmatpush3.bf16.msra.mxu0 %v15087_v19  ;;  %9677 = vmatprep.mubr.f32.mxu0 %v6296_v53  ;;  %v15100_v53 = vld [vmem:[#allocation16_spill] sm:$0xff] }
 0x429   : > { %9414 = vmatmul.mubr.f32.vlgmr.msra.gmra.mrb[32].mxu1 %v15092_v47  ;;  %10418 = vmatprep.subr.bf16.mxu0 %v15093_v9 }
 0x42a   : > { %9416 = vmatprep.mubr.f32.mxu1 %v15094_v3  ;;  %10244 = vmatpush3.bf16.msra.mxu1 %v10241_v13  ;;  %v15103_v13 = vld [vmem:[#allocation15_spill] sm:$0xff]  ;;  %v15105_v3 = vand.u32 4294901760, %v15071_v62  ;;  %v15112_v62 = vld [vmem:[#allocation20_spill] sm:$0xff] }
 0x42b   : > { %10246 = vmatprep.subr.bf16.mxu1 %v10245_v50  ;;  %v15104_v33 = vand.u32 4294901760, %v15103_v13  ;;  %v15113_v7 = vand.u32 4294901760, %v15112_v62  ;;  %v15127_v62 = vld [vmem:[#allocation51_spill] sm:$0xff] }
 0x42c   : > { %10420 = vmatpush3.bf16.msra.mxu0 %v15093_v9 }
 0x42d   : > { %9417 = vmatmul.mubr.f32.gmra.mrb[34].mxu1 %v15099_v59  ;;  %10422 = vmatprep.subr.bf16.mxu0 %v15100_v53  ;;  %v10253_v47 = vpack.c.bf16 %v15104_v33, %v15102_v20  ;;  %v15114_v59 = vld [vmem:[#allocation21_spill] sm:$0xff]  ;;  %v15118_v20 = vld [vmem:[#allocation47_spill] sm:$0xff] }
 0x42e   : > { %9419 = vmatprep.mubr.f32.mxu1 %v5378_v14  ;;  %10248 = vmatpush3.bf16.msra.mxu1 %v10245_v50  ;;  %v15108_v14 = vand.u32 4294901760, %v15107_v39  ;;  %v15110_v50 = vand.u32 4294901760, %v15109_v35  ;;  %v15115_v21 = vand.u32 4294901760, %v15114_v59  ;;  %v15119_v13 = vand.u32 4294901760, %v15118_v20 }
 0x42f   : > { %10250 = vmatprep.subr.bf16.mxu1 %v10249_v45  ;;  %v15124_v35 = vand.u32 4294901760, %v13871_v25  ;;  %v15133_v25 = vld [vmem:[#allocation54_spill] sm:$0xff] }
 0x430   : > { %10424 = vmatpush3.bf16.msra.mxu0 %v15100_v53  ;;  %v10257_v17 = vpack.c.bf16 %v15110_v50, %v15108_v14  ;;  %v10433_v18 = vpack.c.bf16 %v15115_v21, %v15113_v7  ;;  %v15128_v7 = vand.u32 4294901760, %v15127_v62  ;;  %v15129_v21 = vld [vmem:[#allocation52_spill] sm:$0xff] }
 0x431   : > { %9420 = vmatmul.mubr.f32.gmra.mrb[36].mxu1 %v15105_v3  ;;  %10426 = vmatprep.subr.bf16.mxu0 %v15106_v1  ;;  %v15122_v3 = vld [vmem:[#allocation49_spill] sm:$0xff] }
 0x432   : > { %9422 = vmatprep.mubr.f32.mxu1 %v5398_v58  ;;  %10252 = vmatpush3.bf16.msra.mxu1 %v10249_v45  ;;  %v15116_v58 = vld [vmem:[#allocation22_spill] sm:$0xff]  ;;  %v15123_v39 = vand.u32 4294901760, %v15122_v3 }
 0x433   : > { %10254 = vmatprep.subr.bf16.mxu1 %v10253_v47  ;;  %v15117_v45 = vand.u32 4294901760, %v15116_v58  ;;  %v15130_v58 = vand.u32 4294901760, %v15129_v21 }
 0x434   : > { %10428 = vmatpush3.bf16.msra.mxu0 %v15106_v1 }
 0x435   : > { %9423 = vmatmul.mubr.f32.gmra.mrb[38].mxu1 %v5408_v36  ;;  %10430 = vmatprep.subr.bf16.mxu0 %v15111_v57  ;;  %v10261_v33 = vpack.c.bf16 %v15119_v13, %v15117_v45  ;;  %v15121_v36 = vand.u32 4294901760, %v15120_v30  ;;  %v15131_v45 = vld [vmem:[#allocation53_spill] sm:$0xff]  ;;  %v15135_v30 = vld [vmem:[#allocation55_spill] sm:$0xff] }
 0x436   : > { %10256 = vmatpush3.bf16.msra.mxu1 %v10253_v47  ;;  %9457 = vmatprep.mubr.f32.mxu1 %v13781_v54  ;;  %v15125_v47 = vld [vmem:[#allocation50_spill] sm:$0xff]  ;;  %v15132_v20 = vand.u32 4294901760, %v15131_v45 }
 0x437   : > { %10258 = vmatprep.subr.bf16.mxu1 %v10257_v17  ;;  %v10437_v14 = vpack.c.bf16 %v15123_v39, %v15121_v36  ;;  %v15126_v50 = vand.u32 4294901760, %v15125_v47  ;;  %v15136_v36 = vand.u32 4294901760, %v15135_v30  ;;  %v15151_v47 = vld [vmem:[#allocation64_spill] sm:$0xff] }
 0x438   : > { %10432 = vmatpush3.bf16.msra.mxu0 %v15111_v57  ;;  %v10441_v13 = vpack.c.bf16 %v15132_v20, %v15130_v58 }
 0x439   : > { %10434 = vmatprep.subr.bf16.mxu0 %v10433_v18  ;;  %v10265_v59 = vpack.c.bf16 %v15128_v7, %v15126_v50  ;;  %v15152_v50 = vand.u32 4294901760, %v15151_v47 }
 0x43a   : > { %10260 = vmatpush3.bf16.msra.mxu1 %v10257_v17  ;;  %v15134_v17 = vand.u32 4294901760, %v15133_v25 }
 0x43b   : > { %9678 = vmatmul.mubr.f32.vlgmr.msra.gmra.mrb[24].mxu0 %v15124_v35  ;;  %10262 = vmatprep.subr.bf16.mxu1 %v10261_v33 }
 0x43c   : > { %9680 = vmatprep.mubr.f32.mxu0 %v6316_v11  ;;  %10436 = vmatpush3.bf16.msra.mxu0 %v10433_v18  ;;  %v10269_v3 = vpack.c.bf16 %v15136_v36, %v15134_v17  ;;  %v15138_v11 = vand.u32 4294901760, %v15137_v43  ;;  %v15139_v18 = vld [vmem:[#allocation57_spill] sm:$0xff] }
 0x43d   : > { %10438 = vmatprep.subr.bf16.mxu0 %v10437_v14  ;;  %v15140_v39 = vand.u32 4294901760, %v15139_v18 }
 0x43e   : > { %10264 = vmatpush3.bf16.msra.mxu1 %v10261_v33 }
 0x43f   : > { %9681 = vmatmul.mubr.f32.gmra.mrb[26].mxu0 %v6326_v16  ;;  %10266 = vmatprep.subr.bf16.mxu1 %v10265_v59  ;;  %v10445_v35 = vpack.c.bf16 %v15140_v39, %v15138_v11  ;;  %v15142_v16 = vand.u32 4294901760, %v15141_v24 }
 0x440   : > { %9683 = vmatprep.mubr.f32.mxu0 %v6336_v29  ;;  %10440 = vmatpush3.bf16.msra.mxu0 %v10437_v14  ;;  %v15144_v29 = vand.u32 4294901760, %v15143_v2 }
 0x441   : > { %10442 = vmatprep.subr.bf16.mxu0 %v10441_v13 }
 0x442   : > { %10268 = vmatpush3.bf16.msra.mxu1 %v10265_v59  ;;  %v10449_v33 = vpack.c.bf16 %v15144_v29, %v15142_v16  ;;  %v15155_v59 = vld [vmem:[#allocation66_spill] sm:$0xff] }
 0x443   : > { %9684 = vmatmul.mubr.f32.gmra.mrb[28].mxu0 %v6346_v51  ;;  %10270 = vmatprep.subr.bf16.mxu1 %v10269_v3  ;;  %v15146_v51 = vand.u32 4294901760, %v15145_v22  ;;  %v15156_v21 = vand.u32 4294901760, %v15155_v59 }
 0x444   : > { %9686 = vmatprep.mubr.f32.mxu0 %v6356_v55  ;;  %10444 = vmatpush3.bf16.msra.mxu0 %v10441_v13  ;;  %v15148_v55 = vand.u32 4294901760, %v15147_v52 }
 0x445   : > { %10446 = vmatprep.subr.bf16.mxu0 %v10445_v35 }
 0x446   : > { %10272 = vmatpush3.bf16.msra.mxu1 %v10269_v3  ;;  %v10453_v14 = vpack.c.bf16 %v15148_v55, %v15146_v51 }
 0x447   : > { %9687 = vmatmul.mubr.f32.gmra.mrb[30].mxu0 %v6366_v28  ;;  %10274 = vmatprep.subr.bf16.mxu1 %v15063_v32  ;;  %v15150_v28 = vand.u32 4294901760, %v15149_v46 }
 0x448   : > { %10448 = vmatpush3.bf16.msra.mxu0 %v10445_v35  ;;  %9721 = vmatprep.mubr.f32.mxu0 %v13864_v37 }
 0x449   : > { %9458 = vmatmul.mubr.f32.vlgmr.msra.gmra.mrb[32].mxu1 %v13779_v61  ;;  %10450 = vmatprep.subr.bf16.mxu0 %v10449_v33  ;;  %v10457_v62 = vpack.c.bf16 %v15152_v50, %v15150_v28 }
 0x44a   : > { %9460 = vmatprep.mubr.f32.mxu1 %v13794_v27  ;;  %10276 = vmatpush3.bf16.msra.mxu1 %v15063_v32  ;;  %v15153_v32 = vld [vmem:[#allocation65_spill] sm:$0xff] }
 0x44b   : > { %10278 = vmatprep.subr.bf16.mxu1 %v15067_v42  ;;  %v15154_v7 = vand.u32 4294901760, %v15153_v32 }
 0x44c   : > { %10452 = vmatpush3.bf16.msra.mxu0 %v10449_v33 }
 0x44d   : > { %9461 = vmatmul.mubr.f32.gmra.mrb[34].mxu1 %v13792_v12  ;;  %10454 = vmatprep.subr.bf16.mxu0 %v10453_v14  ;;  %v10461_v58 = vpack.c.bf16 %v15156_v21, %v15154_v7 }
 0x44e   : > { %9463 = vmatprep.mubr.f32.mxu1 %v13814_v41  ;;  %10280 = vmatpush3.bf16.msra.mxu1 %v15067_v42 }
 0x44f   : > { %10282 = vmatprep.subr.bf16.mxu1 %v15070_v40 }
 0x450   : > { %10456 = vmatpush3.bf16.msra.mxu0 %v10453_v14 }
 0x451   : > { %9464 = vmatmul.mubr.f32.gmra.mrb[36].mxu1 %v13811_v44  ;;  %10458 = vmatprep.subr.bf16.mxu0 %v10457_v62 }
 0x452   : > { %9466 = vmatprep.mubr.f32.mxu1 %v13834_v31  ;;  %10284 = vmatpush3.bf16.msra.mxu1 %v15070_v40 }
 0x453   : > { %10286 = vmatprep.subr.bf16.mxu1 %v15073_v56 }
 0x454   : > { %10460 = vmatpush3.bf16.msra.mxu0 %v10457_v62 }
 0x455   : > { %9467 = vmatmul.mubr.f32.gmra.mrb[38].mxu1 %v13831_v6  ;;  %10462 = vmatprep.subr.bf16.mxu0 %v10461_v58 }
 0x456   : > { %10288 = vmatpush3.bf16.msra.mxu1 %v15073_v56  ;;  %9501 = vmatprep.mubr.f32.mxu1 %v13781_v54 }
 0x457   : > { %10290 = vmatprep.subr.bf16.mxu1 %v15076_v49 }
 0x458   : > { %10464 = vmatpush3.bf16.msra.mxu0 %v10461_v58 }
 0x459   : > { %10466 = vmatprep.subr.bf16.mxu0 %v15077_v10 }
 0x45a   : > { %10292 = vmatpush3.bf16.msra.mxu1 %v15076_v49 }
 0x45b   : > { %9722 = vmatmul.mubr.f32.vlgmr.msra.gmra.mrb[24].mxu0 %v13857_v48  ;;  %10294 = vmatprep.subr.bf16.mxu1 %v15078_v0 }
 0x45c   : > { %9724 = vmatprep.mubr.f32.mxu0 %v13884_v26  ;;  %10468 = vmatpush3.bf16.msra.mxu0 %v15077_v10 }
 0x45d   : > { %10470 = vmatprep.subr.bf16.mxu0 %v15079_v5 }
 0x45e   : > { %10296 = vmatpush3.bf16.msra.mxu1 %v15078_v0 }
 0x45f   : > { %9725 = vmatmul.mubr.f32.gmra.mrb[26].mxu0 %v13880_v34  ;;  %10298 = vmatprep.subr.bf16.mxu1 %v15080_v60 }
 0x460   : > { %9727 = vmatprep.mubr.f32.mxu0 %v13909_v23  ;;  %10472 = vmatpush3.bf16.msra.mxu0 %v15079_v5 }
 0x461   : > { %10474 = vmatprep.subr.bf16.mxu0 %v15081_v63 }
 0x462   : > { %10300 = vmatpush3.bf16.msra.mxu1 %v15080_v60 }
 0x463   : > { %9728 = vmatmul.mubr.f32.gmra.mrb[28].mxu0 %v13904_v15  ;;  %10302 = vmatprep.subr.bf16.mxu1 %v15082_v4 }
 0x464   : > { %9730 = vmatprep.mubr.f32.mxu0 %v13932_v8  ;;  %10476 = vmatpush3.bf16.msra.mxu0 %v15081_v63 }
 0x465   : > { %10478 = vmatprep.subr.bf16.mxu0 %v15087_v19 }
 0x466   : > { %10304 = vmatpush3.bf16.msra.mxu1 %v15082_v4 }
 0x467   : > { %9731 = vmatmul.mubr.f32.gmra.mrb[30].mxu0 %v13928_v38 }
 0x468   : > { %10480 = vmatpush3.bf16.msra.mxu0 %v15087_v19  ;;  %9765 = vmatprep.mubr.f32.mxu0 %v13864_v37 }
 0x469   : > { %9502 = vmatmul.mubr.f32.vlgmr.msra.gmra.mrb[32].mxu1 %v13779_v61  ;;  %10482 = vmatprep.subr.bf16.mxu0 %v15093_v9 }
 0x46a   : > { %9504 = vmatprep.mubr.f32.mxu1 %v13794_v27 }
 0x46c   : > { %10484 = vmatpush3.bf16.msra.mxu0 %v15093_v9 }
 0x46d   : > { %9505 = vmatmul.mubr.f32.gmra.mrb[34].mxu1 %v13792_v12  ;;  %10486 = vmatprep.subr.bf16.mxu0 %v15100_v53 }
 0x46e   : > { %9507 = vmatprep.mubr.f32.mxu1 %v13814_v41 }
 0x470   : > { %10488 = vmatpush3.bf16.msra.mxu0 %v15100_v53 }
 0x471   : > { %9508 = vmatmul.mubr.f32.gmra.mrb[36].mxu1 %v13811_v44  ;;  %10490 = vmatprep.subr.bf16.mxu0 %v15106_v1 }
 0x472   : > { %9510 = vmatprep.mubr.f32.mxu1 %v13834_v31 }
 0x474   : > { %10492 = vmatpush3.bf16.msra.mxu0 %v15106_v1 }
 0x475   : > { %9511 = vmatmul.mubr.f32.gmra.mrb[38].mxu1 %v13831_v6  ;;  %10494 = vmatprep.subr.bf16.mxu0 %v15111_v57 }
 0x478   : > { %10496 = vmatpush3.bf16.msra.mxu0 %v15111_v57 }
 0x47b   : > { %9766 = vmatmul.mubr.f32.vlgmr.msra.gmra.mrb[24].mxu0 %v13857_v48 }
 0x47c   : > { %9768 = vmatprep.mubr.f32.mxu0 %v13884_v26 }
 0x47f   : > { %9769 = vmatmul.mubr.f32.gmra.mrb[26].mxu0 %v13880_v34 }
 0x480   : > { %9771 = vmatprep.mubr.f32.mxu0 %v13909_v23 }
 0x483   : > { %9772 = vmatmul.mubr.f32.gmra.mrb[28].mxu0 %v13904_v15 }
 0x484   : > { %9774 = vmatprep.mubr.f32.mxu0 %v13932_v8 }
 0x487   : > { %9775 = vmatmul.mubr.f32.gmra.mrb[30].mxu0 %v13928_v38 }
 0x53c   : > { %v14230_v12 = vpop.f32.mrb[32].mxu1 }
 0x53d   : > { %7157 = vmax.xlane.f32.xlu1 %v14230_v12  ;;  %v14233_v44 = vpop.f32.mrb[33].mxu1 }
 0x53e   : > { %7155 = vmax.xlane.f32.xlu0 %v14233_v44 }
 0x540   : > { %v14236_v54 = vpop.f32.mrb[34].mxu1 }
 0x541   : > { %v14238_v61 = vpop.f32.mrb[35].mxu1 }
 0x542   : > { %7159 = vmax.xlane.f32.xlu0 %v14238_v61 }
 0x544   : > { %v14241_v41 = vpop.f32.mrb[36].mxu1 }
 0x545   : > { %v14243_v27 = vpop.f32.mrb[37].mxu1 }
 0x546   : > { %7161 = vmax.xlane.f32.xlu0 %v14236_v54  ;;  %7163 = vmax.xlane.f32.xlu1 %v14243_v27 }
 0x548   : > { %v14247_v48 = vpop.f32.mrb[38].mxu1 }
 0x549   : > { %v14249_v6 = vpop.f32.mrb[39].mxu1 }
 0x54a   : > { %7165 = vmax.xlane.f32.xlu0 %v14241_v41  ;;  %7167 = vmax.xlane.f32.xlu1 %v14249_v6 }
 0x54e   : > { %v14253_v31 = vpop.f32.mrb[24].mxu0  ;;  %7169 = vmax.xlane.f32.xlu0 %v14247_v48 }
 0x54f   : > { %v14256_v37 = vpop.f32.mrb[25].mxu0 }
 0x550   : > { %7171 = vmax.xlane.f32.xlu1 %v14256_v37 }
 0x552   : > { %v14259_v34 = vpop.f32.mrb[26].mxu0  ;;  %7173 = vmax.xlane.f32.xlu0 %v14253_v31 }
 0x553   : > { %v14262_v26 = vpop.f32.mrb[27].mxu0 }
 0x554   : > { %7175 = vmax.xlane.f32.xlu1 %v14262_v26 }
 0x556   : > { %v14265_v15 = vpop.f32.mrb[28].mxu0  ;;  %7177 = vmax.xlane.f32.xlu0 %v14259_v34 }
 0x557   : > { %v14268_v23 = vpop.f32.mrb[29].mxu0 }
 0x558   : > { %7179 = vmax.xlane.f32.xlu1 %v14268_v23 }
 0x55a   : > { %v14271_v38 = vpop.f32.mrb[30].mxu0  ;;  %7181 = vmax.xlane.f32.xlu0 %v14265_v15 }
 0x55b   : > { %v14274_v8 = vpop.f32.mrb[31].mxu0 }
 0x55c   : > { %7183 = vmax.xlane.f32.xlu1 %v14274_v8 }
 0x55e   : > { %7185 = vmax.xlane.f32.xlu0 %v14271_v38 }
 0x5ca   : > { %v14278_v42 = vpop.xlane.xlu1 %7157 }
 0x5cb   : > { %v7188_v40 = vsub.f32 %v14230_v12, %v14278_v42  ;;  %v14282_v56 = vpop.xlane.xlu0 %7155 }
 0x5cc   : > { %v7187_v49 = vsub.f32 %v14233_v44, %v14282_v56 }
 0x5cd   : > { %v7205_v10 = vmul.f32 1.442695, %v7188_v40 }
 0x5ce   : > { %v7203_v0 = vmul.f32 1.442695, %v7187_v49 }
 0x5cf   : > { %10836 = vpow2.f32 %v7205_v10  ;;  %v14286_v5 = vpop.xlane.xlu0 %7159 }
 0x5d0   : > { %10838 = vpow2.f32 %v7203_v0  ;;  %v7189_v60 = vsub.f32 %v14238_v61, %v14286_v5 }
 0x5d2   : > { %v7207_v63 = vmul.f32 1.442695, %v7189_v60 }
 0x5d3   : > { %v14290_v4 = vpop.xlane.xlu0 %7161  ;;  %v14292_v19 = vpop.xlane.xlu1 %7163 }
 0x5d4   : > { %10840 = vpow2.f32 %v7207_v63  ;;  %v7190_v9 = vsub.f32 %v14236_v54, %v14290_v4  ;;  %v7191_v53 = vsub.f32 %v14243_v27, %v14292_v19 }
 0x5d6   : > { %v7209_v1 = vmul.f32 1.442695, %v7190_v9  ;;  %v7211_v57 = vmul.f32 1.442695, %v7191_v53 }
 0x5d7   : > { %v14298_v45 = vpop.xlane.xlu0 %7165  ;;  %v14300_v20 = vpop.xlane.xlu1 %7167 }
 0x5d8   : > { %10842 = vpow2.f32 %v7209_v1  ;;  %v7192_v13 = vsub.f32 %v14241_v41, %v14298_v45  ;;  %v7193_v25 = vsub.f32 %v14249_v6, %v14300_v20 }
 0x5d9   : > { %v14306_v17 = vpop.eup %10836  ;;  %10844 = vpow2.f32 %v7211_v57 }
 0x5da   : > { %v14308_v30 = vpop.eup %10838  ;;  %v7213_v36 = vmul.f32 1.442695, %v7192_v13  ;;  %v7215_v3 = vmul.f32 1.442695, %v7193_v25  ;;  %7237 = vadd.xlane.f32.xlu0 %v14306_v17 }
 0x5db   : > { %v14311_v43 = vpop.xlane.xlu0 %7169  ;;  %7235 = vadd.xlane.f32.xlu1 %v14308_v30 }
 0x5dc   : > { %10846 = vpow2.f32 %v7213_v36  ;;  %v7194_v11 = vsub.f32 %v14247_v48, %v14311_v43 }
 0x5dd   : > { %10848 = vpow2.f32 %v7215_v3  ;;  %v14316_v18 = vpop.xlane.xlu1 %7171 }
 0x5de   : > { %v14318_v39 = vpop.eup %10840  ;;  %v7217_v35 = vmul.f32 1.442695, %v7194_v11  ;;  %v7195_v24 = vsub.f32 %v14256_v37, %v14316_v18 }
 0x5df   : > { %v14322_v16 = vpop.xlane.xlu0 %7173  ;;  %7239 = vadd.xlane.f32.xlu1 %v14318_v39 }
 0x5e0   : > { %10850 = vpow2.f32 %v7217_v35  ;;  %v7219_v2 = vmul.f32 1.442695, %v7195_v24  ;;  %v7196_v29 = vsub.f32 %v14253_v31, %v14322_v16 }
 0x5e1   : > { %v14327_v33 = vpop.xlane.xlu1 %7175 }
 0x5e2   : > { %v14329_v22 = vpop.eup %10842  ;;  %10852 = vpow2.f32 %v7219_v2  ;;  %v7221_v51 = vmul.f32 1.442695, %v7196_v29  ;;  %v7197_v52 = vsub.f32 %v14262_v26, %v14327_v33 }
 0x5e3   : > { %v14333_v55 = vpop.eup %10844  ;;  %7241 = vadd.xlane.f32.xlu0 %v14329_v22  ;;  %v14336_v14 = vpop.xlane.xlu0 %7177 }
 0x5e4   : > { %10854 = vpow2.f32 %v7221_v51  ;;  %v7223_v46 = vmul.f32 1.442695, %v7197_v52  ;;  %v7198_v28 = vsub.f32 %v14259_v34, %v14336_v14  ;;  %7243 = vadd.xlane.f32.xlu1 %v14333_v55 }
 0x5e5   : > { %v14341_v47 = vpop.xlane.xlu1 %7179 }
 0x5e6   : > { %v14343_v50 = vpop.eup %10846  ;;  %10856 = vpow2.f32 %v7223_v46  ;;  %v7225_v62 = vmul.f32 1.442695, %v7198_v28  ;;  %v7199_v32 = vsub.f32 %v14268_v23, %v14341_v47 }
 0x5e7   : > { %v14347_v7 = vpop.eup %10848  ;;  %7245 = vadd.xlane.f32.xlu0 %v14343_v50  ;;  %v14350_v59 = vpop.xlane.xlu0 %7181 }
 0x5e8   : > { %10858 = vpow2.f32 %v7225_v62  ;;  %v7227_v21 = vmul.f32 1.442695, %v7199_v32  ;;  %v7200_v58 = vsub.f32 %v14265_v15, %v14350_v59  ;;  %7247 = vadd.xlane.f32.xlu1 %v14347_v7 }
 0x5e9   : > { %v14355_v40 = vpop.xlane.xlu1 %7183 }
 0x5ea   : > { %v14357_v49 = vpop.eup %10850  ;;  %10860 = vpow2.f32 %v7227_v21  ;;  %v7229_v10 = vmul.f32 1.442695, %v7200_v58  ;;  %v7201_v0 = vsub.f32 %v14274_v8, %v14355_v40 }
 0x5eb   : > { %7249 = vadd.xlane.f32.xlu0 %v14357_v49  ;;  %v14362_v60 = vpop.xlane.xlu0 %7185 }
 0x5ec   : > { %v14364_v63 = vpop.eup %10852  ;;  %10862 = vpow2.f32 %v7229_v10  ;;  %v7231_v9 = vmul.f32 1.442695, %v7201_v0  ;;  %v7202_v53 = vsub.f32 %v14271_v38, %v14362_v60 }
 0x5ed   : > { %7251 = vadd.xlane.f32.xlu1 %v14364_v63 }
 0x5ee   : > { %v14369_v1 = vpop.eup %10854  ;;  %10864 = vpow2.f32 %v7231_v9  ;;  %v7233_v57 = vmul.f32 1.442695, %v7202_v53 }
 0x5ef   : > { %7253 = vadd.xlane.f32.xlu0 %v14369_v1 }
 0x5f0   : > { %v14372_v13 = vpop.eup %10856  ;;  %10866 = vpow2.f32 %v7233_v57 }
 0x5f1   : > { %7255 = vadd.xlane.f32.xlu1 %v14372_v13 }
 0x5f2   : > { %v14375_v25 = vpop.eup %10858 }
 0x5f3   : > { %7257 = vadd.xlane.f32.xlu0 %v14375_v25 }
 0x5f4   : > { %v14378_v36 = vpop.eup %10860 }
 0x5f5   : > { %7259 = vadd.xlane.f32.xlu1 %v14378_v36 }
 0x5f6   : > { %v14381_v3 = vpop.eup %10862 }
 0x5f7   : > { %7261 = vadd.xlane.f32.xlu0 %v14381_v3 }
 0x5f8   : > { %v14384_v11 = vpop.eup %10864 }
 0x5f9   : > { %7263 = vadd.xlane.f32.xlu1 %v14384_v11 }
 0x5fa   : > { %v14387_v35 = vpop.eup %10866 }
 0x5fb   : > { %7265 = vadd.xlane.f32.xlu0 %v14387_v35 }
 0x667   : > { %v7238_v24 = vpop.xlane.xlu0 %7237 }
 0x668   : > { %10868 = vlog2.f32 %v7238_v24  ;;  %v7348_v2 = vsub.f32 %v7238_v24, %v14306_v17  ;;  %v7236_v29 = vpop.xlane.xlu1 %7235 }
 0x669   : > { %10870 = vlog2.f32 %v7236_v29  ;;  %v7347_v51 = vsub.f32 %v7236_v29, %v14308_v30 }
 0x66a   : > { %10872 = vlog2.f32 %v7348_v2 }
 0x66b   : > { %10874 = vlog2.f32 %v7347_v51 }
 0x66c   : > { %v7240_v52 = vpop.xlane.xlu1 %7239 }
 0x66d   : > { %10876 = vlog2.f32 %v7240_v52  ;;  %v7349_v46 = vsub.f32 %v7240_v52, %v14318_v39 }
 0x66f   : > { %10878 = vlog2.f32 %v7349_v46 }
 0x670   : > { %v7242_v28 = vpop.xlane.xlu0 %7241 }
 0x671   : > { %10880 = vlog2.f32 %v7242_v28  ;;  %v7350_v62 = vsub.f32 %v7242_v28, %v14329_v22  ;;  %v7244_v32 = vpop.xlane.xlu1 %7243 }
 0x672   : > { %v10869_v21 = vpop.eup %10868  ;;  %10882 = vlog2.f32 %v7244_v32  ;;  %v7351_v17 = vsub.f32 %v7244_v32, %v14333_v55 }
 0x673   : > { %v10871_v58 = vpop.eup %10870  ;;  %v7270_v10 = vmul.f32 0.6931472, %v10869_v21  ;;  %10884 = vlog2.f32 %v7350_v62 }
 0x674   : > { %v10873_v30 = vpop.eup %10872  ;;  %v7268_v0 = vmul.f32 0.6931472, %v10871_v58  ;;  %10886 = vlog2.f32 %v7351_v17  ;;  %v7246_v9 = vpop.xlane.xlu0 %7245 }
 0x675   : > { %v10875_v53 = vpop.eup %10874  ;;  %v7300_v39 = vadd.f32 %v7270_v10, %v14278_v42  ;;  %v7366_v57 = vmul.f32 0.6931472, %v10873_v30  ;;  %10888 = vlog2.f32 %v7246_v9  ;;  %v7352_v24 = vsub.f32 %v7246_v9, %v14343_v50  ;;  %v7248_v22 = vpop.xlane.xlu1 %7247 }
 0x676   : > { %v7299_v2 = vadd.f32 %v7268_v0, %v14282_v56  ;;  %v7364_v29 = vmul.f32 0.6931472, %v10875_v53  ;;  %10890 = vlog2.f32 %v7248_v22  ;;  %v7353_v55 = vsub.f32 %v7248_v22, %v14347_v7 }
 0x677   : > { %v10877_v51 = vpop.eup %10876  ;;  %10892 = vlog2.f32 %v7352_v24  ;;  %v7316_v52 = vsub.f32 %v14230_v12, %v7300_v39  ;;  %v7396_v46 = vsub.f32 %v7366_v57, %v7270_v10 }
 0x678   : > { %v14400_v28 = vmul.f32 0.6931472, %v10877_v51  ;;  %10894 = vlog2.f32 %v7353_v55  ;;  %v7250_v42 = vpop.xlane.xlu0 %7249  ;;  %v7315_v62 = vsub.f32 %v14233_v44, %v7299_v2  ;;  %v7395_v32 = vsub.f32 %v7364_v29, %v7268_v0  ;;  %v15157_v29 = vld [vmem:[#allocation24_spill] sm:$0xff] }
 0x679   : > { %v10879_v50 = vpop.eup %10878  ;;  %10896 = vlog2.f32 %v7250_v42  ;;  %v7354_v56 = vsub.f32 %v7250_v42, %v14357_v49  ;;  %v7332_v21 = vmax.f32 %v7316_v52, -100.0  ;;  %v7412_v17 = vmax.f32 %v7396_v46, -100.0  ;;  %v15158_v42 = vld [vmem:[#allocation25_spill] sm:$0xff] }
 0x67a   : > { %v7301_v7 = vadd.f32 %v14400_v28, %v14286_v5  ;;  %v7252_v58 = vpop.xlane.xlu1 %7251  ;;  %v7331_v30 = vmax.f32 %v7315_v62, -100.0  ;;  %v7411_v12 = vmax.f32 %v7395_v32, -100.0  ;;  %v14406_v9 = vmul.f32 0.6931472, %v10879_v50 }
 0x67b   : > { %v10881_v10 = vpop.eup %10880  ;;  %10898 = vlog2.f32 %v7354_v56  ;;  %v7355_v53 = vsub.f32 %v7252_v58, %v14364_v63  ;;  %v7428_v44 = vsub.f32 %v7332_v21, %v7412_v17 }
 0x67c   : > { %v10883_v0 = vpop.eup %10882  ;;  %v14409_v39 = vmul.f32 0.6931472, %v10881_v10  ;;  %10900 = vlog2.f32 %v7252_v58  ;;  %v7254_v49 = vpop.xlane.xlu0 %7253  ;;  %v7427_v57 = vsub.f32 %v7331_v30, %v7411_v12  ;;  %v7317_v24 = vsub.f32 %v14238_v61, %v7301_v7 }
 0x67d   : > { %v10885_v22 = vpop.eup %10884  ;;  %v14412_v5 = vmul.f32 0.6931472, %v10883_v0  ;;  %10902 = vlog2.f32 %v7355_v53  ;;  %v7356_v2 = vsub.f32 %v7254_v49, %v14369_v1  ;;  %v7444_v55 = vmul.f32 %v15157_v29, %v7428_v44 }
 0x67e   : > { %v10887_v51 = vpop.eup %10886  ;;  %v7302_v63 = vadd.f32 %v14409_v39, %v14290_v4  ;;  %v7370_v52 = vmul.f32 0.6931472, %v10885_v22  ;;  %10904 = vlog2.f32 %v7254_v49  ;;  %v7256_v46 = vpop.xlane.xlu1 %7255  ;;  %v7443_v62 = vmul.f32 %v15158_v42, %v7427_v57 }
 0x67f   : > { %v10889_v32 = vpop.eup %10888  ;;  %v14421_v61 = vadd.f32 %v14412_v5, %v14292_v19  ;;  %v14423_v50 = vmul.f32 0.6931472, %v10887_v51  ;;  %10906 = vlog2.f32 %v7356_v2  ;;  %v7357_v1 = vsub.f32 %v7256_v46, %v14372_v13 }
 0x680   : > { %v10891_v56 = vpop.eup %10890  ;;  %v14426_v21 = vmul.f32 0.6931472, %v10889_v32  ;;  %10908 = vlog2.f32 %v7256_v46  ;;  %v7258_v4 = vpop.xlane.xlu0 %7257  ;;  %v7460_v7 = vadd.f32 %v7444_v55, %v7412_v17  ;;  %v7459_v58 = vadd.f32 %v7443_v62, %v7411_v12 }
 0x681   : > { %v10893_v30 = vpop.eup %10892  ;;  %v14428_v10 = vmul.f32 0.6931472, %v10891_v56  ;;  %10910 = vlog2.f32 %v7357_v1  ;;  %v7358_v53 = vsub.f32 %v7258_v4, %v14375_v25  ;;  %v7333_v19 = vmax.f32 %v7317_v24, -100.0 }
 0x682   : > { %v10895_v44 = vpop.eup %10894  ;;  %v14433_v0 = vadd.f32 %v14426_v21, %v14298_v45  ;;  %v14435_v13 = vmul.f32 0.6931472, %v10893_v30  ;;  %10912 = vlog2.f32 %v7258_v4  ;;  %v7260_v49 = vpop.xlane.xlu1 %7259  ;;  %v7476_v57 = vsub.f32 0.0, %v7460_v7 }
 0x683   : > { %v10897_v22 = vpop.eup %10896  ;;  %v14439_v17 = vadd.f32 %v14428_v10, %v14300_v20  ;;  %v14441_v12 = vmul.f32 0.6931472, %v10895_v44  ;;  %10914 = vlog2.f32 %v7358_v53  ;;  %v7359_v25 = vsub.f32 %v7260_v49, %v14378_v36  ;;  %v15159_v44 = vld [vmem:[#allocation26_spill] sm:$0xff] }
 0x684   : > { %v14444_v24 = vmul.f32 0.6931472, %v10897_v22  ;;  %10916 = vlog2.f32 %v7260_v49  ;;  %7493 = vadd.xlane.f32.xlu0 %v7476_v57  ;;  %v7262_v45 = vpop.xlane.xlu0 %7261  ;;  %v7475_v2 = vsub.f32 0.0, %v7459_v58  ;;  %v7397_v29 = vsub.f32 %v14406_v9, %v14400_v28 }
 0x685   : > { %v10899_v55 = vpop.eup %10898  ;;  %10918 = vlog2.f32 %v7359_v25  ;;  %v7360_v51 = vsub.f32 %v7262_v45, %v14381_v3  ;;  %v7318_v20 = vsub.f32 %v14236_v54, %v7302_v63  ;;  %v7398_v46 = vsub.f32 %v7370_v52, %v14409_v39 }
 0x686   : > { %v10901_v42 = vpop.eup %10900  ;;  %v14453_v36 = vadd.f32 %v14444_v24, %v14311_v43  ;;  %v14455_v62 = vmul.f32 0.6931472, %v10899_v55  ;;  %10920 = vlog2.f32 %v7262_v45  ;;  %7491 = vadd.xlane.f32.xlu1 %v7475_v2  ;;  %v7264_v32 = vpop.xlane.xlu1 %7263  ;;  %v7413_v1 = vmax.f32 %v7397_v29, -100.0  ;;  %v15160_v29 = vld [vmem:[#allocation27_spill] sm:$0xff] }
 0x687   : > { %v10903_v28 = vpop.eup %10902  ;;  %v14457_v9 = vmul.f32 0.6931472, %v10901_v42  ;;  %10922 = vlog2.f32 %v7360_v51  ;;  %v7361_v3 = vsub.f32 %v7264_v32, %v14384_v11  ;;  %v7334_v54 = vmax.f32 %v7318_v20, -100.0 }
 0x688   : > { %v10905_v63 = vpop.eup %10904  ;;  %v14460_v39 = vmul.f32 0.6931472, %v10903_v28  ;;  %10924 = vlog2.f32 %v7264_v32  ;;  %v7266_v52 = vpop.xlane.xlu0 %7265  ;;  %v7429_v43 = vsub.f32 %v7333_v19, %v7413_v1  ;;  %v7414_v56 = vmax.f32 %v7398_v46, -100.0 }
 0x689   : > { %v10907_v4 = vpop.eup %10906  ;;  %v14464_v7 = vadd.f32 %v14457_v9, %v14316_v18  ;;  %v14466_v58 = vmul.f32 0.6931472, %v10905_v63  ;;  %10926 = vlog2.f32 %v7361_v3  ;;  %v7362_v30 = vsub.f32 %v7266_v52, %v14387_v35 }
 0x68a   : > { %v10909_v53 = vpop.eup %10908  ;;  %v14469_v11 = vmul.f32 0.6931472, %v10907_v4  ;;  %10928 = vlog2.f32 %v7266_v52  ;;  %v7445_v49 = vmul.f32 %v15159_v44, %v7429_v43  ;;  %v7430_v57 = vsub.f32 %v7334_v54, %v7414_v56 }
 0x68b   : > { %v10911_v22 = vpop.eup %10910  ;;  %v14474_v19 = vadd.f32 %v14466_v58, %v14322_v16  ;;  %v14476_v25 = vmul.f32 0.6931472, %v10909_v53  ;;  %10930 = vlog2.f32 %v7362_v30  ;;  %v7319_v18 = vsub.f32 %v14243_v27, %v14421_v61 }
 0x68c   : > { %v10913_v45 = vpop.eup %10912  ;;  %v14480_v35 = vmul.f32 0.6931472, %v10911_v22  ;;  %v7461_v2 = vadd.f32 %v7445_v49, %v7413_v1  ;;  %v7446_v55 = vmul.f32 %v15160_v29, %v7430_v57  ;;  %v7399_v51 = vsub.f32 %v14423_v50, %v14412_v5  ;;  %v15161_v49 = vld [vmem:[#allocation28_spill] sm:$0xff] }
 0x68d   : > { %v10915_v20 = vpop.eup %10914  ;;  %v14487_v16 = vadd.f32 %v14476_v25, %v14327_v33  ;;  %v14489_v46 = vmul.f32 0.6931472, %v10913_v45  ;;  %v7335_v42 = vmax.f32 %v7319_v18, -100.0  ;;  %v7320_v27 = vsub.f32 %v14241_v41, %v14433_v0 }
 0x68e   : > { %v10917_v61 = vpop.eup %10916  ;;  %v14493_v32 = vmul.f32 0.6931472, %v10915_v20  ;;  %v7477_v1 = vsub.f32 0.0, %v7461_v2  ;;  %v7462_v28 = vadd.f32 %v7446_v55, %v7414_v56  ;;  %v7415_v3 = vmax.f32 %v7399_v51, -100.0 }
 0x68f   : > { %v10919_v54 = vpop.eup %10918  ;;  %v14497_v5 = vadd.f32 %v14489_v46, %v14336_v14  ;;  %v14499_v50 = vmul.f32 0.6931472, %v10917_v61  ;;  %v7336_v33 = vmax.f32 %v7320_v27, -100.0  ;;  %v7400_v63 = vsub.f32 %v14435_v13, %v14426_v21 }
 0x690   : > { %v10921_v52 = vpop.eup %10920  ;;  %v14503_v43 = vmul.f32 0.6931472, %v10919_v54  ;;  %7495 = vadd.xlane.f32.xlu1 %v7477_v1  ;;  %v7478_v41 = vsub.f32 0.0, %v7462_v28  ;;  %v7431_v0 = vsub.f32 %v7335_v42, %v7415_v3  ;;  %v7321_v56 = vsub.f32 %v14249_v6, %v14439_v17 }
 0x691   : > { %v10923_v4 = vpop.eup %10922  ;;  %v14509_v14 = vadd.f32 %v14499_v50, %v14341_v47  ;;  %v14511_v30 = vmul.f32 0.6931472, %v10921_v52  ;;  %v7416_v53 = vmax.f32 %v7400_v63, -100.0  ;;  %v7401_v21 = vsub.f32 %v14441_v12, %v14428_v10 }
 0x692   : > { %v10925_v13 = vpop.eup %10924  ;;  %v14515_v44 = vmul.f32 0.6931472, %v10923_v4  ;;  %7497 = vadd.xlane.f32.xlu0 %v7478_v41  ;;  %v7447_v57 = vmul.f32 %v15161_v49, %v7431_v0  ;;  %v7337_v22 = vmax.f32 %v7321_v56, -100.0  ;;  %v7322_v6 = vsub.f32 %v14247_v48, %v14453_v36  ;;  %v15164_v4 = vld [vmem:[#allocation34_spill] sm:$0xff] }
 0x693   : > { %v10927_v17 = vpop.eup %10926  ;;  %v14522_v47 = vadd.f32 %v14511_v30, %v14350_v59  ;;  %v14524_v18 = vmul.f32 0.6931472, %v10925_v13  ;;  %v7432_v45 = vsub.f32 %v7336_v33, %v7416_v53  ;;  %v7417_v2 = vmax.f32 %v7401_v21, -100.0  ;;  %v15162_v59 = vld [vmem:[#allocation30_spill] sm:$0xff] }
 0x694   : > { %v10929_v10 = vpop.eup %10928  ;;  %v14526_v12 = vmul.f32 0.6931472, %v10927_v17  ;;  %v7463_v29 = vadd.f32 %v7447_v57, %v7415_v3  ;;  %v7338_v55 = vmax.f32 %v7322_v6, -100.0  ;;  %v7402_v51 = vsub.f32 %v14455_v62, %v14444_v24  ;;  %v15163_v62 = vld [vmem:[#allocation32_spill] sm:$0xff] }
 0x695   : > { %v10931_v20 = vpop.eup %10930  ;;  %v7313_v48 = vadd.f32 %v14524_v18, %v14355_v40  ;;  %v14532_v36 = vmul.f32 0.6931472, %v10929_v10  ;;  %v7448_v42 = vmul.f32 %v15162_v59, %v7432_v45  ;;  %v7433_v27 = vsub.f32 %v7337_v22, %v7417_v2  ;;  %v15166_v45 = vld [vmem:[#allocation36_spill] sm:$0xff] }
 0x696   : > { %v14535_v61 = vmul.f32 0.6931472, %v10931_v20  ;;  %v7479_v1 = vsub.f32 0.0, %v7463_v29  ;;  %v7418_v28 = vmax.f32 %v7402_v51, -100.0  ;;  %v7323_v3 = vsub.f32 %v14256_v37, %v14464_v7  ;;  %v15167_v51 = vld [vmem:[#allocation41_spill] sm:$0xff] }
 0x697   : > { %v14541_v54 = vadd.f32 %v14532_v36, %v14362_v60  ;;  %v7464_v24 = vadd.f32 %v7448_v42, %v7416_v53  ;;  %v7449_v33 = vmul.f32 %v15163_v62, %v7433_v27  ;;  %v7403_v40 = vsub.f32 %v14460_v39, %v14457_v9 }
 0x698   : > { %7499 = vadd.xlane.f32.xlu1 %v7479_v1  ;;  %v7434_v63 = vsub.f32 %v7338_v55, %v7418_v28  ;;  %v7339_v52 = vmax.f32 %v7323_v3, -100.0  ;;  %v7324_v41 = vsub.f32 %v14253_v31, %v14474_v19  ;;  %v7404_v0 = vsub.f32 %v14469_v11, %v14466_v58 }
 0x699   : > { %v7480_v37 = vsub.f32 0.0, %v7464_v24  ;;  %v7465_v7 = vadd.f32 %v7449_v33, %v7417_v2  ;;  %v7419_v56 = vmax.f32 %v7403_v40, -100.0  ;;  %v7325_v60 = vsub.f32 %v14262_v26, %v14487_v16  ;;  %v15165_v16 = vld [vmem:[#allocation37_spill] sm:$0xff] }
 0x69a   : > { %v7450_v53 = vmul.f32 %v15164_v4, %v7434_v63  ;;  %v7340_v21 = vmax.f32 %v7324_v41, -100.0  ;;  %v7420_v13 = vmax.f32 %v7404_v0, -100.0  ;;  %v7405_v9 = vsub.f32 %v14480_v35, %v14476_v25 }
 0x69b   : > { %7501 = vadd.xlane.f32.xlu0 %v7480_v37  ;;  %v7481_v39 = vsub.f32 0.0, %v7465_v7  ;;  %v7435_v49 = vsub.f32 %v7339_v52, %v7419_v56  ;;  %v7341_v31 = vmax.f32 %v7325_v60, -100.0  ;;  %v7326_v58 = vsub.f32 %v14259_v34, %v14497_v5  ;;  %v15170_v37 = vld [vmem:[#allocation42_spill] sm:$0xff] }
 0x69c   : > { %v7466_v11 = vadd.f32 %v7450_v53, %v7418_v28  ;;  %v7436_v19 = vsub.f32 %v7340_v21, %v7420_v13  ;;  %v7421_v57 = vmax.f32 %v7405_v9, -100.0  ;;  %v7406_v26 = vsub.f32 %v14493_v32, %v14489_v46  ;;  %v15168_v28 = vld [vmem:[#allocation40_spill] sm:$0xff]  ;;  %v15172_v21 = vld [vmem:[#allocation45_spill] sm:$0xff] }
 0x69d   : > { %7503 = vadd.xlane.f32.xlu1 %v7481_v39  ;;  %v7451_v22 = vmul.f32 %v15165_v16, %v7435_v49  ;;  %v7342_v6 = vmax.f32 %v7326_v58, -100.0  ;;  %v7327_v25 = vsub.f32 %v14268_v23, %v14509_v14  ;;  %v7407_v35 = vsub.f32 %v14503_v43, %v14499_v50 }
 0x69e   : > { %v7482_v17 = vsub.f32 0.0, %v7466_v11  ;;  %v7452_v2 = vmul.f32 %v15166_v45, %v7436_v19  ;;  %v7437_v34 = vsub.f32 %v7341_v31, %v7421_v57  ;;  %v7422_v5 = vmax.f32 %v7406_v26, -100.0 }
 0x69f   : > { %v7467_v10 = vadd.f32 %v7451_v22, %v7419_v56  ;;  %v7343_v29 = vmax.f32 %v7327_v25, -100.0  ;;  %v7423_v55 = vmax.f32 %v7407_v35, -100.0  ;;  %v7328_v46 = vsub.f32 %v14265_v15, %v14522_v47  ;;  %v15169_v15 = vld [vmem:[#allocation43_spill] sm:$0xff] }
 0x6a0   : > { %7505 = vadd.xlane.f32.xlu0 %v7482_v17  ;;  %v7468_v32 = vadd.f32 %v7452_v2, %v7420_v13  ;;  %v7453_v20 = vmul.f32 %v15167_v51, %v7437_v34  ;;  %v7438_v59 = vsub.f32 %v7342_v6, %v7422_v5  ;;  %v7408_v23 = vsub.f32 %v14515_v44, %v14511_v30 }
 0x6a1   : > { %v7483_v50 = vsub.f32 0.0, %v7467_v10  ;;  %v7439_v43 = vsub.f32 %v7343_v29, %v7423_v55  ;;  %v7344_v14 = vmax.f32 %v7328_v46, -100.0  ;;  %v7329_v42 = vsub.f32 %v14274_v8, %v7313_v48 }
 0x6a2   : > { %v7484_v27 = vsub.f32 0.0, %v7468_v32  ;;  %v7469_v1 = vadd.f32 %v7453_v20, %v7421_v57  ;;  %v7454_v3 = vmul.f32 %v15168_v28, %v7438_v59  ;;  %v7424_v24 = vmax.f32 %v7408_v23, -100.0 }
 0x6a3   : > { %7507 = vadd.xlane.f32.xlu1 %v7483_v50  ;;  %v7455_v47 = vmul.f32 %v15169_v15, %v7439_v43  ;;  %v7345_v62 = vmax.f32 %v7329_v42, -100.0  ;;  %v7409_v33 = vsub.f32 %v14526_v12, %v14524_v18  ;;  %v7330_v30 = vsub.f32 %v14271_v38, %v14541_v54  ;;  %v15171_v54 = vld [vmem:[#allocation46_spill] sm:$0xff] }
 0x6a4   : > { %7509 = vadd.xlane.f32.xlu0 %v7484_v27  ;;  %v7485_v44 = vsub.f32 0.0, %v7469_v1  ;;  %v7470_v40 = vadd.f32 %v7454_v3, %v7422_v5  ;;  %v7440_v63 = vsub.f32 %v7344_v14, %v7424_v24  ;;  %v7410_v8 = vsub.f32 %v14535_v61, %v14532_v36 }
 0x6a5   : > { %v7471_v48 = vadd.f32 %v7455_v47, %v7423_v55  ;;  %v7425_v52 = vmax.f32 %v7409_v33, -100.0  ;;  %v7346_v41 = vmax.f32 %v7330_v30, -100.0 }
 0x6a6   : > { %v7486_v0 = vsub.f32 0.0, %v7470_v40  ;;  %v7456_v7 = vmul.f32 %v15170_v37, %v7440_v63  ;;  %v7426_v56 = vmax.f32 %v7410_v8, -100.0 }
 0x6a7   : > { %7511 = vadd.xlane.f32.xlu1 %v7485_v44  ;;  %v7487_v60 = vsub.f32 0.0, %v7471_v48  ;;  %v7441_v18 = vsub.f32 %v7345_v62, %v7425_v52 }
 0x6a8   : > { %7513 = vadd.xlane.f32.xlu0 %v7486_v0  ;;  %v7472_v12 = vadd.f32 %v7456_v7, %v7424_v24  ;;  %v7442_v38 = vsub.f32 %v7346_v41, %v7426_v56 }
 0x6a9   : > { %v7457_v4 = vmul.f32 %v15171_v54, %v7441_v18 }
 0x6aa   : > { %v7488_v53 = vsub.f32 0.0, %v7472_v12  ;;  %v7458_v13 = vmul.f32 %v15172_v21, %v7442_v38 }
 0x6ab   : > { %7515 = vadd.xlane.f32.xlu1 %v7487_v60  ;;  %v7473_v36 = vadd.f32 %v7457_v4, %v7425_v52 }
 0x6ac   : > { %7517 = vadd.xlane.f32.xlu0 %v7488_v53  ;;  %v7474_v61 = vadd.f32 %v7458_v13, %v7426_v56 }
 0x6ad   : > { %v7489_v9 = vsub.f32 0.0, %v7473_v36 }
 0x6ae   : > { %v7490_v39 = vsub.f32 0.0, %v7474_v61 }
 0x6af   : > { %7519 = vadd.xlane.f32.xlu1 %v7489_v9 }
 0x6b0   : > { %7521 = vadd.xlane.f32.xlu0 %v7490_v39 }
 0x711   : > { %v7494_v31 = vpop.xlane.xlu0 %7493 }
 0x713   : > { %v7492_v49 = vpop.xlane.xlu1 %7491 }
 0x714   : > { %v7523_v11 = vadd.f32 %v7494_v31, %v7492_v49 }
 0x71d   : > { %v7496_v58 = vpop.xlane.xlu1 %7495 }
 0x71e   : > { %v7524_v57 = vadd.f32 %v7523_v11, %v7496_v58 }
 0x71f   : > { %v7498_v19 = vpop.xlane.xlu0 %7497 }
 0x720   : > { %v7525_v26 = vadd.f32 %v7524_v57, %v7498_v19 }
 0x725   : > { %v7500_v16 = vpop.xlane.xlu1 %7499 }
 0x726   : > { %v7526_v22 = vadd.f32 %v7525_v26, %v7500_v16 }
 0x728   : > { %v7502_v6 = vpop.xlane.xlu0 %7501 }
 0x729   : > { %v7527_v25 = vadd.f32 %v7526_v22, %v7502_v6 }
 0x72a   : > { %v7504_v35 = vpop.xlane.xlu1 %7503 }
 0x72b   : > { %v7528_v17 = vadd.f32 %v7527_v25, %v7504_v35 }
 0x72d   : > { %v7506_v45 = vpop.xlane.xlu0 %7505 }
 0x72e   : > { %v7529_v2 = vadd.f32 %v7528_v17, %v7506_v45 }
 0x730   : > { %v7508_v34 = vpop.xlane.xlu1 %7507 }
 0x731   : > { %v7530_v5 = vadd.f32 %v7529_v2, %v7508_v34  ;;  %v7510_v10 = vpop.xlane.xlu0 %7509 }
 0x733   : > { %v7531_v29 = vadd.f32 %v7530_v5, %v7510_v10 }
 0x734   : > { %v7512_v55 = vpop.xlane.xlu1 %7511 }
 0x735   : > { %v7532_v46 = vadd.f32 %v7531_v29, %v7512_v55  ;;  %v7514_v32 = vpop.xlane.xlu0 %7513 }
 0x737   : > { %v7533_v51 = vadd.f32 %v7532_v46, %v7514_v32 }
 0x738   : > { %v7516_v20 = vpop.xlane.xlu1 %7515 }
 0x739   : > { %v7534_v59 = vadd.f32 %v7533_v51, %v7516_v20  ;;  %v7518_v23 = vpop.xlane.xlu0 %7517 }
 0x73b   : > { %v7535_v50 = vadd.f32 %v7534_v59, %v7518_v23 }
 0x73c   : > { %v7520_v43 = vpop.xlane.xlu1 %7519 }
 0x73d   : > { %v7536_v14 = vadd.f32 %v7535_v50, %v7520_v43  ;;  %v7522_v42 = vpop.xlane.xlu0 %7521 }
 0x73f   : > { %v7537_v27 = vadd.f32 %v7536_v14, %v7522_v42 }
 0x741   : > { %v7538_v1 = vrot.slane %v7537_v27, 4 }
 0x743   : > { %v7539_v28 = vadd.f32 %v7538_v1, %v7537_v27 }
 0x745   : > { %v7540_v3 = vrot.slane %v7539_v28, 2 }
 0x747   : > { %v7541_v24 = vadd.f32 %v7540_v3, %v7539_v28 }
 0x749   : > { %v7542_v15 = vrot.slane %v7541_v24, 1 }
 0x74b   : > { %v7543_v47 = vadd.f32 %v7542_v15, %v7541_v24 }
 0x74d   : > { %v7544_v62 = vmul.f32 0.00012207031, %v7543_v47 }
 0x74f   : > { %7545 = vst [vmem:[%s327_s30] sm:$0xff] %v7544_v62 }
 0x750 PF: > { %s18_s27 = sadd.s32 1, %s10938_s27  }
 0x751   : > { %p15_p6 = scmp.ge.s32.totalorder %s18_s27, 6  }
 0x753   :  { %17 = sbr.rel (!%p15_p6) target bundleno = 1 (0x1), region = 85 }

</bundles_post_ra>
